<compile_context>
chip_gen: v6e
topology: v6e:2x2x1
jax: 0.10.0
libtpu: 0.0.40
codegen_flags: <defaults>
</compile_context>

<pallas_src>
import numpy as np
import jax
import jax.numpy as jnp
from jax.experimental import pallas as pl


CFG = dict(seq_len=16, enc_in=4, c_out=4, d_model=32, d_ff=32, e_layers=2,
           down_sampling_layers=1, down_sampling_window=2, moving_avg=5,
           channel_independence=1, use_norm=1)


# ----------------------------- host-side constant matrices -----------------------------

def _ma_matrix(t, k):
    """[T,T] matrix == series_decomp: replicate-pad + AvgPool1d(k, stride=1)."""
    pad = (k - 1) // 2
    m = np.zeros((t, t), np.float32)
    for i in range(t):
        for j in range(k):
            s = min(max(i - pad + j, 0), t - 1)
            m[i, s] += 1.0 / k
    return m


def _shift_matrix(t, d):
    """[T,T] circular shift: (S @ x)[i] = x[(i + d) mod t]."""
    m = np.zeros((t, t), np.float32)
    for i in range(t):
        m[i, (i + d) % t] = 1.0
    return m


# ----------------------------------- parameters -----------------------------------

def init_params(cfg, key):
    """Logical (PyTorch-shaped, [out, in]) parameters of the mixer encoder."""
    keys = iter(jax.random.split(key, 256))

    def w(shape, scale=0.1):
        return scale * jax.random.normal(next(keys), shape, dtype=jnp.float32)

    T, dw, dsl = cfg["seq_len"], cfg["down_sampling_window"], cfg["down_sampling_layers"]
    dm, dff, N = cfg["d_model"], cfg["d_ff"], cfg["enc_in"]
    p = {}
    # TokenEmbedding: Conv1d(1, d_model, kernel=3, circular padding, bias=False) -> [3, d_model]
    p["emb_w"] = w((3, dm))
    # Normalize (RevIN) affine params per scale (torch init: weight=1, bias=0)
    p["norm_w"] = [jnp.ones((N,), jnp.float32) for _ in range(dsl + 1)]
    p["norm_b"] = [jnp.zeros((N,), jnp.float32) for _ in range(dsl + 1)]
    # PastDecomposableMixing blocks
    p["pdm"] = []
    for _ in range(cfg["e_layers"]):
        blk = {"oc_w1": w((dff, dm)), "oc_b1": w((dff,)),       # out_cross: Linear(dm, dff)
               "oc_w2": w((dm, dff)), "oc_b2": w((dm,)),        #            Linear(dff, dm)
               "season": [], "trend": []}
        for i in range(dsl):                       # bottom-up season mixing (high -> low res)
            hi, lo = T // dw ** i, T // dw ** (i + 1)
            blk["season"].append(dict(w1=w((lo, hi)), b1=w((lo,)),
                                      w2=w((lo, lo)), b2=w((lo,))))
        for i in reversed(range(dsl)):             # top-down trend mixing (low -> high res)
            hi, lo = T // dw ** i, T // dw ** (i + 1)
            blk["trend"].append(dict(w1=w((hi, lo)), b1=w((hi,)),
                                     w2=w((hi, hi)), b2=w((hi,))))
        p["pdm"].append(blk)
    # projection_layer (channel_independence == 1): Linear(d_model, 1)
    p["proj_w"] = w((1, dm))
    p["proj_b"] = w((1,))
    return p


def pack_weights(params, cfg, batch):
    """Repack logical params into the lane-dense forms the fused kernel consumes (done once).

    Channel-mixing layers become block-diagonal kron(I_{B*N}, W) matrices so they run as single
    >=128-lane matmuls on the [T, B*N*d_model] activation layout; per-channel RevIN affine params
    and MLP biases are tiled to [1, lanes] / [T, 1] rows.
    """
    N, dm, dff = cfg["enc_in"], cfg["d_model"], cfg["d_ff"]
    dw, dsl = cfg["down_sampling_window"], cfg["down_sampling_layers"]
    ns = dsl + 1
    Ts = [cfg["seq_len"] // dw ** s for s in range(ns)]
    L = batch * N
    eyeL = jnp.eye(L, dtype=jnp.float32)

    pk = []
    # RevIN affine (per scale), tiled over batch -> one value per channel-independent row
    for s in range(ns):
        pk.append(jnp.tile(params["norm_w"][s], batch).reshape(1, L))
        pk.append(jnp.tile(params["norm_b"][s], batch).reshape(1, L))
    # TokenEmbedding taps as block-diagonal matrices: [L, L*dm] per tap
    for j in range(3):
        pk.append(jnp.kron(eyeL, params["emb_w"][j:j + 1, :]))
    # circular-shift matrices (prev / next sample) per scale
    for t in Ts:
        pk.append(jnp.asarray(_shift_matrix(t, -1)))    # y[t-1]
        pk.append(jnp.asarray(_shift_matrix(t, +1)))    # y[t+1]
    # series_decomp moving-average matrices per scale
    for t in Ts:
        pk.append(jnp.asarray(_ma_matrix(t, cfg["moving_avg"])))
    # PastDecomposableMixing blocks
    for blk in params["pdm"]:
        for lyr in blk["season"] + blk["trend"]:
            pk += [lyr["w1"], lyr["b1"].reshape(-1, 1), lyr["w2"], lyr["b2"].reshape(-1, 1)]
        pk.append(jnp.kron(eyeL, blk["oc_w1"].T))                    # [L*dm, L*dff]
        pk.append(jnp.tile(blk["oc_b1"], L).reshape(1, L * dff))
        pk.append(jnp.kron(eyeL, blk["oc_w2"].T))                    # [L*dff, L*dm]
        pk.append(jnp.tile(blk["oc_b2"], L).reshape(1, L * dm))
    # projection Linear(d_model, 1), block-diagonal -> [L*dm, L]
    pk.append(jnp.kron(eyeL, params["proj_w"].T))
    pk.append(jnp.tile(params["proj_b"], L).reshape(1, L))
    return pk


# ------------------------------- the single fused kernel -------------------------------

def _build_kernel(cfg):
    dsl = cfg["down_sampling_layers"]
    el = cfg["e_layers"]
    ns = dsl + 1
    eps = 1e-5

    def gelu(x):
        # TODO(synk): PyTorch nn.GELU() is erf-exact; tanh-approx is used (guaranteed Mosaic lowering).
        return jax.nn.gelu(x, approximate=True)

    def mm(a, b):
        return jnp.dot(a, b, preferred_element_type=jnp.float32)

    def kernel(*refs):
        out_ref = refs[-1]
        it = iter(refs[:-1])

        def take():
            return next(it)[...]

        # ---- unpack (order must match pack_weights + the call in llmmixer_forward) ----
        xs = [take() for _ in range(ns)]                    # raw scales, [T_s, L]
        naff = [(take(), take()) for _ in range(ns)]        # RevIN affine (w, b), each [1, L]
        emb = [take() for _ in range(3)]                    # block-diag conv taps, [L, L*dm]
        shifts = [(take(), take()) for _ in range(ns)]      # circular (prev, next), [T_s, T_s]
        mas = [take() for _ in range(ns)]                   # moving-average mats, [T_s, T_s]
        blocks = []
        for _ in range(el):
            sea = [dict(w1=take(), b1=take(), w2=take(), b2=take()) for _ in range(dsl)]
            trd = [dict(w1=take(), b1=take(), w2=take(), b2=take()) for _ in range(dsl)]
            oc = dict(w1=take(), b1=take(), w2=take(), b2=take())
            blocks.append((sea, trd, oc))
        wproj = take()                                      # [L*dm, L]
        bproj = take()                                      # [1, L]

        # ------------- per-scale RevIN 'norm' + circular-conv token embedding -------------
        enc_list, mean0, std0 = [], None, None
        for s in range(ns):
            x = xs[s]
            mean = jnp.mean(x, axis=0, keepdims=True)                    # [1, L]
            var = jnp.mean((x - mean) ** 2, axis=0, keepdims=True)       # torch.var(unbiased=False)
            std = jnp.sqrt(var + eps)
            w, b = naff[s]
            y = (x - mean) / std * w + b                                 # [T_s, L]
            if s == 0:
                mean0, std0 = mean, std
            sp, sn = shifts[s]
            yp = mm(sp, y)                                               # y[t-1] (circular)
            yn = mm(sn, y)                                               # y[t+1] (circular)
            enc_list.append(mm(yp, emb[0]) + mm(y, emb[1]) + mm(yn, emb[2]))   # [T_s, L*dm]

        # ------------------------ Past-Decomposable-Mixing encoder ------------------------
        def tmix(x, lyr):          # time-mixing MLP in lane-dense form: W @ X + b
            h = gelu(mm(lyr["w1"], x) + lyr["b1"])
            return mm(lyr["w2"], h) + lyr["b2"]

        for sea, trd, oc in blocks:
            season_list, trend_list = [], []
            for s in range(ns):
                trend = mm(mas[s], enc_list[s])                          # series_decomp trend
                season_list.append(enc_list[s] - trend)
                trend_list.append(trend)

            # bottom-up season mixing (high -> low resolution)
            out_season = [season_list[0]]
            out_high, out_low = season_list[0], season_list[1]
            for i in range(ns - 1):
                out_low = out_low + tmix(out_high, sea[i])
                out_high = out_low
                if i + 2 <= ns - 1:
                    out_low = season_list[i + 2]
                out_season.append(out_high)

            # top-down trend mixing (low -> high resolution)
            rev = list(reversed(trend_list))
            out_trend_rev = [rev[0]]
            out_low, out_high = rev[0], rev[1]
            for i in range(ns - 1):
                out_high = out_high + tmix(out_low, trd[i])
                out_low = out_high
                if i + 2 <= ns - 1:
                    out_high = rev[i + 2]
                out_trend_rev.append(out_low)
            out_trend = list(reversed(out_trend_rev))

            # residual out-cross MLP (channel mixing via block-diagonal weights)
            new_list = []
            for s in range(ns):
                o = out_season[s] + out_trend[s]                         # [T_s, L*dm]
                h = gelu(mm(o, oc["w1"]) + oc["b1"])
                new_list.append(enc_list[s] + mm(h, oc["w2"]) + oc["b2"])
            enc_list = new_list                                          # out[:, :T_s, :] is a no-op

        # ---------------- projection + RevIN 'denorm' with scale-0 statistics ----------------
        dec = mm(enc_list[0], wproj) + bproj                             # [T0, L]
        w0, b0 = naff[0]
        dec = (dec - b0) / (w0 + eps * eps)
        out_ref[...] = (dec * std0 + mean0).astype(out_ref.dtype)

    return kernel


# ----------------------------------- forward wrapper -----------------------------------

def llmmixer_forward(wpack, x_enc, cfg):
    B, T, N = x_enc.shape
    dw, dsl = cfg["down_sampling_window"], cfg["down_sampling_layers"]
    L = B * N

    # __multi_scale_process_inputs (AvgPool1d over time) + channel-independence layout
    # [B,T,N] -> [T_s, B*N]; tiny XLA glue, everything else runs in the single fused kernel.
    scales = [x_enc]
    cur = x_enc
    for _ in range(dsl):
        b, t, n = cur.shape
        cur = cur.reshape(b, t // dw, dw, n).mean(axis=2)
        scales.append(cur)
    xs2d = [jnp.transpose(x, (1, 0, 2)).reshape(x.shape[1], L) for x in scales]

    out2d = pl.pallas_call(
        _build_kernel(cfg),
        out_shape=jax.ShapeDtypeStruct((T, L), jnp.float32),
    )(*xs2d, *wpack)

    # [T, B*N] -> [B, T, N]   (channel-independent AD path: c_out == enc_in)
    return jnp.transpose(out2d.reshape(T, B, N), (1, 0, 2))


# ------------------------------------------ main ------------------------------------------

if __name__ == "__main__":
    cfg = CFG
    key = jax.random.PRNGKey(0)
    k_param, k_x = jax.random.split(key)

    params = init_params(cfg, k_param)
    B = 2
    x_enc = jax.random.normal(k_x, (B, cfg["seq_len"], cfg["enc_in"]), dtype=jnp.float32)

    # one-time repack into kernel-ready (lane-dense / block-diagonal) weights
    wpack = pack_weights(params, cfg, B)

    fwd = jax.jit(lambda wp, x: llmmixer_forward(wp, x, cfg))
    out = jax.block_until_ready(fwd(wpack, x_enc))

    assert out.shape == (B, cfg["seq_len"], cfg["c_out"]), out.shape
    assert bool(jnp.all(jnp.isfinite(out)))
    print("KERNEL_OK")
</pallas_src>

<mosaic_0001>
module attributes {stable_mosaic.version = 11 : i64} {
  func.func @kernel(%arg0: memref<16x8xf32, #tpu.memory_space<vmem>>, %arg1: memref<8x8xf32, #tpu.memory_space<vmem>>, %arg2: memref<1x8xf32, #tpu.memory_space<vmem>>, %arg3: memref<1x8xf32, #tpu.memory_space<vmem>>, %arg4: memref<1x8xf32, #tpu.memory_space<vmem>>, %arg5: memref<1x8xf32, #tpu.memory_space<vmem>>, %arg6: memref<8x256xf32, #tpu.memory_space<vmem>>, %arg7: memref<8x256xf32, #tpu.memory_space<vmem>>, %arg8: memref<8x256xf32, #tpu.memory_space<vmem>>, %arg9: memref<16x16xf32, #tpu.memory_space<vmem>>, %arg10: memref<16x16xf32, #tpu.memory_space<vmem>>, %arg11: memref<8x8xf32, #tpu.memory_space<vmem>>, %arg12: memref<8x8xf32, #tpu.memory_space<vmem>>, %arg13: memref<16x16xf32, #tpu.memory_space<vmem>>, %arg14: memref<8x8xf32, #tpu.memory_space<vmem>>, %arg15: memref<8x16xf32, #tpu.memory_space<vmem>>, %arg16: memref<8x1xf32, #tpu.memory_space<vmem>>, %arg17: memref<8x8xf32, #tpu.memory_space<vmem>>, %arg18: memref<8x1xf32, #tpu.memory_space<vmem>>, %arg19: memref<16x8xf32, #tpu.memory_space<vmem>>, %arg20: memref<16x1xf32, #tpu.memory_space<vmem>>, %arg21: memref<16x16xf32, #tpu.memory_space<vmem>>, %arg22: memref<16x1xf32, #tpu.memory_space<vmem>>, %arg23: memref<256x256xf32, #tpu.memory_space<vmem>>, %arg24: memref<1x256xf32, #tpu.memory_space<vmem>>, %arg25: memref<256x256xf32, #tpu.memory_space<vmem>>, %arg26: memref<1x256xf32, #tpu.memory_space<vmem>>, %arg27: memref<8x16xf32, #tpu.memory_space<vmem>>, %arg28: memref<8x1xf32, #tpu.memory_space<vmem>>, %arg29: memref<8x8xf32, #tpu.memory_space<vmem>>, %arg30: memref<8x1xf32, #tpu.memory_space<vmem>>, %arg31: memref<16x8xf32, #tpu.memory_space<vmem>>, %arg32: memref<16x1xf32, #tpu.memory_space<vmem>>, %arg33: memref<16x16xf32, #tpu.memory_space<vmem>>, %arg34: memref<16x1xf32, #tpu.memory_space<vmem>>, %arg35: memref<256x256xf32, #tpu.memory_space<vmem>>, %arg36: memref<1x256xf32, #tpu.memory_space<vmem>>, %arg37: memref<256x256xf32, #tpu.memory_space<vmem>>, %arg38: memref<1x256xf32, #tpu.memory_space<vmem>>, %arg39: memref<256x8xf32, #tpu.memory_space<vmem>>, %arg40: memref<1x8xf32, #tpu.memory_space<vmem>>, %arg41: memref<16x8xf32, #tpu.memory_space<vmem>>) attributes {dimension_semantics = [], scalar_prefetch = 0 : i64, scratch_operands = 0 : i64, tpu.core_type = #tpu.core_type<tc>} {
    %c0 = arith.constant 0 : index
    %c0_0 = arith.constant 0 : index
    %0 = vector.load %arg0[%c0, %c0_0] : memref<16x8xf32, #tpu.memory_space<vmem>>, vector<16x8xf32>
    %c0_1 = arith.constant 0 : index
    %c0_2 = arith.constant 0 : index
    %1 = vector.load %arg1[%c0_1, %c0_2] : memref<8x8xf32, #tpu.memory_space<vmem>>, vector<8x8xf32>
    %c0_3 = arith.constant 0 : index
    %c0_4 = arith.constant 0 : index
    %2 = vector.load %arg2[%c0_3, %c0_4] : memref<1x8xf32, #tpu.memory_space<vmem>>, vector<1x8xf32>
    %c0_5 = arith.constant 0 : index
    %c0_6 = arith.constant 0 : index
    %3 = vector.load %arg3[%c0_5, %c0_6] : memref<1x8xf32, #tpu.memory_space<vmem>>, vector<1x8xf32>
    %c0_7 = arith.constant 0 : index
    %c0_8 = arith.constant 0 : index
    %4 = vector.load %arg4[%c0_7, %c0_8] : memref<1x8xf32, #tpu.memory_space<vmem>>, vector<1x8xf32>
    %c0_9 = arith.constant 0 : index
    %c0_10 = arith.constant 0 : index
    %5 = vector.load %arg5[%c0_9, %c0_10] : memref<1x8xf32, #tpu.memory_space<vmem>>, vector<1x8xf32>
    %c0_11 = arith.constant 0 : index
    %c0_12 = arith.constant 0 : index
    %6 = vector.load %arg6[%c0_11, %c0_12] : memref<8x256xf32, #tpu.memory_space<vmem>>, vector<8x256xf32>
    %c0_13 = arith.constant 0 : index
    %c0_14 = arith.constant 0 : index
    %7 = vector.load %arg7[%c0_13, %c0_14] : memref<8x256xf32, #tpu.memory_space<vmem>>, vector<8x256xf32>
    %c0_15 = arith.constant 0 : index
    %c0_16 = arith.constant 0 : index
    %8 = vector.load %arg8[%c0_15, %c0_16] : memref<8x256xf32, #tpu.memory_space<vmem>>, vector<8x256xf32>
    %c0_17 = arith.constant 0 : index
    %c0_18 = arith.constant 0 : index
    %9 = vector.load %arg9[%c0_17, %c0_18] : memref<16x16xf32, #tpu.memory_space<vmem>>, vector<16x16xf32>
    %c0_19 = arith.constant 0 : index
    %c0_20 = arith.constant 0 : index
    %10 = vector.load %arg10[%c0_19, %c0_20] : memref<16x16xf32, #tpu.memory_space<vmem>>, vector<16x16xf32>
    %c0_21 = arith.constant 0 : index
    %c0_22 = arith.constant 0 : index
    %11 = vector.load %arg11[%c0_21, %c0_22] : memref<8x8xf32, #tpu.memory_space<vmem>>, vector<8x8xf32>
    %c0_23 = arith.constant 0 : index
    %c0_24 = arith.constant 0 : index
    %12 = vector.load %arg12[%c0_23, %c0_24] : memref<8x8xf32, #tpu.memory_space<vmem>>, vector<8x8xf32>
    %c0_25 = arith.constant 0 : index
    %c0_26 = arith.constant 0 : index
    %13 = vector.load %arg13[%c0_25, %c0_26] : memref<16x16xf32, #tpu.memory_space<vmem>>, vector<16x16xf32>
    %c0_27 = arith.constant 0 : index
    %c0_28 = arith.constant 0 : index
    %14 = vector.load %arg14[%c0_27, %c0_28] : memref<8x8xf32, #tpu.memory_space<vmem>>, vector<8x8xf32>
    %c0_29 = arith.constant 0 : index
    %c0_30 = arith.constant 0 : index
    %15 = vector.load %arg15[%c0_29, %c0_30] : memref<8x16xf32, #tpu.memory_space<vmem>>, vector<8x16xf32>
    %c0_31 = arith.constant 0 : index
    %c0_32 = arith.constant 0 : index
    %16 = vector.load %arg16[%c0_31, %c0_32] : memref<8x1xf32, #tpu.memory_space<vmem>>, vector<8x1xf32>
    %c0_33 = arith.constant 0 : index
    %c0_34 = arith.constant 0 : index
    %17 = vector.load %arg17[%c0_33, %c0_34] : memref<8x8xf32, #tpu.memory_space<vmem>>, vector<8x8xf32>
    %c0_35 = arith.constant 0 : index
    %c0_36 = arith.constant 0 : index
    %18 = vector.load %arg18[%c0_35, %c0_36] : memref<8x1xf32, #tpu.memory_space<vmem>>, vector<8x1xf32>
    %c0_37 = arith.constant 0 : index
    %c0_38 = arith.constant 0 : index
    %19 = vector.load %arg19[%c0_37, %c0_38] : memref<16x8xf32, #tpu.memory_space<vmem>>, vector<16x8xf32>
    %c0_39 = arith.constant 0 : index
    %c0_40 = arith.constant 0 : index
    %20 = vector.load %arg20[%c0_39, %c0_40] : memref<16x1xf32, #tpu.memory_space<vmem>>, vector<16x1xf32>
    %c0_41 = arith.constant 0 : index
    %c0_42 = arith.constant 0 : index
    %21 = vector.load %arg21[%c0_41, %c0_42] : memref<16x16xf32, #tpu.memory_space<vmem>>, vector<16x16xf32>
    %c0_43 = arith.constant 0 : index
    %c0_44 = arith.constant 0 : index
    %22 = vector.load %arg22[%c0_43, %c0_44] : memref<16x1xf32, #tpu.memory_space<vmem>>, vector<16x1xf32>
    %c0_45 = arith.constant 0 : index
    %c0_46 = arith.constant 0 : index
    %23 = vector.load %arg23[%c0_45, %c0_46] : memref<256x256xf32, #tpu.memory_space<vmem>>, vector<256x256xf32>
    %c0_47 = arith.constant 0 : index
    %c0_48 = arith.constant 0 : index
    %24 = vector.load %arg24[%c0_47, %c0_48] : memref<1x256xf32, #tpu.memory_space<vmem>>, vector<1x256xf32>
    %c0_49 = arith.constant 0 : index
    %c0_50 = arith.constant 0 : index
    %25 = vector.load %arg25[%c0_49, %c0_50] : memref<256x256xf32, #tpu.memory_space<vmem>>, vector<256x256xf32>
    %c0_51 = arith.constant 0 : index
    %c0_52 = arith.constant 0 : index
    %26 = vector.load %arg26[%c0_51, %c0_52] : memref<1x256xf32, #tpu.memory_space<vmem>>, vector<1x256xf32>
    %c0_53 = arith.constant 0 : index
    %c0_54 = arith.constant 0 : index
    %27 = vector.load %arg31[%c0_53, %c0_54] : memref<16x8xf32, #tpu.memory_space<vmem>>, vector<16x8xf32>
    %c0_55 = arith.constant 0 : index
    %c0_56 = arith.constant 0 : index
    %28 = vector.load %arg32[%c0_55, %c0_56] : memref<16x1xf32, #tpu.memory_space<vmem>>, vector<16x1xf32>
    %c0_57 = arith.constant 0 : index
    %c0_58 = arith.constant 0 : index
    %29 = vector.load %arg33[%c0_57, %c0_58] : memref<16x16xf32, #tpu.memory_space<vmem>>, vector<16x16xf32>
    %c0_59 = arith.constant 0 : index
    %c0_60 = arith.constant 0 : index
    %30 = vector.load %arg34[%c0_59, %c0_60] : memref<16x1xf32, #tpu.memory_space<vmem>>, vector<16x1xf32>
    %c0_61 = arith.constant 0 : index
    %c0_62 = arith.constant 0 : index
    %31 = vector.load %arg35[%c0_61, %c0_62] : memref<256x256xf32, #tpu.memory_space<vmem>>, vector<256x256xf32>
    %c0_63 = arith.constant 0 : index
    %c0_64 = arith.constant 0 : index
    %32 = vector.load %arg36[%c0_63, %c0_64] : memref<1x256xf32, #tpu.memory_space<vmem>>, vector<1x256xf32>
    %c0_65 = arith.constant 0 : index
    %c0_66 = arith.constant 0 : index
    %33 = vector.load %arg37[%c0_65, %c0_66] : memref<256x256xf32, #tpu.memory_space<vmem>>, vector<256x256xf32>
    %c0_67 = arith.constant 0 : index
    %c0_68 = arith.constant 0 : index
    %34 = vector.load %arg38[%c0_67, %c0_68] : memref<1x256xf32, #tpu.memory_space<vmem>>, vector<1x256xf32>
    %c0_69 = arith.constant 0 : index
    %c0_70 = arith.constant 0 : index
    %35 = vector.load %arg39[%c0_69, %c0_70] : memref<256x8xf32, #tpu.memory_space<vmem>>, vector<256x8xf32>
    %c0_71 = arith.constant 0 : index
    %c0_72 = arith.constant 0 : index
    %36 = vector.load %arg40[%c0_71, %c0_72] : memref<1x8xf32, #tpu.memory_space<vmem>>, vector<1x8xf32>
    %cst = arith.constant dense<0.000000e+00> : vector<8xf32>
    %37 = vector.multi_reduction <add>, %0, %cst [0] : vector<16x8xf32> to vector<8xf32>
    %38 = vector.shape_cast %37 : vector<8xf32> to vector<1x8xf32>
    %cst_73 = arith.constant 1.600000e+01 : f32
    %39 = vector.broadcast %cst_73 : f32 to vector<1x8xf32>
    %40 = arith.divf %38, %39 : vector<1x8xf32>
    %41 = vector.broadcast %40 : vector<1x8xf32> to vector<16x8xf32>
    %42 = arith.subf %0, %41 : vector<16x8xf32>
    %43 = arith.mulf %42, %42 : vector<16x8xf32>
    %cst_74 = arith.constant dense<0.000000e+00> : vector<8xf32>
    %44 = vector.multi_reduction <add>, %43, %cst_74 [0] : vector<16x8xf32> to vector<8xf32>
    %45 = vector.shape_cast %44 : vector<8xf32> to vector<1x8xf32>
    %cst_75 = arith.constant 1.600000e+01 : f32
    %46 = vector.broadcast %cst_75 : f32 to vector<1x8xf32>
    %47 = arith.divf %45, %46 : vector<1x8xf32>
    %cst_76 = arith.constant 9.99999974E-6 : f32
    %48 = vector.broadcast %cst_76 : f32 to vector<1x8xf32>
    %49 = arith.addf %47, %48 : vector<1x8xf32>
    %50 = math.sqrt %49 : vector<1x8xf32>
    %51 = vector.broadcast %40 : vector<1x8xf32> to vector<16x8xf32>
    %52 = arith.subf %0, %51 : vector<16x8xf32>
    %53 = vector.broadcast %50 : vector<1x8xf32> to vector<16x8xf32>
    %54 = arith.divf %52, %53 : vector<16x8xf32>
    %55 = vector.broadcast %2 : vector<1x8xf32> to vector<16x8xf32>
    %56 = arith.mulf %54, %55 : vector<16x8xf32>
    %57 = vector.broadcast %3 : vector<1x8xf32> to vector<16x8xf32>
    %58 = arith.addf %56, %57 : vector<16x8xf32>
    %cst_77 = arith.constant dense<0.000000e+00> : vector<16x8xf32>
    %59 = tpu.matmul %9, %58, %cst_77 {dimension_numbers = #tpu.dot_dimension_numbers<[1], [0], [0], [1], [0, 0, 1, 1], [], []>} : vector<16x16xf32>, vector<16x8xf32>, vector<16x8xf32> -> vector<16x8xf32>
    %cst_78 = arith.constant dense<0.000000e+00> : vector<16x8xf32>
    %60 = tpu.matmul %10, %58, %cst_78 {dimension_numbers = #tpu.dot_dimension_numbers<[1], [0], [0], [1], [0, 0, 1, 1], [], []>} : vector<16x16xf32>, vector<16x8xf32>, vector<16x8xf32> -> vector<16x8xf32>
    %cst_79 = arith.constant dense<0.000000e+00> : vector<16x256xf32>
    %61 = tpu.matmul %59, %6, %cst_79 {dimension_numbers = #tpu.dot_dimension_numbers<[1], [0], [0], [1], [0, 0, 1, 1], [], []>} : vector<16x8xf32>, vector<8x256xf32>, vector<16x256xf32> -> vector<16x256xf32>
    %cst_80 = arith.constant dense<0.000000e+00> : vector<16x256xf32>
    %62 = tpu.matmul %58, %7, %cst_80 {dimension_numbers = #tpu.dot_dimension_numbers<[1], [0], [0], [1], [0, 0, 1, 1], [], []>} : vector<16x8xf32>, vector<8x256xf32>, vector<16x256xf32> -> vector<16x256xf32>
    %63 = arith.addf %61, %62 : vector<16x256xf32>
    %cst_81 = arith.constant dense<0.000000e+00> : vector<16x256xf32>
    %64 = tpu.matmul %60, %8, %cst_81 {dimension_numbers = #tpu.dot_dimension_numbers<[1], [0], [0], [1], [0, 0, 1, 1], [], []>} : vector<16x8xf32>, vector<8x256xf32>, vector<16x256xf32> -> vector<16x256xf32>
    %65 = arith.addf %63, %64 : vector<16x256xf32>
    %cst_82 = arith.constant dense<0.000000e+00> : vector<8xf32>
    %66 = vector.multi_reduction <add>, %1, %cst_82 [0] : vector<8x8xf32> to vector<8xf32>
    %67 = vector.shape_cast %66 : vector<8xf32> to vector<1x8xf32>
    %cst_83 = arith.constant 8.000000e+00 : f32
    %68 = vector.broadcast %cst_83 : f32 to vector<1x8xf32>
    %69 = arith.divf %67, %68 : vector<1x8xf32>
    %70 = vector.broadcast %69 : vector<1x8xf32> to vector<8x8xf32>
    %71 = arith.subf %1, %70 : vector<8x8xf32>
    %72 = arith.mulf %71, %71 : vector<8x8xf32>
    %cst_84 = arith.constant dense<0.000000e+00> : vector<8xf32>
    %73 = vector.multi_reduction <add>, %72, %cst_84 [0] : vector<8x8xf32> to vector<8xf32>
    %74 = vector.shape_cast %73 : vector<8xf32> to vector<1x8xf32>
    %cst_85 = arith.constant 8.000000e+00 : f32
    %75 = vector.broadcast %cst_85 : f32 to vector<1x8xf32>
    %76 = arith.divf %74, %75 : vector<1x8xf32>
    %cst_86 = arith.constant 9.99999974E-6 : f32
    %77 = vector.broadcast %cst_86 : f32 to vector<1x8xf32>
    %78 = arith.addf %76, %77 : vector<1x8xf32>
    %79 = math.sqrt %78 : vector<1x8xf32>
    %80 = vector.broadcast %69 : vector<1x8xf32> to vector<8x8xf32>
    %81 = arith.subf %1, %80 : vector<8x8xf32>
    %82 = vector.broadcast %79 : vector<1x8xf32> to vector<8x8xf32>
    %83 = arith.divf %81, %82 : vector<8x8xf32>
    %84 = vector.broadcast %4 : vector<1x8xf32> to vector<8x8xf32>
    %85 = arith.mulf %83, %84 : vector<8x8xf32>
    %86 = vector.broadcast %5 : vector<1x8xf32> to vector<8x8xf32>
    %87 = arith.addf %85, %86 : vector<8x8xf32>
    %cst_87 = arith.constant dense<0.000000e+00> : vector<8x8xf32>
    %88 = tpu.matmul %11, %87, %cst_87 {dimension_numbers = #tpu.dot_dimension_numbers<[1], [0], [0], [1], [0, 0, 1, 1], [], []>} : vector<8x8xf32>, vector<8x8xf32>, vector<8x8xf32> -> vector<8x8xf32>
    %cst_88 = arith.constant dense<0.000000e+00> : vector<8x8xf32>
    %89 = tpu.matmul %12, %87, %cst_88 {dimension_numbers = #tpu.dot_dimension_numbers<[1], [0], [0], [1], [0, 0, 1, 1], [], []>} : vector<8x8xf32>, vector<8x8xf32>, vector<8x8xf32> -> vector<8x8xf32>
    %cst_89 = arith.constant dense<0.000000e+00> : vector<8x256xf32>
    %90 = tpu.matmul %88, %6, %cst_89 {dimension_numbers = #tpu.dot_dimension_numbers<[1], [0], [0], [1], [0, 0, 1, 1], [], []>} : vector<8x8xf32>, vector<8x256xf32>, vector<8x256xf32> -> vector<8x256xf32>
    %cst_90 = arith.constant dense<0.000000e+00> : vector<8x256xf32>
    %91 = tpu.matmul %87, %7, %cst_90 {dimension_numbers = #tpu.dot_dimension_numbers<[1], [0], [0], [1], [0, 0, 1, 1], [], []>} : vector<8x8xf32>, vector<8x256xf32>, vector<8x256xf32> -> vector<8x256xf32>
    %92 = arith.addf %90, %91 : vector<8x256xf32>
    %cst_91 = arith.constant dense<0.000000e+00> : vector<8x256xf32>
    %93 = tpu.matmul %89, %8, %cst_91 {dimension_numbers = #tpu.dot_dimension_numbers<[1], [0], [0], [1], [0, 0, 1, 1], [], []>} : vector<8x8xf32>, vector<8x256xf32>, vector<8x256xf32> -> vector<8x256xf32>
    %94 = arith.addf %92, %93 : vector<8x256xf32>
    %cst_92 = arith.constant dense<0.000000e+00> : vector<16x256xf32>
    %95 = tpu.matmul %13, %65, %cst_92 {dimension_numbers = #tpu.dot_dimension_numbers<[1], [0], [0], [1], [0, 0, 1, 1], [], []>} : vector<16x16xf32>, vector<16x256xf32>, vector<16x256xf32> -> vector<16x256xf32>
    %96 = arith.subf %65, %95 : vector<16x256xf32>
    %cst_93 = arith.constant dense<0.000000e+00> : vector<8x256xf32>
    %97 = tpu.matmul %14, %94, %cst_93 {dimension_numbers = #tpu.dot_dimension_numbers<[1], [0], [0], [1], [0, 0, 1, 1], [], []>} : vector<8x8xf32>, vector<8x256xf32>, vector<8x256xf32> -> vector<8x256xf32>
    %98 = arith.subf %94, %97 : vector<8x256xf32>
    %cst_94 = arith.constant dense<0.000000e+00> : vector<8x256xf32>
    %99 = tpu.matmul %15, %96, %cst_94 {dimension_numbers = #tpu.dot_dimension_numbers<[1], [0], [0], [1], [0, 0, 1, 1], [], []>} : vector<8x16xf32>, vector<16x256xf32>, vector<8x256xf32> -> vector<8x256xf32>
    %100 = vector.broadcast %16 : vector<8x1xf32> to vector<8x256xf32>
    %101 = arith.addf %99, %100 : vector<8x256xf32>
    %102 = arith.mulf %101, %101 : vector<8x256xf32>
    %103 = arith.mulf %101, %102 : vector<8x256xf32>
    %cst_95 = arith.constant 4.471500e-02 : f32
    %104 = vector.broadcast %cst_95 : f32 to vector<8x256xf32>
    %105 = arith.mulf %104, %103 : vector<8x256xf32>
    %106 = arith.addf %101, %105 : vector<8x256xf32>
    %cst_96 = arith.constant 0.797884583 : f32
    %107 = vector.broadcast %cst_96 : f32 to vector<8x256xf32>
    %108 = arith.mulf %107, %106 : vector<8x256xf32>
    %109 = math.tanh %108 : vector<8x256xf32>
    %cst_97 = arith.constant 1.000000e+00 : f32
    %110 = vector.broadcast %cst_97 : f32 to vector<8x256xf32>
    %111 = arith.addf %110, %109 : vector<8x256xf32>
    %cst_98 = arith.constant 5.000000e-01 : f32
    %112 = vector.broadcast %cst_98 : f32 to vector<8x256xf32>
    %113 = arith.mulf %112, %111 : vector<8x256xf32>
    %114 = arith.mulf %101, %113 : vector<8x256xf32>
    %cst_99 = arith.constant dense<0.000000e+00> : vector<8x256xf32>
    %115 = tpu.matmul %17, %114, %cst_99 {dimension_numbers = #tpu.dot_dimension_numbers<[1], [0], [0], [1], [0, 0, 1, 1], [], []>} : vector<8x8xf32>, vector<8x256xf32>, vector<8x256xf32> -> vector<8x256xf32>
    %116 = vector.broadcast %18 : vector<8x1xf32> to vector<8x256xf32>
    %117 = arith.addf %115, %116 : vector<8x256xf32>
    %118 = arith.addf %98, %117 : vector<8x256xf32>
    %cst_100 = arith.constant dense<0.000000e+00> : vector<16x256xf32>
    %119 = tpu.matmul %19, %97, %cst_100 {dimension_numbers = #tpu.dot_dimension_numbers<[1], [0], [0], [1], [0, 0, 1, 1], [], []>} : vector<16x8xf32>, vector<8x256xf32>, vector<16x256xf32> -> vector<16x256xf32>
    %120 = vector.broadcast %20 : vector<16x1xf32> to vector<16x256xf32>
    %121 = arith.addf %119, %120 : vector<16x256xf32>
    %122 = arith.mulf %121, %121 : vector<16x256xf32>
    %123 = arith.mulf %121, %122 : vector<16x256xf32>
    %cst_101 = arith.constant 4.471500e-02 : f32
    %124 = vector.broadcast %cst_101 : f32 to vector<16x256xf32>
    %125 = arith.mulf %124, %123 : vector<16x256xf32>
    %126 = arith.addf %121, %125 : vector<16x256xf32>
    %cst_102 = arith.constant 0.797884583 : f32
    %127 = vector.broadcast %cst_102 : f32 to vector<16x256xf32>
    %128 = arith.mulf %127, %126 : vector<16x256xf32>
    %129 = math.tanh %128 : vector<16x256xf32>
    %cst_103 = arith.constant 1.000000e+00 : f32
    %130 = vector.broadcast %cst_103 : f32 to vector<16x256xf32>
    %131 = arith.addf %130, %129 : vector<16x256xf32>
    %cst_104 = arith.constant 5.000000e-01 : f32
    %132 = vector.broadcast %cst_104 : f32 to vector<16x256xf32>
    %133 = arith.mulf %132, %131 : vector<16x256xf32>
    %134 = arith.mulf %121, %133 : vector<16x256xf32>
    %cst_105 = arith.constant dense<0.000000e+00> : vector<16x256xf32>
    %135 = tpu.matmul %21, %134, %cst_105 {dimension_numbers = #tpu.dot_dimension_numbers<[1], [0], [0], [1], [0, 0, 1, 1], [], []>} : vector<16x16xf32>, vector<16x256xf32>, vector<16x256xf32> -> vector<16x256xf32>
    %136 = vector.broadcast %22 : vector<16x1xf32> to vector<16x256xf32>
    %137 = arith.addf %135, %136 : vector<16x256xf32>
    %138 = arith.addf %95, %137 : vector<16x256xf32>
    %139 = arith.addf %96, %138 : vector<16x256xf32>
    %cst_106 = arith.constant dense<0.000000e+00> : vector<16x256xf32>
    %140 = tpu.matmul %139, %23, %cst_106 {dimension_numbers = #tpu.dot_dimension_numbers<[1], [0], [0], [1], [0, 0, 1, 1], [], []>} : vector<16x256xf32>, vector<256x256xf32>, vector<16x256xf32> -> vector<16x256xf32>
    %141 = vector.broadcast %24 : vector<1x256xf32> to vector<16x256xf32>
    %142 = arith.addf %140, %141 : vector<16x256xf32>
    %143 = arith.mulf %142, %142 : vector<16x256xf32>
    %144 = arith.mulf %142, %143 : vector<16x256xf32>
    %cst_107 = arith.constant 4.471500e-02 : f32
    %145 = vector.broadcast %cst_107 : f32 to vector<16x256xf32>
    %146 = arith.mulf %145, %144 : vector<16x256xf32>
    %147 = arith.addf %142, %146 : vector<16x256xf32>
    %cst_108 = arith.constant 0.797884583 : f32
    %148 = vector.broadcast %cst_108 : f32 to vector<16x256xf32>
    %149 = arith.mulf %148, %147 : vector<16x256xf32>
    %150 = math.tanh %149 : vector<16x256xf32>
    %cst_109 = arith.constant 1.000000e+00 : f32
    %151 = vector.broadcast %cst_109 : f32 to vector<16x256xf32>
    %152 = arith.addf %151, %150 : vector<16x256xf32>
    %cst_110 = arith.constant 5.000000e-01 : f32
    %153 = vector.broadcast %cst_110 : f32 to vector<16x256xf32>
    %154 = arith.mulf %153, %152 : vector<16x256xf32>
    %155 = arith.mulf %142, %154 : vector<16x256xf32>
    %cst_111 = arith.constant dense<0.000000e+00> : vector<16x256xf32>
    %156 = tpu.matmul %155, %25, %cst_111 {dimension_numbers = #tpu.dot_dimension_numbers<[1], [0], [0], [1], [0, 0, 1, 1], [], []>} : vector<16x256xf32>, vector<256x256xf32>, vector<16x256xf32> -> vector<16x256xf32>
    %157 = arith.addf %65, %156 : vector<16x256xf32>
    %158 = vector.broadcast %26 : vector<1x256xf32> to vector<16x256xf32>
    %159 = arith.addf %157, %158 : vector<16x256xf32>
    %160 = arith.addf %118, %97 : vector<8x256xf32>
    %cst_112 = arith.constant dense<0.000000e+00> : vector<8x256xf32>
    %161 = tpu.matmul %160, %23, %cst_112 {dimension_numbers = #tpu.dot_dimension_numbers<[1], [0], [0], [1], [0, 0, 1, 1], [], []>} : vector<8x256xf32>, vector<256x256xf32>, vector<8x256xf32> -> vector<8x256xf32>
    %162 = vector.broadcast %24 : vector<1x256xf32> to vector<8x256xf32>
    %163 = arith.addf %161, %162 : vector<8x256xf32>
    %164 = arith.mulf %163, %163 : vector<8x256xf32>
    %165 = arith.mulf %163, %164 : vector<8x256xf32>
    %cst_113 = arith.constant 4.471500e-02 : f32
    %166 = vector.broadcast %cst_113 : f32 to vector<8x256xf32>
    %167 = arith.mulf %166, %165 : vector<8x256xf32>
    %168 = arith.addf %163, %167 : vector<8x256xf32>
    %cst_114 = arith.constant 0.797884583 : f32
    %169 = vector.broadcast %cst_114 : f32 to vector<8x256xf32>
    %170 = arith.mulf %169, %168 : vector<8x256xf32>
    %171 = math.tanh %170 : vector<8x256xf32>
    %cst_115 = arith.constant 1.000000e+00 : f32
    %172 = vector.broadcast %cst_115 : f32 to vector<8x256xf32>
    %173 = arith.addf %172, %171 : vector<8x256xf32>
    %cst_116 = arith.constant 5.000000e-01 : f32
    %174 = vector.broadcast %cst_116 : f32 to vector<8x256xf32>
    %175 = arith.mulf %174, %173 : vector<8x256xf32>
    %176 = arith.mulf %163, %175 : vector<8x256xf32>
    %cst_117 = arith.constant dense<0.000000e+00> : vector<8x256xf32>
    %177 = tpu.matmul %176, %25, %cst_117 {dimension_numbers = #tpu.dot_dimension_numbers<[1], [0], [0], [1], [0, 0, 1, 1], [], []>} : vector<8x256xf32>, vector<256x256xf32>, vector<8x256xf32> -> vector<8x256xf32>
    %178 = arith.addf %94, %177 : vector<8x256xf32>
    %179 = vector.broadcast %26 : vector<1x256xf32> to vector<8x256xf32>
    %180 = arith.addf %178, %179 : vector<8x256xf32>
    %cst_118 = arith.constant dense<0.000000e+00> : vector<16x256xf32>
    %181 = tpu.matmul %13, %159, %cst_118 {dimension_numbers = #tpu.dot_dimension_numbers<[1], [0], [0], [1], [0, 0, 1, 1], [], []>} : vector<16x16xf32>, vector<16x256xf32>, vector<16x256xf32> -> vector<16x256xf32>
    %182 = arith.subf %159, %181 : vector<16x256xf32>
    %cst_119 = arith.constant dense<0.000000e+00> : vector<8x256xf32>
    %183 = tpu.matmul %14, %180, %cst_119 {dimension_numbers = #tpu.dot_dimension_numbers<[1], [0], [0], [1], [0, 0, 1, 1], [], []>} : vector<8x8xf32>, vector<8x256xf32>, vector<8x256xf32> -> vector<8x256xf32>
    %cst_120 = arith.constant dense<0.000000e+00> : vector<16x256xf32>
    %184 = tpu.matmul %27, %183, %cst_120 {dimension_numbers = #tpu.dot_dimension_numbers<[1], [0], [0], [1], [0, 0, 1, 1], [], []>} : vector<16x8xf32>, vector<8x256xf32>, vector<16x256xf32> -> vector<16x256xf32>
    %185 = vector.broadcast %28 : vector<16x1xf32> to vector<16x256xf32>
    %186 = arith.addf %184, %185 : vector<16x256xf32>
    %187 = arith.mulf %186, %186 : vector<16x256xf32>
    %188 = arith.mulf %186, %187 : vector<16x256xf32>
    %cst_121 = arith.constant 4.471500e-02 : f32
    %189 = vector.broadcast %cst_121 : f32 to vector<16x256xf32>
    %190 = arith.mulf %189, %188 : vector<16x256xf32>
    %191 = arith.addf %186, %190 : vector<16x256xf32>
    %cst_122 = arith.constant 0.797884583 : f32
    %192 = vector.broadcast %cst_122 : f32 to vector<16x256xf32>
    %193 = arith.mulf %192, %191 : vector<16x256xf32>
    %194 = math.tanh %193 : vector<16x256xf32>
    %cst_123 = arith.constant 1.000000e+00 : f32
    %195 = vector.broadcast %cst_123 : f32 to vector<16x256xf32>
    %196 = arith.addf %195, %194 : vector<16x256xf32>
    %cst_124 = arith.constant 5.000000e-01 : f32
    %197 = vector.broadcast %cst_124 : f32 to vector<16x256xf32>
    %198 = arith.mulf %197, %196 : vector<16x256xf32>
    %199 = arith.mulf %186, %198 : vector<16x256xf32>
    %cst_125 = arith.constant dense<0.000000e+00> : vector<16x256xf32>
    %200 = tpu.matmul %29, %199, %cst_125 {dimension_numbers = #tpu.dot_dimension_numbers<[1], [0], [0], [1], [0, 0, 1, 1], [], []>} : vector<16x16xf32>, vector<16x256xf32>, vector<16x256xf32> -> vector<16x256xf32>
    %201 = vector.broadcast %30 : vector<16x1xf32> to vector<16x256xf32>
    %202 = arith.addf %200, %201 : vector<16x256xf32>
    %203 = arith.addf %181, %202 : vector<16x256xf32>
    %204 = arith.addf %182, %203 : vector<16x256xf32>
    %cst_126 = arith.constant dense<0.000000e+00> : vector<16x256xf32>
    %205 = tpu.matmul %204, %31, %cst_126 {dimension_numbers = #tpu.dot_dimension_numbers<[1], [0], [0], [1], [0, 0, 1, 1], [], []>} : vector<16x256xf32>, vector<256x256xf32>, vector<16x256xf32> -> vector<16x256xf32>
    %206 = vector.broadcast %32 : vector<1x256xf32> to vector<16x256xf32>
    %207 = arith.addf %205, %206 : vector<16x256xf32>
    %208 = arith.mulf %207, %207 : vector<16x256xf32>
    %209 = arith.mulf %207, %208 : vector<16x256xf32>
    %cst_127 = arith.constant 4.471500e-02 : f32
    %210 = vector.broadcast %cst_127 : f32 to vector<16x256xf32>
    %211 = arith.mulf %210, %209 : vector<16x256xf32>
    %212 = arith.addf %207, %211 : vector<16x256xf32>
    %cst_128 = arith.constant 0.797884583 : f32
    %213 = vector.broadcast %cst_128 : f32 to vector<16x256xf32>
    %214 = arith.mulf %213, %212 : vector<16x256xf32>
    %215 = math.tanh %214 : vector<16x256xf32>
    %cst_129 = arith.constant 1.000000e+00 : f32
    %216 = vector.broadcast %cst_129 : f32 to vector<16x256xf32>
    %217 = arith.addf %216, %215 : vector<16x256xf32>
    %cst_130 = arith.constant 5.000000e-01 : f32
    %218 = vector.broadcast %cst_130 : f32 to vector<16x256xf32>
    %219 = arith.mulf %218, %217 : vector<16x256xf32>
    %220 = arith.mulf %207, %219 : vector<16x256xf32>
    %cst_131 = arith.constant dense<0.000000e+00> : vector<16x256xf32>
    %221 = tpu.matmul %220, %33, %cst_131 {dimension_numbers = #tpu.dot_dimension_numbers<[1], [0], [0], [1], [0, 0, 1, 1], [], []>} : vector<16x256xf32>, vector<256x256xf32>, vector<16x256xf32> -> vector<16x256xf32>
    %222 = arith.addf %159, %221 : vector<16x256xf32>
    %223 = vector.broadcast %34 : vector<1x256xf32> to vector<16x256xf32>
    %224 = arith.addf %222, %223 : vector<16x256xf32>
    %cst_132 = arith.constant dense<0.000000e+00> : vector<16x8xf32>
    %225 = tpu.matmul %224, %35, %cst_132 {dimension_numbers = #tpu.dot_dimension_numbers<[1], [0], [0], [1], [0, 0, 1, 1], [], []>} : vector<16x256xf32>, vector<256x8xf32>, vector<16x8xf32> -> vector<16x8xf32>
    %226 = vector.broadcast %36 : vector<1x8xf32> to vector<16x8xf32>
    %227 = arith.addf %225, %226 : vector<16x8xf32>
    %228 = vector.broadcast %3 : vector<1x8xf32> to vector<16x8xf32>
    %229 = arith.subf %227, %228 : vector<16x8xf32>
    %cst_133 = arith.constant 1.000000e-10 : f32
    %230 = vector.broadcast %cst_133 : f32 to vector<1x8xf32>
    %231 = arith.addf %2, %230 : vector<1x8xf32>
    %232 = vector.broadcast %231 : vector<1x8xf32> to vector<16x8xf32>
    %233 = arith.divf %229, %232 : vector<16x8xf32>
    %234 = vector.broadcast %50 : vector<1x8xf32> to vector<16x8xf32>
    %235 = arith.mulf %233, %234 : vector<16x8xf32>
    %236 = vector.broadcast %40 : vector<1x8xf32> to vector<16x8xf32>
    %237 = arith.addf %235, %236 : vector<16x8xf32>
    %c0_134 = arith.constant 0 : index
    %c0_135 = arith.constant 0 : index
    %238 = vector.load %arg41[%c0_134, %c0_135] : memref<16x8xf32, #tpu.memory_space<vmem>>, vector<16x8xf32>
    tpu.vector_store %arg41[%c0_134, %c0_135], %237 {strides = array<i32>} : memref<16x8xf32, #tpu.memory_space<vmem>>, vector<16x8xf32>,
    return
  }
}

</mosaic_0001>

<bundles_post_ra>
// kernel: _lambda_.1
= control target key start
LH: loop header
LB: loop body
LE: loop exit
PB: predicated region body
PF: predicated region fallthrough
CT: control target
= control target key end

     0   :  { %s3785_s6 = smov 1   ;;  %s3786_s10 = smov 2   ;;  %s4948_s0 = inlined_call_operand.smem [shape: u32[42], index: -1, kind: input, shape index: {}] }
   0x1   :  { %s3851_s5 = sld [smem:[%s4948_s0]]   ;;  %s3787_s14 = smov 3  }
   0x2   :  { %s3856_s9 = sld [smem:[%s4948_s0 + %s3785_s6]]   ;;  %s3788_s18 = smov 4  }
   0x3   :  { %s3861_s13 = sld [smem:[%s4948_s0 + %s3786_s10]]   ;;  %s3789_s22 = smov 5  }
   0x4   :  { %s3866_s17 = sld [smem:[%s4948_s0 + %s3787_s14]]   ;;  %s3790_s26 = smov 6  }
   0x5   :  { %s3871_s21 = sld [smem:[%s4948_s0 + %s3788_s18]]   ;;  %s3791_s30 = smov 7  }
   0x6   :  { %s3876_s25 = sld [smem:[%s4948_s0 + %s3789_s22]]   ;;  %s3792_s4 = smov 8  }
   0x7   :  { %5040 = sst [smem:[#allocation32_spill]] %s3851_s5  ;;  %s3793_s10 = smov 9  }
   0x8   :  { %5041 = sst [smem:[#allocation33_spill]] %s3856_s9  ;;  %s3794_s15 = smov 10  }
   0x9   :  { %5042 = sst [smem:[#allocation34_spill]] %s3861_s13  ;;  %s3795_s20 = smov 11  }
   0xa   :  { %s3881_s29 = sld [smem:[%s4948_s0 + %s3790_s26]]   ;;  %s3796_s26 = smov 12  }
   0xb   :  { %s3886_s3 = sld [smem:[%s4948_s0 + %s3791_s30]]   ;;  %s3797_s1 = smov 13  }
   0xc   :  { %s3891_s8 = sld [smem:[%s4948_s0 + %s3792_s4]]   ;;  %s3798_s7 = smov 14  }
   0xd   :  { %s3896_s14 = sld [smem:[%s4948_s0 + %s3793_s10]]   ;;  %s3800_s22 = smov 16  }
   0xe   :  { %s3901_s19 = sld [smem:[%s4948_s0 + %s3794_s15]]   ;;  %s3799_s15 = smov 15  }
   0xf   :  { %s3906_s24 = sld [smem:[%s4948_s0 + %s3795_s20]]   ;;  %s3801_s28 = smov 17  }
  0x10   :  { %5043 = sst [smem:[#allocation35_spill]] %s3881_s29 }
  0x11   :  { %5044 = sst [smem:[#allocation36_spill]] %s3886_s3 }
  0x12   :  { %5045 = sst [smem:[#allocation37_spill]] %s3891_s8 }
  0x13   :  { %5046 = sst [smem:[#allocation38_spill]] %s3896_s14 }
  0x14   :  { %5047 = sst [smem:[#allocation39_spill]] %s3901_s19 }
  0x15   :  { %s3911_s30 = sld [smem:[%s4948_s0 + %s3796_s26]]  }
  0x16   :  { %s3916_s6 = sld [smem:[%s4948_s0 + %s3797_s1]]  }
  0x17   :  { %s3921_s12 = sld [smem:[%s4948_s0 + %s3798_s7]]   ;;  %s3802_s7 = smov 18  }
  0x18   :  { %s3926_s20 = sld [smem:[%s4948_s0 + %s3799_s15]]   ;;  %s3803_s15 = smov 19  }
  0x19   :  { %s3931_s27 = sld [smem:[%s4948_s0 + %s3800_s22]]   ;;  %s3804_s22 = smov 20  }
  0x1a   :  { %s3936_s4 = sld [smem:[%s4948_s0 + %s3801_s28]]   ;;  %s3805_s28 = smov 21  }
  0x1b   :  { %s3946_s8 = sld [smem:[%s4948_s0 + %s3803_s15]]   ;;  %s3807_s15 = smov 23  }
  0x1c   :  { %5048 = sst [smem:[#allocation40_spill]] %s3916_s6 }
  0x1d   :  { %s3941_s6 = sld [smem:[%s4948_s0 + %s3802_s7]]   ;;  %s3806_s7 = smov 22  }
  0x1e   :  { %s3956_s29 = sld [smem:[%s4948_s0 + %s3805_s28]]   ;;  %s3809_s28 = smov 25  }
  0x1f   :  { %5049 = sst [smem:[#allocation41_spill]] %s3931_s27 }
  0x20   :  { %s3951_s27 = sld [smem:[%s4948_s0 + %s3804_s22]]   ;;  %s3808_s22 = smov 24  }
  0x21   :  { %5051 = sst [smem:[#allocation43_spill]] %s3946_s8 }
  0x22   :  { %s3966_s8 = sld [smem:[%s4948_s0 + %s3807_s15]]   ;;  %s3811_s15 = smov 27  }
  0x23   :  { %5050 = sst [smem:[#allocation42_spill]] %s3941_s6 }
  0x24   :  { %5053 = sst [smem:[#allocation45_spill]] %s3956_s29 }
  0x25   :  { %s3961_s6 = sld [smem:[%s4948_s0 + %s3806_s7]]   ;;  %s3810_s7 = smov 26  }
  0x26   :  { %5052 = sst [smem:[#allocation44_spill]] %s3951_s27 }
  0x27   :  { %s3971_s27 = sld [smem:[%s4948_s0 + %s3808_s22]]   ;;  %s3812_s22 = smov 29  }
  0x28   :  { %5055 = sst [smem:[#allocation47_spill]] %s3966_s8 }
  0x29   :  { %s3976_s29 = sld [smem:[%s4948_s0 + %s3809_s28]]   ;;  %s3813_s28 = smov 31  }
  0x2a   :  { %s3986_s8 = sld [smem:[%s4948_s0 + %s3811_s15]]   ;;  %s3815_s15 = smov 33  }
  0x2b   :  { %5054 = sst [smem:[#allocation46_spill]] %s3961_s6 }
  0x2c   :  { %s3981_s6 = sld [smem:[%s4948_s0 + %s3810_s7]]   ;;  %s3814_s7 = smov 32  }
  0x2d   :  { %5056 = sst [smem:[#allocation48_spill]] %s3971_s27 }
  0x2e   :  { %s3991_s27 = sld [smem:[%s4948_s0 + %s3812_s22]]   ;;  %s3816_s22 = smov 34  }
  0x2f   :  { %s3996_s3 = sld [smem:[%s4948_s0 + %s3813_s28]]   ;;  %s3817_s28 = smov 35  }
  0x30   :  { %s4001_s19 = sld [smem:[%s4948_s0 + %s3814_s7]]   ;;  %s3818_s7 = smov 36  }
  0x31   :  { %s4006_s13 = sld [smem:[%s4948_s0 + %s3815_s15]]   ;;  %s3819_s15 = smov 37  }
  0x32   :  { %s4011_s9 = sld [smem:[%s4948_s0 + %s3816_s22]]   ;;  %s3820_s22 = smov 38  }
  0x35   :  { %5057 = sst [smem:[#allocation49_spill]] %s3996_s3 }
  0x36   :  { %5058 = sst [smem:[#allocation50_spill]] %s4001_s19 }
  0x37   :  { %5059 = sst [smem:[#allocation51_spill]] %s4006_s13 }
  0x38   :  { %5060 = sst [smem:[#allocation52_spill]] %s4011_s9 }
  0x39   :  { %s4016_s3 = sld [smem:[%s4948_s0 + %s3817_s28]]   ;;  %s3821_s28 = smov 39  }
  0x3a   :  { %s4021_s19 = sld [smem:[%s4948_s0 + %s3818_s7]]   ;;  %s3822_s7 = smov 40  }
  0x3b   :  { %s4026_s13 = sld [smem:[%s4948_s0 + %s3819_s15]]   ;;  %s3823_s15 = smov 41  }
  0x3c   :  { %s4031_s9 = sld [smem:[%s4948_s0 + %s3820_s22]]  }
  0x3d   :  { %s4036_s14 = sld [smem:[%s4948_s0 + %s3821_s28]]  }
  0x3e   :  { %s4046_s5 = sld [smem:[%s4948_s0 + %s3823_s15]]  }
  0x40   :  { %5061 = sst [smem:[#allocation53_spill]] %s4021_s19 }
  0x41   :  { %s4041_s19 = sld [smem:[%s4948_s0 + %s3822_s7]]  }
  0x42   :  { %88 = vsyncpa [#allocation3], 0 }
  0x43   :  { %89 = vsyncpa [#allocation5], 0 }
  0x44   :  { %90 = vsyncpa [#allocation8], 0 }
  0x45   :  { %91 = vsyncpa [#allocation11], 0 }
  0x46   :  { %92 = vsyncpa [#allocation14], 0 }
  0x47   :  { %93 = vsyncpa [#allocation17], 0 }
  0x48   :  { %94 = vsyncpa [#allocation20], 0 }
  0x49   :  { %95 = vsyncpa [#allocation23], 0  ;;  %s3824_s22 = smov [#allocation4]   ;;  %s3825_s26 = smov [#allocation7]  }
  0x4a   :  { %s118_s23 = sshll.u32 %s3824_s22, 4  ;;  %s148_s28 = sshll.u32 %s3825_s26, 4  ;;  %s119_s23 = int_to_ptr.vmem [resolvable:$true] %s118_s23  ;;  %s149_s28 = int_to_ptr.vmem [resolvable:$true] %s148_s28 }
  0x4b   :  { %s3497_s1 = scalar_lea.vmem %s119_s23, 16  ;;  %s3501_s2 = scalar_lea.vmem %s119_s23, 32 }
  0x4c   :  { %p3498_p0 = scmp.ne.s32.totalorder %s119_s23, %s3497_s1  ;;  %p3502_p1 = scmp.lt.s32.totalorder %s119_s23, %s119_s23 }
  0x4d   :  { %p3503_p2 = scmp.lt.s32.totalorder %s3501_s2, %s3497_s1 }
  0x4f   :  { %p3504_p3 = por %p3503_p2, %p3502_p1 }
  0x51   :  { %p3505_p4 = pnand %p3504_p3, %p3498_p0 }
  0x53   :  { %3508 = shalt.err (!%p3505_p4)
}
  0x54   :  { %121 = dma.hbm_to_vmem [thread:$0]  %s3871_s21, 16, %s119_s23, [#allocation5]  }
  0x55   :  { %s3517_s0 = scalar_lea.vmem %s149_s28, 128  ;;  %p3522_p6 = scmp.lt.s32.totalorder %s149_s28, %s149_s28 }
  0x56   :  { %p3518_p5 = scmp.ne.s32.totalorder %s149_s28, %s3517_s0  ;;  %p3523_p7 = scmp.lt.s32.totalorder %s3517_s0, %s3517_s0 }
  0x58   :  { %p3524_p8 = por %p3523_p7, %p3522_p6 }
  0x5a   :  { %p3525_p9 = pnand %p3524_p8, %p3518_p5 }
  0x5c   :  { %3528 = shalt.err (!%p3525_p9)
}
  0x5d   :  { %151 = dma.hbm_to_vmem [thread:$0]  %s3906_s24, 128, %s149_s28, [#allocation8]  }
  0x5e   :  { %s3826_s7 = smov [#allocation10]   ;;  %s3827_s11 = smov [#allocation13]  }
  0x5f   :  { %s170_s10 = sshll.u32 %s3826_s7, 4  ;;  %s192_s15 = sshll.u32 %s3827_s11, 4  ;;  %s171_s10 = int_to_ptr.vmem [resolvable:$true] %s170_s10  ;;  %s193_s15 = int_to_ptr.vmem [resolvable:$true] %s192_s15 }
  0x60   :  { %s3537_s16 = scalar_lea.vmem %s171_s10, 128  ;;  %p3542_p11 = scmp.lt.s32.totalorder %s171_s10, %s171_s10 }
  0x61   :  { %p3538_p10 = scmp.ne.s32.totalorder %s171_s10, %s3537_s16  ;;  %p3543_p12 = scmp.lt.s32.totalorder %s3537_s16, %s3537_s16 }
  0x63   :  { %p3544_p13 = por %p3543_p12, %p3542_p11 }
  0x65   :  { %p3545_p0 = pnand %p3544_p13, %p3538_p10 }
  0x67   :  { %3548 = shalt.err (!%p3545_p0)
}
  0x68   :  { %173 = dma.hbm_to_vmem [thread:$0]  %s3921_s12, 128, %s171_s10, [#allocation11]  }
  0x69   :  { %s3557_s21 = scalar_lea.vmem %s193_s15, 128  ;;  %p3562_p2 = scmp.lt.s32.totalorder %s193_s15, %s193_s15 }
  0x6a   :  { %p3558_p1 = scmp.ne.s32.totalorder %s193_s15, %s3557_s21  ;;  %p3563_p3 = scmp.lt.s32.totalorder %s3557_s21, %s3557_s21 }
  0x6c   :  { %p3564_p4 = por %p3563_p3, %p3562_p2 }
  0x6e   :  { %p3565_p5 = pnand %p3564_p4, %p3558_p1 }
  0x70   :  { %3568 = shalt.err (!%p3565_p5)
}
  0x71   :  { %195 = dma.hbm_to_vmem [thread:$0]  %s3936_s4, 128, %s193_s15, [#allocation14]  }
  0x72   :  { %s3828_s24 = smov [#allocation16]   ;;  %s3829_s22 = smov [#allocation19]  }
  0x73   :  { %s228_s18 = sshll.u32 %s3828_s24, 4  ;;  %s250_s23 = sshll.u32 %s3829_s22, 4  ;;  %s229_s18 = int_to_ptr.vmem [resolvable:$true] %s228_s18  ;;  %s251_s23 = int_to_ptr.vmem [resolvable:$true] %s250_s23 }
  0x74   :  { %s3577_s26 = scalar_lea.vmem %s229_s18, 32  ;;  %p3582_p7 = scmp.lt.s32.totalorder %s229_s18, %s229_s18 }
  0x75   :  { %p3578_p6 = scmp.ne.s32.totalorder %s229_s18, %s3577_s26  ;;  %p3583_p8 = scmp.lt.s32.totalorder %s3577_s26, %s3577_s26 }
  0x77   :  { %p3584_p9 = por %p3583_p8, %p3582_p7 }
  0x79   :  { %p3585_p10 = pnand %p3584_p9, %p3578_p6 }
  0x7b   :  { %3588 = shalt.err (!%p3585_p10)
}
  0x7c   :  { %231 = dma.hbm_to_vmem [thread:$0]  %s3981_s6, 32, %s229_s18, [#allocation17]  }
  0x7d   :  { %s3597_s12 = scalar_lea.vmem %s251_s23, 128  ;;  %p3602_p12 = scmp.lt.s32.totalorder %s251_s23, %s251_s23 }
  0x7e   :  { %p3598_p11 = scmp.ne.s32.totalorder %s251_s23, %s3597_s12  ;;  %p3603_p13 = scmp.lt.s32.totalorder %s3597_s12, %s3597_s12 }
  0x80   :  { %p3604_p0 = por %p3603_p13, %p3602_p12 }
  0x82   :  { %p3605_p1 = pnand %p3604_p0, %p3598_p11 }
  0x84   :  { %3608 = shalt.err (!%p3605_p1)
}
  0x85   :  { %253 = dma.hbm_to_vmem [thread:$0]  %s3991_s27, 128, %s251_s23, [#allocation20]  }
  0x86   :  { %s3830_s4 = smov [#allocation2]   ;;  %s3831_s1 = smov [#allocation6]  }
  0x87   :  { %s108_s28 = sshll.u32 %s3830_s4, 4  ;;  %s128_s2 = sshll.u32 %s3831_s1, 4  ;;  %s109_s28 = int_to_ptr.vmem [resolvable:$true] %s108_s28  ;;  %s129_s2 = int_to_ptr.vmem [resolvable:$true] %s128_s2 }
  0x88   :  { %s3617_s0 = scalar_lea.vmem %s109_s28, 16  ;;  %s3621_s7 = scalar_lea.vmem %s109_s28, 32 }
  0x89   :  { %p3618_p2 = scmp.ne.s32.totalorder %s109_s28, %s3617_s0  ;;  %p3622_p3 = scmp.lt.s32.totalorder %s109_s28, %s109_s28 }
  0x8a   :  { %p3623_p4 = scmp.lt.s32.totalorder %s3621_s7, %s3617_s0 }
  0x8c   :  { %p3624_p5 = por %p3623_p4, %p3622_p3 }
  0x8e   :  { %p3625_p6 = pnand %p3624_p5, %p3618_p2 }
  0x90   :  { %3628 = shalt.err (!%p3625_p6)
}
  0x91   :  { %111 = dma.hbm_to_vmem [thread:$0]  %s3866_s17, 16, %s109_s28, [#allocation3]  }
  0x92   :  { %s3637_s6 = scalar_lea.vmem %s129_s2, 16  ;;  %s3641_s10 = scalar_lea.vmem %s129_s2, 32 }
  0x93   :  { %p3638_p7 = scmp.ne.s32.totalorder %s129_s2, %s3637_s6  ;;  %p3642_p8 = scmp.lt.s32.totalorder %s129_s2, %s129_s2 }
  0x94   :  { %p3643_p9 = scmp.lt.s32.totalorder %s3641_s10, %s3637_s6 }
  0x96   :  { %p3644_p10 = por %p3643_p9, %p3642_p8 }
  0x98   :  { %p3645_p11 = pnand %p3644_p10, %p3638_p7 }
  0x9a   :  { %3648 = shalt.err (!%p3645_p11)
}
  0x9b   :  { %131 = dma.hbm_to_vmem [thread:$0]  %s3876_s25, 16, %s129_s2, [#allocation5]  }
  0x9c   :  { %s3832_s27 = smov [#allocation9]   ;;  %s3833_s15 = smov [#allocation12]  }
  0x9d   :  { %s158_s11 = sshll.u32 %s3832_s27, 4  ;;  %s180_s16 = sshll.u32 %s3833_s15, 4  ;;  %s159_s11 = int_to_ptr.vmem [resolvable:$true] %s158_s11  ;;  %s181_s16 = int_to_ptr.vmem [resolvable:$true] %s180_s16 }
  0x9e   :  { %s3657_s21 = scalar_lea.vmem %s159_s11, 128  ;;  %p3662_p13 = scmp.lt.s32.totalorder %s159_s11, %s159_s11 }
  0x9f   :  { %p3658_p12 = scmp.ne.s32.totalorder %s159_s11, %s3657_s21  ;;  %p3663_p0 = scmp.lt.s32.totalorder %s3657_s21, %s3657_s21 }
  0xa1   :  { %p3664_p1 = por %p3663_p0, %p3662_p13 }
  0xa3   :  { %p3665_p2 = pnand %p3664_p1, %p3658_p12 }
  0xa5   :  { %3668 = shalt.err (!%p3665_p2)
}
  0xa6   :  { %161 = dma.hbm_to_vmem [thread:$0]  %s3911_s30, 128, %s159_s11, [#allocation8]  }
  0xa7   :  { %s3677_s17 = scalar_lea.vmem %s181_s16, 128  ;;  %p3682_p4 = scmp.lt.s32.totalorder %s181_s16, %s181_s16 }
  0xa8   :  { %p3678_p3 = scmp.ne.s32.totalorder %s181_s16, %s3677_s17  ;;  %p3683_p5 = scmp.lt.s32.totalorder %s3677_s17, %s3677_s17 }
  0xaa   :  { %p3684_p6 = por %p3683_p5, %p3682_p4 }
  0xac   :  { %p3685_p7 = pnand %p3684_p6, %p3678_p3 }
  0xae   :  { %3688 = shalt.err (!%p3685_p7)
}
  0xaf   :  { %183 = dma.hbm_to_vmem [thread:$0]  %s3926_s20, 128, %s181_s16, [#allocation11]  }
  0xb0   :  { %s3834_s25 = smov [#allocation15]  }
  0xb1   :  { %s215_s24 = sshll.u32 %s3834_s25, 4  ;;  %s216_s24 = int_to_ptr.vmem [resolvable:$true] %s215_s24 }
  0xb2   :  { %s3697_s18 = scalar_lea.vmem %s216_s24, 8192  ;;  %p3702_p9 = scmp.lt.s32.totalorder %s216_s24, %s216_s24 }
  0xb3   :  { %p3698_p8 = scmp.ne.s32.totalorder %s216_s24, %s3697_s18  ;;  %p3703_p10 = scmp.lt.s32.totalorder %s3697_s18, %s3697_s18 }
  0xb5   :  { %p3704_p11 = por %p3703_p10, %p3702_p9 }
  0xb7   :  { %p3705_p12 = pnand %p3704_p11, %p3698_p8 }
  0xb9   :  { %3708 = shalt.err (!%p3705_p12)
}
  0xba   :  { %s3835_s30 = smov 256   ;;  %s3836_s22 = smov 16  }
  0xbb   :  { %221 = dma.hbm_to_vmem [thread:$0]  %s3976_s29, 8192, %s216_s24, [#allocation14], %s3835_s30, %s3835_s30, %s3836_s22  }
  0xbc   :  { %s3837_s23 = smov [#allocation18]   ;;  %s3838_s20 = smov [#allocation21]  }
  0xbd   :  { %s238_s26 = sshll.u32 %s3837_s23, 4  ;;  %s269_s12 = sshll.u32 %s3838_s20, 4  ;;  %s239_s26 = int_to_ptr.vmem [resolvable:$true] %s238_s26  ;;  %s270_s12 = int_to_ptr.vmem [resolvable:$true] %s269_s12 }
  0xbe   :  { %s3717_s4 = scalar_lea.vmem %s239_s26, 128  ;;  %p3722_p0 = scmp.lt.s32.totalorder %s239_s26, %s239_s26 }
  0xbf   :  { %p3718_p13 = scmp.ne.s32.totalorder %s239_s26, %s3717_s4  ;;  %p3723_p1 = scmp.lt.s32.totalorder %s3717_s4, %s3717_s4 }
  0xc1   :  { %p3724_p2 = por %p3723_p1, %p3722_p0 }
  0xc3   :  { %p3725_p3 = pnand %p3724_p2, %p3718_p13 }
  0xc5   :  { %3728 = shalt.err (!%p3725_p3)
}
  0xc6   :  { %241 = dma.hbm_to_vmem [thread:$0]  %s3986_s8, 128, %s239_s26, [#allocation17]  }
  0xc7   :  { %s3737_s28 = scalar_lea.vmem %s270_s12, 8192  ;;  %p3742_p5 = scmp.lt.s32.totalorder %s270_s12, %s270_s12 }
  0xc8   :  { %p3738_p4 = scmp.ne.s32.totalorder %s270_s12, %s3737_s28  ;;  %p3743_p6 = scmp.lt.s32.totalorder %s3737_s28, %s3737_s28 }
  0xca   :  { %p3744_p7 = por %p3743_p6, %p3742_p5 }
  0xcc   :  { %p3745_p8 = pnand %p3744_p7, %p3738_p4 }
  0xce   :  { %3748 = shalt.err (!%p3745_p8)
}
  0xcf   :  { %275 = dma.hbm_to_vmem [thread:$0]  %s4016_s3, 8192, %s270_s12, [#allocation20], %s3835_s30, %s3835_s30, %s3836_s22  }
  0xd0   :  { %s3839_s29 = smov [#allocation22]  }
  0xd1   :  { %s283_s1 = sshll.u32 %s3839_s29, 4  ;;  %s284_s1 = int_to_ptr.vmem [resolvable:$true] %s283_s1 }
  0xd2   :  { %s3757_s2 = scalar_lea.vmem %s284_s1, 8192  ;;  %p3762_p10 = scmp.lt.s32.totalorder %s284_s1, %s284_s1 }
  0xd3   :  { %p3758_p9 = scmp.ne.s32.totalorder %s284_s1, %s3757_s2  ;;  %p3763_p11 = scmp.lt.s32.totalorder %s3757_s2, %s3757_s2 }
  0xd5   :  { %p3764_p12 = por %p3763_p11, %p3762_p10 }
  0xd7   :  { %p3765_p13 = pnand %p3764_p12, %p3758_p9 }
  0xd9   :  { %3768 = shalt.err (!%p3765_p13)
}
  0xda   :  { %289 = dma.hbm_to_vmem [thread:$0]  %s4026_s13, 8192, %s284_s1, [#allocation23], %s3835_s30, %s3835_s30, %s3836_s22  }
  0xdb   :  { %3769 = dma.done.wait [#allocation3], 16  }
  0xdc   :  { %3770 = vsyncadd [#allocation3], 4294967280 }
  0xdd   :  { %3771 = dma.done.wait [#allocation5], 32  }
  0xde   :  { %3772 = vsyncadd [#allocation5], 4294967264 }
  0xdf   :  { %3773 = dma.done.wait [#allocation8], 256  }
  0xe0   :  { %3774 = vsyncadd [#allocation8], 4294967040 }
  0xe1   :  { %3775 = dma.done.wait [#allocation11], 256  }
  0xe2   :  { %3776 = vsyncadd [#allocation11], 4294967040 }
  0xe3   :  { %3777 = dma.done.wait [#allocation14], 8320  }
  0xe4   :  { %3778 = vsyncadd [#allocation14], 4294958976 }
  0xe5   :  { %3779 = dma.done.wait [#allocation17], 160  }
  0xe6   :  { %3780 = vsyncadd [#allocation17], 4294967136 }
  0xe7   :  { %3781 = dma.done.wait [#allocation20], 8320  }
  0xe8   :  { %3782 = vsyncadd [#allocation20], 4294958976 }
  0xe9   :  { %3783 = dma.done.wait [#allocation23], 8192  }
  0xea   :  { %3784 = vsyncadd [#allocation23], 4294959104  ;;  %s5062_s3 = sld [smem:[#allocation32_spill]]  ;;  %v4966_v0 = vmov 0.0   ;;  %vm3841_vm0 = vmmov 0   ;;  %vm673_vm1 = vcmask 64512   ;;  %v711_v59 = vlaneseq }
  0xeb   :  { %s5063_s8 = sld [smem:[#allocation38_spill]]  ;;  %3363 = vmatprep.subr.mxu1 %v4966_v0  ;;  %3365 = vmatprep.mubr.msk.f32.mxu1 %vm3841_vm0, %v4966_v0  ;;  %vm726_vm2 = vcmask 130048  }
  0xec   :  { %s5064_s13 = sld [smem:[#allocation33_spill]]  ;;  %v4092_v60 = vshrl.u32 %v711_v59, 7 }
  0xed   :  { %s5066_s0 = sld [smem:[#allocation34_spill]] }
  0xee   :  { %5068 = vst [vmem:[#allocation56_spill] sm:$0xff] %v4092_v60  ;;  %v4095_v61 = vsub.s32 0, %v4092_v60  ;;  %s5070_s7 = sld [smem:[#allocation39_spill]] }
  0xef   :  { %s5071_s6 = sld [smem:[#allocation36_spill]] }
  0xf0   :  { %v338_v1 = vld [vmem:[%s5062_s3] sm:$0xff]  ;;  %v339_v2 = vld [vmem:[%s5062_s3 + $0x8] sm:$0xff]  ;;  %5069 = vst [vmem:[#allocation57_spill] sm:$0xff] %v4095_v61  ;;  %s5072_s10 = sld [smem:[#allocation35_spill]] }
  0xf1   :  { %v674_v3 = vsel %vm673_vm1, %v338_v1, 0.0  ;;  %v675_v4 = vsel %vm673_vm1, %v339_v2, 0.0  ;;  %v351_v6 = vld [vmem:[%s5063_s8] sm:$0xff]  ;;  %s5073_s27 = sld [smem:[#allocation37_spill]] }
  0xf2   :  { %v676_v5 = vadd.f32 %v675_v4, %v674_v3  ;;  %3353 = vmatprep.mubr.msk.f32.mxu0 %vm726_vm2, %v351_v6  ;;  %v340_v7 = vld [vmem:[%s5064_s13] sm:$0xff]  ;;  %s5074_s11 = sld [smem:[#allocation40_spill]] }
  0xf3   :  { %v1142_v9 = vsel %vm673_vm1, %v340_v7, 0.0  ;;  %v3488_v62 = vld [vmem:[%s5066_s0] ss:$0 sm:$0xff]  ;;  %v3276_v6 = vld [vmem:[#allocation6] ss:$0 sm:$0xff]  ;;  %s5079_s15 = sld [smem:[#allocation41_spill]] }
  0xf4   :  { %v677_v8 = vrot.slane %v676_v5, 4  ;;  %v1143_v10 = vrot.slane %v1142_v9, 4  ;;  %s5080_s16 = sld [smem:[#allocation44_spill]] }
  0xf5   :  { %s5083_s21 = sld [smem:[#allocation46_spill]] }
  0xf6   :  { %v678_v11 = vadd.f32 %v677_v8, %v676_v5  ;;  %v1144_v12 = vadd.f32 %v1143_v10, %v1142_v9  ;;  %s5084_s17 = sld [smem:[#allocation42_spill]] }
  0xf7   :  { %s5085_s25 = sld [smem:[#allocation50_spill]] }
  0xf8   :  { %v679_v13 = vrot.slane %v678_v11, 2  ;;  %v1145_v14 = vrot.slane %v1144_v12, 2  ;;  %s5086_s24 = sld [smem:[#allocation52_spill]] }
  0xf9   :  { %s5087_s18 = sld [smem:[#allocation43_spill]] }
  0xfa   :  { %v680_v15 = vadd.f32 %v679_v13, %v678_v11  ;;  %v1146_v16 = vadd.f32 %v1145_v14, %v1144_v12  ;;  %v355_v12 = vld [vmem:[#allocation7] sm:$0xff]  ;;  %s5089_s30 = sld [smem:[#allocation47_spill]] }
  0xfb   :  { %s5108_s22 = sld [smem:[#allocation45_spill]] }
  0xfc   :  { %v681_v17 = vrot.slane %v680_v15, 1  ;;  %v1147_v18 = vrot.slane %v1146_v16, 1  ;;  %s5178_s23 = sld [smem:[#allocation48_spill]] }
  0xfd   :  { %s5214_s26 = sld [smem:[#allocation49_spill]] }
  0xfe   :  { %v682_v19 = vadd.f32 %v681_v17, %v680_v15  ;;  %v1148_v20 = vadd.f32 %v1147_v18, %v1146_v16  ;;  %v352_v15 = vld [vmem:[%s5063_s8 + $0x8] sm:$0xff]  ;;  %v353_v16 = vld [vmem:[%s5070_s7] sm:$0xff]  ;;  %s5217_s20 = sld [smem:[#allocation51_spill]] }
  0xff   :  { %v356_v17 = vld [vmem:[#allocation9] sm:$0xff]  ;;  %s5218_s12 = sld [smem:[#allocation53_spill]] }
 0x100   :  { %v4082_v21 = vmul.f32 0.0625, %v682_v19  ;;  %v1150_v22 = vmul.f32 0.125, %v1148_v20  ;;  %v354_v18 = vld [vmem:[%s5070_s7 + $0x8] sm:$0xff]  ;;  %v347_v20 = vld [vmem:[%s5071_s6] sm:$0xff] }
 0x101   :  { %v348_v19 = vld [vmem:[%s5071_s6 + $0x8] sm:$0xff] }
 0x102   :  { %5065 = vst [vmem:[#allocation54_spill] sm:$0xff] %v4082_v21  ;;  %v685_v23 = vsub.f32 %v338_v1, %v4082_v21  ;;  %v686_v24 = vsub.f32 %v339_v2, %v4082_v21  ;;  %v1151_v25 = vsub.f32 %v340_v7, %v1150_v22  ;;  %v3275_v1 = vld [vmem:[#allocation4] ss:$0 sm:$0xff]  ;;  %v3264_v7 = vld [vmem:[#allocation2] ss:$0 sm:$0xff]  ;;  %v346_v22 = vld [vmem:[%s5072_s10 + $0x8] sm:$0xff] }
 0x103   :  { %v4392_v21 = vld [vmem:[%s5089_s30 + $0x198] sm:$0xff] }
 0x104   :  { %v687_v26 = vmul.f32 %v685_v23, %v685_v23  ;;  %v688_v27 = vmul.f32 %v686_v24, %v686_v24  ;;  %v1152_v28 = vmul.f32 %v1151_v25, %v1151_v25  ;;  %5107 = vst [vmem:[#allocation82_spill] sm:$0xff] %v4392_v21 }
 0x106   :  { %v689_v29 = vsel %vm673_vm1, %v687_v26, 0.0  ;;  %v690_v30 = vsel %vm673_vm1, %v688_v27, 0.0  ;;  %v1153_v32 = vsel %vm673_vm1, %v1152_v28, 0.0  ;;  %v349_v28 = vld [vmem:[%s5073_s27] sm:$0xff] }
 0x107   :  { %v691_v31 = vadd.f32 %v690_v30, %v689_v29  ;;  %v1154_v33 = vrot.slane %v1153_v32, 4 }
 0x109   :  { %v692_v34 = vrot.slane %v691_v31, 4  ;;  %v1155_v35 = vadd.f32 %v1154_v33, %v1153_v32 }
 0x10b   :  { %v693_v36 = vadd.f32 %v692_v34, %v691_v31  ;;  %v1156_v37 = vrot.slane %v1155_v35, 2 }
 0x10d   :  { %v694_v38 = vrot.slane %v693_v36, 2  ;;  %v1157_v39 = vadd.f32 %v1156_v37, %v1155_v35 }
 0x10f   :  { %v695_v40 = vadd.f32 %v694_v38, %v693_v36  ;;  %v1158_v41 = vrot.slane %v1157_v39, 1 }
 0x111   :  { %v696_v42 = vrot.slane %v695_v40, 1  ;;  %v1159_v43 = vadd.f32 %v1158_v41, %v1157_v39 }
 0x113   :  { %v697_v44 = vadd.f32 %v696_v42, %v695_v40  ;;  %v1160_v45 = vmul.f32 0.125, %v1159_v43 }
 0x115   :  { %v698_v46 = vmul.f32 0.0625, %v697_v44  ;;  %v1161_v47 = vadd.f32 1e-05, %v1160_v45 }
 0x117   :  { %v699_v48 = vadd.f32 1e-05, %v698_v46  ;;  %3433 = vrsqrt.f32 %v1161_v47  ;;  %vm1164_vm3 = vcmp.eq.f32.partialorder %v1161_v47, inf  ;;  %v1167_v50 = vand.u32 2147483648, %v1161_v47 }
 0x118   :  { %vm1166_vm5 = vcmp.eq.f32.partialorder %v1161_v47, 0.0 }
 0x119   :  { %3435 = vrsqrt.f32 %v699_v48  ;;  %vm702_vm4 = vcmp.eq.f32.partialorder %v699_v48, inf  ;;  %v705_v52 = vand.u32 2147483648, %v699_v48  ;;  %vm704_vm6 = vcmp.eq.f32.partialorder %v699_v48, 0.0 }
 0x124   :  { %v3434_v49 = vpop.eup %3433 }
 0x125   :  { %v1163_v53 = vmul.f32 %v3434_v49, %v1161_v47 }
 0x126   :  { %v3436_v51 = vpop.eup %3435 }
 0x127   :  { %v701_v54 = vmul.f32 %v3436_v51, %v699_v48  ;;  %v1165_v55 = vsel %vm1164_vm3, %v1161_v47, %v1163_v53 }
 0x128   :  { %v1168_v57 = vsel %vm1166_vm5, %v1167_v50, %v1165_v55 }
 0x129   :  { %v703_v56 = vsel %vm702_vm4, %v699_v48, %v701_v54  ;;  %3437 = vrcp.f32 %v1168_v57 }
 0x12a   :  { %v4089_v58 = vsel %vm704_vm6, %v705_v52, %v703_v56 }
 0x12b   :  { %5067 = vst [vmem:[#allocation55_spill] sm:$0xff] %v4089_v58  ;;  %3439 = vrcp.f32 %v4089_v58 }
 0x136   :  { %v3438_v63 = vpop.eup %3437 }
 0x137   :  { %v1170_v3 = vmul.f32 %v3438_v63, %v1151_v25 }
 0x138   :  { %v3440_v2 = vpop.eup %3439 }
 0x139   :  { %v709_v4 = vmul.f32 %v3440_v2, %v686_v24  ;;  %v708_v5 = vmul.f32 %v3440_v2, %v685_v23  ;;  %v1177_v8 = vmul.f32 %v3275_v1, %v1170_v3  ;;  %v345_v23 = vld [vmem:[%s5072_s10] sm:$0xff]  ;;  %v350_v24 = vld [vmem:[%s5073_s27 + $0x8] sm:$0xff] }
 0x13b   :  { %v717_v9 = vmul.f32 %v3488_v62, %v709_v4  ;;  %v716_v10 = vmul.f32 %v3488_v62, %v708_v5  ;;  %v4098_v11 = vadd.f32 %v3276_v6, %v1177_v8  ;;  %v357_v62 = vld [vmem:[%s5074_s11] sm:$0xff]  ;;  %v358_v4 = vld [vmem:[%s5074_s11 + $0x8] sm:$0xff]  ;;  %v359_v6 = vld [vmem:[#allocation10] sm:$0xff] }
 0x13c   :  { %v366_v8 = vld [vmem:[%s5080_s16] sm:$0xff] }
 0x13d   :  { %v725_v13 = vadd.f32 %v3264_v7, %v717_v9  ;;  %v724_v14 = vadd.f32 %v3264_v7, %v716_v10  ;;  %3364 = vmatpush3.msra.mxu1 %v4098_v11  ;;  %v361_v7 = vld [vmem:[%s5079_s15] sm:$0xff]  ;;  %v3842_v9 = vmov 0   ;;  %v367_v10 = vld [vmem:[%s5080_s16 + $0x8] sm:$0xff] }
 0x13e   :  { %3366 = vmatmul.mubr.msk.f32.vlgmr.msra.gmra.mxu1 %vm673_vm1, %v355_v12  ;;  %3368 = vmatprep.subr.mxu1 %v4966_v0  ;;  %v371_v12 = vld [vmem:[%s5083_s21 + $0x8] sm:$0xff] }
 0x13f   :  { %3349 = vmatprep.subr.mxu0 %v725_v13  ;;  %3369 = vmatpush3.msra.mxu1 %v4098_v11 }
 0x140   :  { %3350 = vmatpush3.msra.mxu0 %v725_v13  ;;  %3370 = vmatprep.mubr.msk.f32.mxu1 %vm3841_vm0, %v4966_v0 }
 0x141   :  { %3351 = vmatprep.subr.mxu0 %v724_v14  ;;  %1438 = vmatprep.subr.mxu1 %v346_v22 }
 0x142   :  { %3352 = vmatpush3.msra.mxu0 %v724_v14  ;;  %3371 = vmatmul.mubr.msk.f32.vlgmr.msra.gmra.mxu1 %vm673_vm1, %v356_v17  ;;  %v509_v17 = vld [vmem:[%s5086_s24 + $0x8] sm:$0xff] }
 0x143   :  { %3354 = vmatmul.mubr.msk.f32.vlgmr.msra.gmra.mxu0 %vm726_vm2, %v352_v15  ;;  %3356 = vmatprep.subr.mxu0 %v725_v13  ;;  %v504_v15 = vld [vmem:[%s5085_s25] sm:$0xff] }
 0x144   :  { %3357 = vmatpush3.msra.mxu0 %v725_v13  ;;  %3360 = vmatprep.mubr.msk.f32.mxu0 %vm726_vm2, %v353_v16  ;;  %v508_v16 = vld [vmem:[%s5086_s24] sm:$0xff] }
 0x145   :  { %3358 = vmatprep.subr.mxu0 %v724_v14  ;;  %1472 = vmatprep.mubr.f32.mxu1 %v4966_v0 }
 0x146   :  { %3359 = vmatpush3.msra.mxu0 %v724_v14  ;;  %1439 = vmatpush1.msra.mxu1 %v345_v23 }
 0x147   :  { %3361 = vmatmul.mubr.msk.f32.vlgmr.msra.gmra.mxu0 %vm726_vm2, %v354_v18  ;;  %925 = vmatprep.subr.mxu0 %v348_v19 }
 0x148   :  { %926 = vmatpush1.msra.mxu0 %v347_v20  ;;  %959 = vmatprep.mubr.f32.mxu0 %v4966_v0 }
 0x149   :  { %1008 = vmatprep.subr.mxu0 %v346_v22  ;;  %3431 = vset.pattern.permute.xlu0 %v3842_v9 }
 0x14a   :  { %3432 = vset.pattern.permute.xlu1 %v3842_v9  ;;  %1720 = vperm.xlu0 %3431, %v361_v7   ;;  %v4332_v7 = vld [vmem:[%s5089_s30 + $0x10] sm:$0xff]  ;;  %v4340_v9 = vld [vmem:[%s5089_s30] sm:$0xff] }
 0x14b   :  { %3269 = vmatmul.mubr.msk.f32.vlgmr.msra.gmra.mxu0 %vm673_vm1, %v724_v14  ;;  %1898 = vperm.xlu1 %3432, %v366_v8   ;;  %v505_v14 = vld [vmem:[%s5085_s25 + $0x8] sm:$0xff]  ;;  %5092 = vst [vmem:[#allocation67_spill] sm:$0xff] %v4332_v7  ;;  %5094 = vst [vmem:[#allocation69_spill] sm:$0xff] %v4340_v9 }
 0x14c   :  { %965 = vmatprep.mubr.f32.mxu0 %v4966_v0  ;;  %1009 = vmatpush1.msra.mxu0 %v345_v23  ;;  %v4336_v8 = vld [vmem:[%s5089_s30 + $0x8] sm:$0xff] }
 0x14d   :  { %1091 = vmatprep.subr.mxu0 %v350_v24  ;;  %5093 = vst [vmem:[#allocation68_spill] sm:$0xff] %v4336_v8 }
 0x14e   :  { %1903 = vperm.xlu0 %3431, %v367_v10   ;;  %v4344_v10 = vld [vmem:[%s5089_s30 + $0x1f8] sm:$0xff] }
 0x14f   :  { %3270 = vmatmul.mubr.msk.f32.gmra.mxu0 %vm673_vm1, %v725_v13  ;;  %v363_v13 = vld [vmem:[%s5084_s17] sm:$0xff]  ;;  %5095 = vst [vmem:[#allocation70_spill] sm:$0xff] %v4344_v10 }
 0x150   :  { %1042 = vmatprep.mubr.f32.mxu0 %v4966_v0 }
 0x152   :  { %2032 = vperm.xlu0 %3431, %v371_v12   ;;  %v4352_v12 = vld [vmem:[%s5089_s30 + $0x1e8] sm:$0xff] }
 0x153   :  { %5097 = vst [vmem:[#allocation72_spill] sm:$0xff] %v4352_v12 }
 0x156   :  { %2671 = vperm.xlu0 %3431, %v505_v14   ;;  %v4360_v14 = vld [vmem:[%s5089_s30 + $0x1d8] sm:$0xff] }
 0x157   :  { %5099 = vst [vmem:[#allocation74_spill] sm:$0xff] %v4360_v14 }
 0x15a   :  { %2795 = vperm.xlu0 %3431, %v508_v16   ;;  %v4368_v16 = vld [vmem:[%s5089_s30 + $0x1c8] sm:$0xff] }
 0x15b   :  { %5101 = vst [vmem:[#allocation76_spill] sm:$0xff] %v4368_v16 }
 0x1c5   :  { %v1721_v58 = vpop.permute.xlu0 %1720 }
 0x1c6   :  { %v1899_v60 = vpop.permute.xlu1 %1898 }
 0x1fe   :  { %v1254_v25 = vpop.f32.mrf.mxu1 }
 0x1ff   :  { %3280 = vmatmul.mubr.msk.f32.vlgmr.msra.gmra.mxu1 %vm673_vm1, %v1254_v25 }
 0x200   :  { %v3367_v26 = vpop.f32.mrf.mxu1  ;;  %1625 = vmatprep.mubr.f32.mxu1 %v4966_v0 }
 0x202   :  { %v1327_v30 = vpop.f32.mrf.mxu1 }
 0x203   :  { %v3355_v27 = vpop.f32.mrf.mxu0 }
 0x204   :  { %v3372_v31 = vpop.f32.mrf.mxu1 }
 0x205   :  { %v799_v29 = vpop.f32.mrf.mxu0  ;;  %v365_v31 = vld [vmem:[%s5087_s18 + $0x8] sm:$0xff] }
 0x206   :  { %3271 = vmatmul.mubr.msk.f32.vlgmr.msra.gmra.mxu0 %vm673_vm1, %v799_v29 }
 0x207   :  { %1048 = vmatprep.mubr.f32.mxu0 %v4966_v0  ;;  %1092 = vmatpush1.msra.mxu0 %v349_v28  ;;  %v3362_v32 = vpop.f32.mrf.mxu0 }
 0x208   :  { %1364 = vmatprep.subr.mxu0 %v348_v19 }
 0x209   :  { %v880_v33 = vpop.f32.mrf.mxu0 }
 0x20a   :  { %3272 = vmatmul.mubr.msk.f32.gmra.mxu0 %vm673_vm1, %v3355_v27 }
 0x20b   :  { %1125 = vmatprep.mubr.f32.mxu0 %v4966_v0  ;;  %v961_v34 = vpop.f32.mrf.mxu0 }
 0x20d   :  { %v963_v35 = vpop.f32.mrf.mxu0 }
 0x20e   :  { %3273 = vmatmul.mubr.msk.f32.vlgmr.msra.gmra.mxu0 %vm673_vm1, %v880_v33  ;;  %v4221_v33 = vld [vmem:[%s5089_s30 + $0xf0] sm:$0xff] }
 0x20f   :  { %1131 = vmatprep.mubr.f32.mxu0 %v4966_v0  ;;  %1365 = vmatpush1.msra.mxu0 %v347_v20  ;;  %v967_v36 = vpop.f32.mrf.mxu0 }
 0x210   :  { %1512 = vmatprep.subr.mxu0 %v350_v24 }
 0x211   :  { %v969_v37 = vpop.f32.mrf.mxu0 }
 0x212   :  { %3274 = vmatmul.mubr.msk.f32.gmra.mxu0 %vm673_vm1, %v3362_v32  ;;  %v4218_v32 = vld [vmem:[%s5089_s30 + $0xf8] sm:$0xff] }
 0x213   :  { %1398 = vmatprep.mubr.f32.mxu0 %v4966_v0 }
 0x216   :  { %3279 = vmatmul.mubr.msk.f32.vlgmr.msra.gmra.mxu0 %vm673_vm1, %v4098_v11  ;;  %v370_v11 = vld [vmem:[%s5083_s21] sm:$0xff] }
 0x217   :  { %1513 = vmatpush1.msra.mxu0 %v349_v28  ;;  %1546 = vmatprep.mubr.f32.mxu0 %v4966_v0  ;;  %v360_v28 = vld [vmem:[#allocation12] sm:$0xff] }
 0x218   :  { %2027 = vperm.xlu1 %3432, %v370_v11   ;;  %v4348_v11 = vld [vmem:[%s5089_s30 + $0x1f0] sm:$0xff] }
 0x219   :  { %5096 = vst [vmem:[#allocation71_spill] sm:$0xff] %v4348_v11 }
 0x21a   :  { %3281 = vmatmul.mubr.msk.f32.vlgmr.msra.gmra.mxu0 %vm673_vm1, %v1327_v30  ;;  %v364_v30 = vld [vmem:[%s5087_s18] sm:$0xff] }
 0x21b   :  { %1709 = vmatprep.mubr.f32.mxu0 %v4966_v0 }
 0x21c   :  { %1817 = vperm.xlu1 %3432, %v363_v13   ;;  %v4356_v13 = vld [vmem:[%s5089_s30 + $0x1e0] sm:$0xff] }
 0x21d   :  { %5098 = vst [vmem:[#allocation73_spill] sm:$0xff] %v4356_v13 }
 0x220   :  { %2666 = vperm.xlu1 %3432, %v504_v15   ;;  %v4364_v15 = vld [vmem:[%s5089_s30 + $0x1d0] sm:$0xff] }
 0x221   :  { %5100 = vst [vmem:[#allocation75_spill] sm:$0xff] %v4364_v15 }
 0x224   :  { %2800 = vperm.xlu1 %3432, %v509_v17   ;;  %v4372_v17 = vld [vmem:[%s5089_s30 + $0x1c0] sm:$0xff] }
 0x225   :  { %5102 = vst [vmem:[#allocation77_spill] sm:$0xff] %v4372_v17 }
 0x2bf   :  { %v1474_v45 = vpop.f32.mrf.mxu1 }
 0x2c1   :  { %v1476_v54 = vpop.f32.mrf.mxu1 }
 0x2c6   :  { %v1044_v38 = vpop.f32.mrf.mxu0 }
 0x2c7   :  { %v1045_v51 = vadd.f32 %v1044_v38, %v961_v34  ;;  %v4224_v34 = vld [vmem:[%s5089_s30 + $0xe8] sm:$0xff] }
 0x2c8   :  { %v1046_v39 = vpop.f32.mrf.mxu0  ;;  %v4240_v38 = vld [vmem:[%s5089_s30 + $0xc8] sm:$0xff] }
 0x2c9   :  { %v1047_v49 = vadd.f32 %v1046_v39, %v963_v35  ;;  %v4228_v35 = vld [vmem:[%s5089_s30 + $0xe0] sm:$0xff] }
 0x2ca   :  { %v1050_v40 = vpop.f32.mrf.mxu0  ;;  %v4244_v39 = vld [vmem:[%s5089_s30 + $0xc0] sm:$0xff] }
 0x2cb   :  { %v1051_v47 = vadd.f32 %v1050_v40, %v967_v36  ;;  %v4232_v36 = vld [vmem:[%s5089_s30 + $0xd8] sm:$0xff] }
 0x2cc   :  { %v1052_v41 = vpop.f32.mrf.mxu0  ;;  %v4248_v40 = vld [vmem:[%s5089_s30 + $0xb8] sm:$0xff] }
 0x2cd   :  { %v1053_v46 = vadd.f32 %v1052_v41, %v969_v37  ;;  %v4236_v37 = vld [vmem:[%s5089_s30 + $0xd0] sm:$0xff] }
 0x2ce   :  { %v1127_v42 = vpop.f32.mrf.mxu0  ;;  %v4252_v41 = vld [vmem:[%s5089_s30 + $0xb0] sm:$0xff] }
 0x2cf   :  { %v4147_v56 = vadd.f32 %v1127_v42, %v1045_v51  ;;  %v4256_v42 = vld [vmem:[%s5089_s30 + $0xa8] sm:$0xff] }
 0x2d0   :  { %v1129_v43 = vpop.f32.mrf.mxu0  ;;  %v4288_v51 = vld [vmem:[%s5089_s30 + $0x68] sm:$0xff] }
 0x2d1   :  { %v4144_v55 = vadd.f32 %v1129_v43, %v1047_v49  ;;  %5078 = vst [vmem:[#allocation61_spill] sm:$0xff] %v4147_v56  ;;  %v4260_v43 = vld [vmem:[%s5089_s30 + $0xa0] sm:$0xff]  ;;  %v4284_v49 = vld [vmem:[%s5089_s30 + $0x70] sm:$0xff] }
 0x2d2   :  { %v1133_v44 = vpop.f32.mrf.mxu0 }
 0x2d3   :  { %v4142_v52 = vadd.f32 %v1133_v44, %v1051_v47  ;;  %5077 = vst [vmem:[#allocation60_spill] sm:$0xff] %v4144_v55  ;;  %v4264_v44 = vld [vmem:[%s5089_s30 + $0x98] sm:$0xff]  ;;  %v4276_v47 = vld [vmem:[%s5089_s30 + $0x80] sm:$0xff] }
 0x2d4   :  { %v1135_v48 = vpop.f32.mrf.mxu0 }
 0x2d5   :  { %v4140_v50 = vadd.f32 %v1135_v48, %v1053_v46  ;;  %5076 = vst [vmem:[#allocation59_spill] sm:$0xff] %v4142_v52  ;;  %v4272_v46 = vld [vmem:[%s5089_s30 + $0x88] sm:$0xff]  ;;  %v4280_v48 = vld [vmem:[%s5089_s30 + $0x78] sm:$0xff] }
 0x2d6   :  { %v1400_v53 = vpop.f32.mrf.mxu0 }
 0x2d7   :  { %5075 = vst [vmem:[#allocation58_spill] sm:$0xff] %v4140_v50  ;;  %1589 = vmatprep.subr.mxu1 %v4140_v50  ;;  %v1475_v59 = vadd.f32 %v1474_v45, %v1400_v53  ;;  %v4268_v45 = vld [vmem:[%s5089_s30 + $0x90] sm:$0xff]  ;;  %v4292_v53 = vld [vmem:[%s5089_s30 + $0x60] sm:$0xff] }
 0x2d8   :  { %v1402_v57 = vpop.f32.mrf.mxu0  ;;  %1590 = vmatpush1.msra.mxu1 %v4142_v52 }
 0x2d9   :  { %1591 = vmatprep.subr.mxu1 %v4144_v55  ;;  %v1477_v63 = vadd.f32 %v1476_v54, %v1402_v57  ;;  %v4296_v54 = vld [vmem:[%s5089_s30 + $0x58] sm:$0xff]  ;;  %v4300_v57 = vld [vmem:[%s5089_s30 + $0x50] sm:$0xff] }
 0x2da   :  { %v1548_v1 = vpop.f32.mrf.mxu0  ;;  %1592 = vmatpush1.msra.mxu1 %v4147_v56 }
 0x2db   :  { %3282 = vmatmul.mubr.msk.f32.vlgmr.msra.gmra.mxu1 %vm726_vm2, %v357_v62  ;;  %v4154_v2 = vadd.f32 %v1548_v1, %v1475_v59  ;;  %v4304_v59 = vld [vmem:[%s5089_s30 + $0x48] sm:$0xff]  ;;  %v4308_v62 = vld [vmem:[%s5089_s30 + $0x40] sm:$0xff]  ;;  %v4316_v1 = vld [vmem:[%s5089_s30 + $0x30] sm:$0xff] }
 0x2dc   :  { %v1550_v3 = vpop.f32.mrf.mxu0  ;;  %1631 = vmatprep.mubr.f32.mxu1 %v4966_v0 }
 0x2dd   :  { %5081 = vst [vmem:[#allocation62_spill] sm:$0xff] %v4154_v2  ;;  %v4158_v5 = vadd.f32 %v1550_v3, %v1477_v63  ;;  %v4312_v63 = vld [vmem:[%s5089_s30 + $0x38] sm:$0xff]  ;;  %v4320_v3 = vld [vmem:[%s5089_s30 + $0x28] sm:$0xff] }
 0x2df   :  { %5082 = vst [vmem:[#allocation63_spill] sm:$0xff] %v4158_v5  ;;  %3283 = vmatmul.mubr.msk.f32.gmra.mxu1 %vm726_vm2, %v358_v4  ;;  %1675 = vmatprep.subr.mxu0 %v4158_v5  ;;  %v4324_v4 = vld [vmem:[%s5089_s30 + $0x20] sm:$0xff] }
 0x2e0   :  { %1676 = vmatpush1.msra.mxu0 %v4154_v2  ;;  %1887 = vmatprep.mubr.f32.mxu1 %v4966_v0  ;;  %5090 = vst [vmem:[#allocation65_spill] sm:$0xff] %v4324_v4 }
 0x2e1   :  { %3284 = vmatmul.mubr.msk.f32.vlgmr.msra.gmra.mxu0 %vm673_vm1, %v359_v6  ;;  %v4328_v6 = vld [vmem:[%s5089_s30 + $0x18] sm:$0xff] }
 0x2e2   :  { %1790 = vmatprep.mubr.f32.mxu0 %v4966_v0  ;;  %5091 = vst [vmem:[#allocation66_spill] sm:$0xff] %v4328_v6 }
 0x39b   :  { %v4176_v18 = vpop.f32.mrf.mxu1 }
 0x39c   :  { %v4201_v27 = vsub.f32 %v4147_v56, %v4176_v18 }
 0x39d   :  { %v4178_v19 = vpop.f32.mrf.mxu1 }
 0x39e   :  { %v4196_v26 = vsub.f32 %v4144_v55, %v4178_v19 }
 0x39f   :  { %v4180_v20 = vpop.f32.mrf.mxu1 }
 0x3a0   :  { %v4190_v24 = vsub.f32 %v4142_v52, %v4180_v20 }
 0x3a1   :  { %v4182_v22 = vpop.f32.mrf.mxu1  ;;  %v4192_v25 = vpop.f32.mrf.mxu0 }
 0x3a2   :  { %v4186_v23 = vsub.f32 %v4140_v50, %v4182_v22  ;;  %5088 = vst [vmem:[#allocation64_spill] sm:$0xff] %v4192_v25 }
 0x3a3   :  { %v4205_v29 = vpop.f32.mrf.mxu0 }
 0x3a4   :  { %1754 = vmatprep.subr.mxu0 %v4186_v23 }
 0x3a5   :  { %1755 = vmatpush1.msra.mxu0 %v4190_v24 }
 0x3a6   :  { %1756 = vmatprep.subr.mxu0 %v4196_v26 }
 0x3a7   :  { %1757 = vmatpush1.msra.mxu0 %v4201_v27 }
 0x3a8   :  { %3285 = vmatmul.mubr.msk.f32.vlgmr.msra.gmra.mxu0 %vm726_vm2, %v360_v28  ;;  %1942 = vmatprep.subr.mxu0 %v4205_v29  ;;  %v4376_v28 = vld [vmem:[%s5089_s30 + $0x1b8] sm:$0xff] }
 0x3a9   :  { %1943 = vmatpush1.msra.mxu0 %v4192_v25  ;;  %1976 = vmatprep.mubr.f32.mxu0 %v4966_v0  ;;  %5103 = vst [vmem:[#allocation78_spill] sm:$0xff] %v4376_v28 }
 0x3aa   :  { %2137 = vmatprep.subr.mxu0 %v4218_v32 }
 0x3ac   :  { %3287 = vmatmul.mubr.msk.f32.vlgmr.msra.gmra.mxu0 %vm673_vm1, %v364_v30  ;;  %v4380_v30 = vld [vmem:[%s5089_s30 + $0x1b0] sm:$0xff] }
 0x3ad   :  { %1982 = vmatprep.mubr.f32.mxu0 %v4966_v0  ;;  %2138 = vmatpush1.msra.mxu0 %v4221_v33  ;;  %5104 = vst [vmem:[#allocation79_spill] sm:$0xff] %v4380_v30  ;;  %v4388_v0 = vld [vmem:[%s5089_s30 + $0x1a0] sm:$0xff] }
 0x3ae   :  { %2139 = vmatprep.subr.mxu0 %v4224_v34  ;;  %5106 = vst [vmem:[#allocation81_spill] sm:$0xff] %v4388_v0 }
 0x3af   :  { %2140 = vmatpush1.msra.mxu0 %v4228_v35 }
 0x3b0   :  { %3288 = vmatmul.mubr.msk.f32.gmra.mxu0 %vm673_vm1, %v365_v31  ;;  %2141 = vmatprep.subr.mxu0 %v4232_v36  ;;  %v4384_v31 = vld [vmem:[%s5089_s30 + $0x1a8] sm:$0xff] }
 0x3b1   :  { %2142 = vmatpush1.msra.mxu0 %v4236_v37  ;;  %5105 = vst [vmem:[#allocation80_spill] sm:$0xff] %v4384_v31 }
 0x3b2   :  { %2143 = vmatprep.subr.mxu0 %v4240_v38 }
 0x3b3   :  { %2144 = vmatpush1.msra.mxu0 %v4244_v39 }
 0x3b4   :  { %2145 = vmatprep.subr.mxu0 %v4248_v40 }
 0x3b5   :  { %2146 = vmatpush1.msra.mxu0 %v4252_v41 }
 0x3b6   :  { %2147 = vmatprep.subr.mxu0 %v4256_v42 }
 0x3b7   :  { %2148 = vmatpush1.msra.mxu0 %v4260_v43 }
 0x3b8   :  { %2149 = vmatprep.subr.mxu0 %v4264_v44 }
 0x3b9   :  { %2150 = vmatpush1.msra.mxu0 %v4268_v45 }
 0x3ba   :  { %2151 = vmatprep.subr.mxu0 %v4272_v46 }
 0x3bb   :  { %2152 = vmatpush1.msra.mxu0 %v4276_v47 }
 0x3bc   :  { %2153 = vmatprep.subr.mxu0 %v4280_v48 }
 0x3bd   :  { %2154 = vmatpush1.msra.mxu0 %v4284_v49 }
 0x3be   :  { %2155 = vmatprep.subr.mxu0 %v4288_v51 }
 0x3bf   :  { %2156 = vmatpush1.msra.mxu0 %v4292_v53 }
 0x3c0   :  { %2157 = vmatprep.subr.mxu0 %v4296_v54 }
 0x3c1   :  { %2158 = vmatpush1.msra.mxu0 %v4300_v57 }
 0x3c2   :  { %2159 = vmatprep.subr.mxu0 %v4304_v59 }
 0x3c3   :  { %2160 = vmatpush1.msra.mxu0 %v4308_v62 }
 0x3c4   :  { %2161 = vmatprep.subr.mxu0 %v4312_v63 }
 0x3c5   :  { %2162 = vmatpush1.msra.mxu0 %v4316_v1 }
 0x3c6   :  { %2163 = vmatprep.subr.mxu0 %v4320_v3 }
 0x3c7   :  { %2164 = vmatpush1.msra.mxu0 %v4324_v4 }
 0x3c8   :  { %2165 = vmatprep.subr.mxu0 %v4328_v6 }
 0x3c9   :  { %2166 = vmatpush1.msra.mxu0 %v4332_v7 }
 0x3ca   :  { %2167 = vmatprep.subr.mxu0 %v4336_v8 }
 0x3cb   :  { %2168 = vmatpush1.msra.mxu0 %v4340_v9 }
 0x3cc   :  { %2169 = vmatprep.subr.mxu0 %v4344_v10 }
 0x3cd   :  { %2170 = vmatpush2.msra.mxu0 %v4348_v11 }
 0x3ce   :  { %2171 = vmatprep.subr.mxu0 %v4352_v12 }
 0x3cf   :  { %2172 = vmatpush2.msra.mxu0 %v4356_v13 }
 0x3d0   :  { %2173 = vmatprep.subr.mxu0 %v4360_v14  ;;  %v1904_v14 = vpop.permute.xlu0 %1903 }
 0x3d1   :  { %2174 = vmatpush2.msra.mxu0 %v4364_v15 }
 0x3d2   :  { %2175 = vmatprep.subr.mxu0 %v4368_v16 }
 0x3d3   :  { %2176 = vmatpush2.msra.mxu0 %v4372_v17 }
 0x3d4   :  { %2177 = vmatprep.subr.mxu0 %v4376_v28 }
 0x3d5   :  { %2178 = vmatpush2.msra.mxu0 %v4380_v30 }
 0x3d6   :  { %2179 = vmatprep.subr.mxu0 %v4384_v31 }
 0x3d7   :  { %2180 = vmatpush2.msra.mxu0 %v4388_v0 }
 0x3d8   :  { %2181 = vmatprep.subr.mxu0 %v4392_v21 }
 0x468   :  { %v1792_v56 = vpop.f32.mrf.mxu0 }
 0x469   :  { %v1793_v50 = vadd.f32 %v1792_v56, %v1721_v58 }
 0x46a   :  { %v1794_v55 = vpop.f32.mrf.mxu0 }
 0x46b   :  { %v1797_v52 = vmul.f32 %v1793_v50, %v1793_v50  ;;  %v1795_v61 = vadd.f32 %v1794_v55, %v1721_v58 }
 0x46c   :  { %v1978_v2 = vpop.f32.mrf.mxu0 }
 0x46d   :  { %v1799_v25 = vmul.f32 %v1797_v52, %v1793_v50  ;;  %v1798_v28 = vmul.f32 %v1795_v61, %v1795_v61  ;;  %v4397_v17 = vadd.f32 %v1978_v2, %v1899_v60 }
 0x46e   :  { %v1980_v30 = vpop.f32.mrf.mxu0 }
 0x46f   :  { %v1801_v16 = vmul.f32 0.044715, %v1799_v25  ;;  %v1800_v15 = vmul.f32 %v1798_v28, %v1795_v61  ;;  %v1989_v0 = vmul.f32 %v4397_v17, %v4397_v17  ;;  %v4401_v31 = vadd.f32 %v1980_v30, %v1899_v60 }
 0x470   :  { %v1984_v21 = vpop.f32.mrf.mxu0 }
 0x471   :  { %v1803_v56 = vadd.f32 %v1801_v16, %v1793_v50  ;;  %v1802_v13 = vmul.f32 0.044715, %v1800_v15  ;;  %v1993_v58 = vmul.f32 %v1989_v0, %v4397_v17  ;;  %v1990_v52 = vmul.f32 %v4401_v31, %v4401_v31 }
 0x472   :  { %v1985_v55 = vadd.f32 %v1984_v21, %v1904_v14  ;;  %v1986_v2 = vpop.f32.mrf.mxu0 }
 0x473   :  { %v1805_v12 = vmul.f32 0.7978846, %v1803_v56  ;;  %v1804_v11 = vadd.f32 %v1802_v13, %v1795_v61  ;;  %v1997_v25 = vmul.f32 0.044715, %v1993_v58  ;;  %v1994_v28 = vmul.f32 %v1990_v52, %v4401_v31 }
 0x474   :  { %v1991_v10 = vmul.f32 %v1985_v55, %v1985_v55  ;;  %v1987_v9 = vadd.f32 %v1986_v2, %v1904_v14 }
 0x475   :  { %3441 = vtanh.f32 %v1805_v12  ;;  %v1806_v60 = vmul.f32 0.7978846, %v1804_v11  ;;  %v2001_v30 = vadd.f32 %v1997_v25, %v4397_v17  ;;  %v1998_v16 = vmul.f32 0.044715, %v1994_v28 }
 0x476   :  { %v1995_v15 = vmul.f32 %v1991_v10, %v1985_v55  ;;  %v1992_v8 = vmul.f32 %v1987_v9, %v1987_v9 }
 0x477   :  { %3443 = vtanh.f32 %v1806_v60  ;;  %v2002_v0 = vadd.f32 %v1998_v16, %v4401_v31  ;;  %v2005_v6 = vmul.f32 0.7978846, %v2001_v30 }
 0x478   :  { %v1999_v7 = vmul.f32 0.044715, %v1995_v15  ;;  %v1996_v21 = vmul.f32 %v1992_v8, %v1987_v9  ;;  %v362_v15 = vld [vmem:[#allocation13] sm:$0xff] }
 0x479   :  { %v2006_v56 = vmul.f32 0.7978846, %v2002_v0 }
 0x47a   :  { %v2003_v13 = vadd.f32 %v1999_v7, %v1985_v55  ;;  %v2000_v58 = vmul.f32 0.044715, %v1996_v21 }
 0x47b   :  { %3445 = vtanh.f32 %v2006_v56 }
 0x47c   :  { %v2007_v52 = vmul.f32 0.7978846, %v2003_v13  ;;  %v2004_v4 = vadd.f32 %v2000_v58, %v1987_v9  ;;  %3447 = vtanh.f32 %v2005_v6  ;;  %v5109_v13 = vmov 0.0  }
 0x47e   :  { %3449 = vtanh.f32 %v2007_v52  ;;  %v2008_v11 = vmul.f32 0.7978846, %v2004_v4 }
 0x480   :  { %3451 = vtanh.f32 %v2008_v11 }
 0x482   :  { %v3442_v12 = vpop.eup %3441 }
 0x483   :  { %v1809_v14 = vadd.f32 1.0, %v3442_v12 }
 0x484   :  { %v3444_v10 = vpop.eup %3443 }
 0x485   :  { %v1810_v2 = vadd.f32 1.0, %v3444_v10  ;;  %v1811_v25 = vmul.f32 0.5, %v1809_v14 }
 0x487   :  { %v1812_v28 = vmul.f32 0.5, %v1810_v2  ;;  %v1813_v30 = vmul.f32 %v1811_v25, %v1793_v50  ;;  %v368_v2 = vld [vmem:[%s5108_s22] sm:$0xff]  ;;  %v4431_v25 = vld [vmem:[%s5089_s30 + $0x178] sm:$0xff] }
 0x488   :  { %v3446_v60 = vpop.eup %3445 }
 0x489   :  { %v1814_v16 = vmul.f32 %v1812_v28, %v1795_v61  ;;  %v3448_v8 = vpop.eup %3447  ;;  %v2014_v21 = vadd.f32 1.0, %v3446_v60  ;;  %v4435_v28 = vld [vmem:[%s5089_s30 + $0x170] sm:$0xff]  ;;  %v4439_v60 = vld [vmem:[%s5089_s30 + $0x168] sm:$0xff] }
 0x48a   :  { %v2013_v4 = vadd.f32 1.0, %v3448_v8  ;;  %v4445_v8 = vld [vmem:[%s5089_s30 + $0x158] sm:$0xff] }
 0x48b   :  { %v3450_v7 = vpop.eup %3449  ;;  %1853 = vmatprep.subr.mxu1 %v1814_v16  ;;  %v2018_v61 = vmul.f32 0.5, %v2014_v21  ;;  %v4442_v16 = vld [vmem:[%s5089_s30 + $0x160] sm:$0xff]  ;;  %v4467_v21 = vld [vmem:[%s5089_s30 + $0x130] sm:$0xff] }
 0x48c   :  { %1854 = vmatpush1.msra.mxu1 %v1813_v30  ;;  %v2015_v0 = vadd.f32 1.0, %v3450_v7  ;;  %v2017_v50 = vmul.f32 0.5, %v2013_v4  ;;  %v4449_v30 = vld [vmem:[%s5089_s30 + $0x150] sm:$0xff]  ;;  %v4459_v7 = vld [vmem:[%s5089_s30 + $0x140] sm:$0xff]  ;;  %5112 = vst [vmem:[#allocation85_spill] sm:$0xff] %v4467_v21 }
 0x48d   :  { %v3452_v6 = vpop.eup %3451  ;;  %3286 = vmatmul.mubr.msk.f32.vlgmr.msra.gmra.mxu1 %vm673_vm1, %v362_v15  ;;  %v2022_v14 = vmul.f32 %v2018_v61, %v4401_v31  ;;  %v4419_v31 = vld [vmem:[%s5089_s30 + $0x190] sm:$0xff]  ;;  %v4453_v15 = vld [vmem:[%s5089_s30 + $0x148] sm:$0xff]  ;;  %5110 = vst [vmem:[#allocation83_spill] sm:$0xff] %v4459_v7  ;;  %v4475_v4 = vld [vmem:[%s5089_s30 + $0x120] sm:$0xff] }
 0x48e   :  { %v2016_v56 = vadd.f32 1.0, %v3452_v6  ;;  %2105 = vmatprep.mubr.f32.mxu1 %v5109_v13  ;;  %v2019_v58 = vmul.f32 0.5, %v2015_v0  ;;  %v2021_v10 = vmul.f32 %v2017_v50, %v4397_v17  ;;  %2182 = vmatpush2.msra.mxu0 %v4419_v31  ;;  %v4423_v17 = vld [vmem:[%s5089_s30 + $0x188] sm:$0xff]  ;;  %v4463_v0 = vld [vmem:[%s5089_s30 + $0x138] sm:$0xff]  ;;  %5114 = vst [vmem:[#allocation87_spill] sm:$0xff] %v4475_v4  ;;  %v4491_v61 = vld [vmem:[%s5089_s30 + $0x100] sm:$0xff] }
 0x48f   :  { %2183 = vmatprep.subr.mxu0 %v4423_v17  ;;  %5111 = vst [vmem:[#allocation84_spill] sm:$0xff] %v4463_v0  ;;  %v4471_v6 = vld [vmem:[%s5089_s30 + $0x128] sm:$0xff]  ;;  %5118 = vst [vmem:[#allocation91_spill] sm:$0xff] %v4491_v61 }
 0x490   :  { %v2020_v52 = vmul.f32 0.5, %v2016_v56  ;;  %v2023_v12 = vmul.f32 %v2019_v58, %v1985_v55  ;;  %v4427_v55 = vld [vmem:[%s5089_s30 + $0x180] sm:$0xff]  ;;  %5113 = vst [vmem:[#allocation86_spill] sm:$0xff] %v4471_v6  ;;  %v4479_v56 = vld [vmem:[%s5089_s30 + $0x118] sm:$0xff]  ;;  %v4483_v58 = vld [vmem:[%s5089_s30 + $0x110] sm:$0xff] }
 0x491   :  { %2184 = vmatpush2.msra.mxu0 %v4427_v55  ;;  %5115 = vst [vmem:[#allocation88_spill] sm:$0xff] %v4479_v56  ;;  %5116 = vst [vmem:[#allocation89_spill] sm:$0xff] %v4483_v58  ;;  %v4495_v50 = vld [vmem:[#allocation15 + $0xf8] sm:$0xff] }
 0x492   :  { %v2024_v11 = vmul.f32 %v2020_v52, %v1987_v9  ;;  %v369_v9 = vld [vmem:[%s5108_s22 + $0x8] sm:$0xff]  ;;  %2185 = vmatprep.subr.mxu0 %v4431_v25  ;;  %5119 = vst [vmem:[#allocation92_spill] sm:$0xff] %v4495_v50 }
 0x493   :  { %2186 = vmatpush2.msra.mxu0 %v4435_v28  ;;  %v4487_v52 = vld [vmem:[%s5089_s30 + $0x108] sm:$0xff] }
 0x494   :  { %2069 = vmatprep.subr.mxu1 %v2024_v11  ;;  %2187 = vmatprep.subr.mxu0 %v4439_v60  ;;  %5117 = vst [vmem:[#allocation90_spill] sm:$0xff] %v4487_v52  ;;  %v4497_v11 = vld [vmem:[#allocation15 + $0xf0] sm:$0xff] }
 0x495   :  { %2070 = vmatpush1.msra.mxu1 %v2023_v12  ;;  %2188 = vmatpush2.msra.mxu0 %v4442_v16  ;;  %5120 = vst [vmem:[#allocation93_spill] sm:$0xff] %v4497_v11  ;;  %v4499_v12 = vld [vmem:[#allocation15 + $0xe8] sm:$0xff] }
 0x496   :  { %2071 = vmatprep.subr.mxu1 %v2022_v14  ;;  %2189 = vmatprep.subr.mxu0 %v4445_v8  ;;  %5121 = vst [vmem:[#allocation94_spill] sm:$0xff] %v4499_v12  ;;  %v4502_v14 = vld [vmem:[#allocation15 + $0xe0] sm:$0xff] }
 0x497   :  { %2072 = vmatpush1.msra.mxu1 %v2021_v10  ;;  %2190 = vmatpush2.msra.mxu0 %v4449_v30  ;;  %5122 = vst [vmem:[#allocation95_spill] sm:$0xff] %v4502_v14  ;;  %v4505_v10 = vld [vmem:[#allocation15 + $0xd8] sm:$0xff] }
 0x498   :  { %3289 = vmatmul.mubr.msk.f32.vlgmr.msra.gmra.mxu1 %vm726_vm2, %v368_v2  ;;  %2191 = vmatprep.subr.mxu0 %v4453_v15  ;;  %5123 = vst [vmem:[#allocation96_spill] sm:$0xff] %v4505_v10  ;;  %v4508_v2 = vld [vmem:[#allocation15 + $0xd0] sm:$0xff] }
 0x499   :  { %2111 = vmatprep.mubr.f32.mxu1 %v5109_v13  ;;  %2192 = vmatpush2.msra.mxu0 %v4459_v7  ;;  %5124 = vst [vmem:[#allocation97_spill] sm:$0xff] %v4508_v2 }
 0x49a   :  { %2193 = vmatprep.subr.mxu0 %v4463_v0  ;;  %2250 = vmatprep.subr.mxu1 %v4495_v50  ;;  %v4517_v50 = vld [vmem:[#allocation15 + $0xb8] sm:$0xff] }
 0x49b   :  { %2194 = vmatpush2.msra.mxu0 %v4467_v21  ;;  %2251 = vmatpush1.msra.mxu1 %v4497_v11  ;;  %5127 = vst [vmem:[#allocation100_spill] sm:$0xff] %v4517_v50  ;;  %v4520_v11 = vld [vmem:[#allocation15 + $0xb0] sm:$0xff]  ;;  %v1717_v21 = vsub.f32 %v4158_v5, %v4205_v29 }
 0x49c   :  { %3290 = vmatmul.mubr.msk.f32.gmra.mxu1 %vm726_vm2, %v369_v9  ;;  %2195 = vmatprep.subr.mxu0 %v4471_v6  ;;  %v4514_v9 = vld [vmem:[#allocation15 + $0xc0] sm:$0xff]  ;;  %5128 = vst [vmem:[#allocation101_spill] sm:$0xff] %v4520_v11 }
 0x49d   :  { %2196 = vmatpush2.msra.mxu0 %v4475_v4  ;;  %2252 = vmatprep.subr.mxu1 %v4499_v12  ;;  %5126 = vst [vmem:[#allocation99_spill] sm:$0xff] %v4514_v9  ;;  %v4523_v12 = vld [vmem:[#allocation15 + $0xa8] sm:$0xff] }
 0x49e   :  { %2197 = vmatprep.subr.mxu0 %v4479_v56  ;;  %2253 = vmatpush1.msra.mxu1 %v4502_v14  ;;  %5129 = vst [vmem:[#allocation102_spill] sm:$0xff] %v4523_v12  ;;  %v4526_v14 = vld [vmem:[#allocation15 + $0xa0] sm:$0xff] }
 0x49f   :  { %2198 = vmatpush2.msra.mxu0 %v4483_v58  ;;  %2254 = vmatprep.subr.mxu1 %v4505_v10  ;;  %5130 = vst [vmem:[#allocation103_spill] sm:$0xff] %v4526_v14  ;;  %v4529_v10 = vld [vmem:[#allocation15 + $0x98] sm:$0xff] }
 0x4a0   :  { %2199 = vmatprep.subr.mxu0 %v4487_v52  ;;  %2255 = vmatpush1.msra.mxu1 %v4508_v2  ;;  %5131 = vst [vmem:[#allocation104_spill] sm:$0xff] %v4529_v10  ;;  %v4532_v2 = vld [vmem:[#allocation15 + $0x90] sm:$0xff] }
 0x4a1   :  { %2200 = vmatpush2.msra.mxu0 %v4491_v61  ;;  %5132 = vst [vmem:[#allocation105_spill] sm:$0xff] %v4532_v2 }
 0x4a2   :  { %2348 = vmatprep.subr.mxu0 %v4218_v32  ;;  %v4511_v32 = vld [vmem:[#allocation15 + $0xc8] sm:$0xff] }
 0x4a3   :  { %5125 = vst [vmem:[#allocation98_spill] sm:$0xff] %v4511_v32  ;;  %2256 = vmatprep.subr.mxu1 %v4511_v32  ;;  %v4535_v32 = vld [vmem:[#allocation15 + $0x88] sm:$0xff] }
 0x4a4   :  { %2257 = vmatpush1.msra.mxu1 %v4514_v9  ;;  %5133 = vst [vmem:[#allocation106_spill] sm:$0xff] %v4535_v32  ;;  %v4538_v9 = vld [vmem:[#allocation15 + $0x80] sm:$0xff] }
 0x4a5   :  { %2258 = vmatprep.subr.mxu1 %v4517_v50  ;;  %5134 = vst [vmem:[#allocation107_spill] sm:$0xff] %v4538_v9  ;;  %v4541_v50 = vld [vmem:[#allocation15 + $0x78] sm:$0xff] }
 0x4a6   :  { %2259 = vmatpush1.msra.mxu1 %v4520_v11  ;;  %5135 = vst [vmem:[#allocation108_spill] sm:$0xff] %v4541_v50  ;;  %v4544_v11 = vld [vmem:[#allocation15 + $0x70] sm:$0xff] }
 0x4a7   :  { %2260 = vmatprep.subr.mxu1 %v4523_v12  ;;  %5136 = vst [vmem:[#allocation109_spill] sm:$0xff] %v4544_v11  ;;  %v4547_v12 = vld [vmem:[#allocation15 + $0x68] sm:$0xff] }
 0x4a8   :  { %2261 = vmatpush1.msra.mxu1 %v4526_v14  ;;  %5137 = vst [vmem:[#allocation110_spill] sm:$0xff] %v4547_v12  ;;  %v4550_v14 = vld [vmem:[#allocation15 + $0x60] sm:$0xff] }
 0x4a9   :  { %2262 = vmatprep.subr.mxu1 %v4529_v10  ;;  %5138 = vst [vmem:[#allocation111_spill] sm:$0xff] %v4550_v14  ;;  %v4553_v10 = vld [vmem:[#allocation15 + $0x58] sm:$0xff] }
 0x4aa   :  { %2263 = vmatpush1.msra.mxu1 %v4532_v2  ;;  %5139 = vst [vmem:[#allocation112_spill] sm:$0xff] %v4553_v10  ;;  %v4556_v2 = vld [vmem:[#allocation15 + $0x50] sm:$0xff] }
 0x4ab   :  { %2264 = vmatprep.subr.mxu1 %v4535_v32  ;;  %5140 = vst [vmem:[#allocation113_spill] sm:$0xff] %v4556_v2  ;;  %v4559_v32 = vld [vmem:[#allocation15 + $0x48] sm:$0xff] }
 0x4ac   :  { %2265 = vmatpush1.msra.mxu1 %v4538_v9  ;;  %5141 = vst [vmem:[#allocation114_spill] sm:$0xff] %v4559_v32  ;;  %v4562_v9 = vld [vmem:[#allocation15 + $0x40] sm:$0xff] }
 0x4ad   :  { %2266 = vmatprep.subr.mxu1 %v4541_v50  ;;  %5142 = vst [vmem:[#allocation115_spill] sm:$0xff] %v4562_v9  ;;  %v4565_v50 = vld [vmem:[#allocation15 + $0x38] sm:$0xff] }
 0x4ae   :  { %2267 = vmatpush1.msra.mxu1 %v4544_v11  ;;  %5143 = vst [vmem:[#allocation116_spill] sm:$0xff] %v4565_v50  ;;  %v4568_v11 = vld [vmem:[#allocation15 + $0x30] sm:$0xff] }
 0x4af   :  { %2268 = vmatprep.subr.mxu1 %v4547_v12  ;;  %5144 = vst [vmem:[#allocation117_spill] sm:$0xff] %v4568_v11  ;;  %v4571_v12 = vld [vmem:[#allocation15 + $0x28] sm:$0xff] }
 0x4b0   :  { %2269 = vmatpush1.msra.mxu1 %v4550_v14  ;;  %5145 = vst [vmem:[#allocation118_spill] sm:$0xff] %v4571_v12  ;;  %v4574_v14 = vld [vmem:[#allocation15 + $0x20] sm:$0xff] }
 0x4b1   :  { %2270 = vmatprep.subr.mxu1 %v4553_v10  ;;  %5146 = vst [vmem:[#allocation119_spill] sm:$0xff] %v4574_v14  ;;  %v4577_v10 = vld [vmem:[#allocation15 + $0x18] sm:$0xff] }
 0x4b2   :  { %2271 = vmatpush1.msra.mxu1 %v4556_v2  ;;  %5147 = vst [vmem:[#allocation120_spill] sm:$0xff] %v4577_v10  ;;  %v2028_v2 = vpop.permute.xlu1 %2027 }
 0x4b3   :  { %2272 = vmatprep.subr.mxu1 %v4559_v32 }
 0x4b4   :  { %2273 = vmatpush1.msra.mxu1 %v4562_v9 }
 0x4b5   :  { %2274 = vmatprep.subr.mxu1 %v4565_v50  ;;  %v2033_v50 = vpop.permute.xlu0 %2032 }
 0x4b6   :  { %2275 = vmatpush1.msra.mxu1 %v4568_v11  ;;  %v4584_v56 = vpop.permute.xlu1 %1817 }
 0x4b7   :  { %2276 = vmatprep.subr.mxu1 %v4571_v12 }
 0x4b8   :  { %2277 = vmatpush1.msra.mxu1 %v4574_v14 }
 0x4b9   :  { %2278 = vmatprep.subr.mxu1 %v4577_v10 }
 0x54d   :  { %v4582_v32 = vpop.f32.mrf.mxu1 }
 0x54f   :  { %v1891_v9 = vpop.f32.mrf.mxu1 }
 0x550   :  { %v1892_v12 = vadd.f32 %v1891_v9, %v4584_v56  ;;  %v4730_v9 = vld [vmem:[#allocation15 + $0x168] sm:$0xff] }
 0x558   :  { %v2107_v13 = vpop.f32.mrf.mxu1 }
 0x559   :  { %v2108_v61 = vadd.f32 %v2107_v13, %v2028_v2 }
 0x55a   :  { %v2109_v52 = vpop.f32.mrf.mxu1 }
 0x55b   :  { %v2110_v58 = vadd.f32 %v2109_v52, %v2028_v2  ;;  %v2118_v11 = vadd.f32 %v2108_v61, %v4176_v18  ;;  %v1895_v2 = vadd.f32 %v1892_v12, %v1717_v21  ;;  %v4697_v21 = vld [vmem:[#allocation15 + $0x1c0] sm:$0xff]  ;;  %v4718_v12 = vld [vmem:[#allocation15 + $0x188] sm:$0xff] }
 0x55c   :  { %v2113_v4 = vpop.f32.mrf.mxu1  ;;  %v4709_v61 = vld [vmem:[#allocation15 + $0x1a0] sm:$0xff] }
 0x55d   :  { %v2119_v14 = vadd.f32 %v2110_v58, %v4178_v19  ;;  %v2114_v6 = vadd.f32 %v2113_v4, %v2033_v50  ;;  %v2122_v7 = vadd.f32 %v2118_v11, %v4201_v27  ;;  %v5152_v27 = vld [vmem:[#allocation69_spill] sm:$0xff] }
 0x55e   :  { %v2115_v10 = vpop.f32.mrf.mxu1  ;;  %v4706_v58 = vld [vmem:[#allocation15 + $0x1a8] sm:$0xff]  ;;  %v4715_v11 = vld [vmem:[#allocation15 + $0x190] sm:$0xff] }
 0x55f   :  { %v2116_v0 = vadd.f32 %v2115_v10, %v2033_v50  ;;  %v2123_v13 = vadd.f32 %v2119_v14, %v4196_v26  ;;  %v2120_v52 = vadd.f32 %v2114_v6, %v4180_v20  ;;  %v2347_v26 = vadd.f32 %v1895_v2, %v4205_v29  ;;  %v5148_v20 = vld [vmem:[#allocation65_spill] sm:$0xff]  ;;  %v5153_v29 = vld [vmem:[#allocation70_spill] sm:$0xff]  ;;  %v4721_v14 = vld [vmem:[#allocation15 + $0x180] sm:$0xff] }
 0x560   :  { %v4700_v6 = vld [vmem:[#allocation15 + $0x1b8] sm:$0xff]  ;;  %v4739_v2 = vld [vmem:[#allocation15 + $0x150] sm:$0xff] }
 0x561   :  { %v2121_v18 = vadd.f32 %v2116_v0, %v4182_v22  ;;  %2201 = vmatprep.mubr.f32.mxu0 %v2123_v13  ;;  %v2124_v4 = vadd.f32 %v2120_v52, %v4190_v24  ;;  %v5149_v22 = vld [vmem:[#allocation66_spill] sm:$0xff]  ;;  %v5151_v24 = vld [vmem:[#allocation68_spill] sm:$0xff] }
 0x562   :  { %2202 = vmatmul.mubr.f32.vlgmr.msra.gmra.mxu0 %v2122_v7  ;;  %v4691_v7 = vld [vmem:[#allocation15 + $0x1d0] sm:$0xff]  ;;  %v4694_v0 = vld [vmem:[#allocation15 + $0x1c8] sm:$0xff]  ;;  %v4712_v50 = vld [vmem:[#allocation15 + $0x198] sm:$0xff] }
 0x563   :  { %2349 = vmatpush1.msra.mxu0 %v4221_v33  ;;  %v2125_v19 = vadd.f32 %v2121_v18, %v4186_v23  ;;  %v5150_v23 = vld [vmem:[#allocation67_spill] sm:$0xff]  ;;  %v4742_v18 = vld [vmem:[#allocation15 + $0x148] sm:$0xff] }
 0x564   :  { %2350 = vmatprep.subr.mxu0 %v4224_v34  ;;  %v5154_v33 = vld [vmem:[#allocation71_spill] sm:$0xff]  ;;  %v5155_v34 = vld [vmem:[#allocation72_spill] sm:$0xff] }
 0x565   :  { %2351 = vmatpush1.msra.mxu0 %v4228_v35  ;;  %2207 = vmatprep.mubr.f32.mxu0 %v2125_v19  ;;  %v5156_v35 = vld [vmem:[#allocation73_spill] sm:$0xff]  ;;  %v4724_v10 = vld [vmem:[#allocation15 + $0x178] sm:$0xff]  ;;  %v4733_v13 = vld [vmem:[#allocation15 + $0x160] sm:$0xff] }
 0x566   :  { %2352 = vmatprep.subr.mxu0 %v4232_v36  ;;  %2208 = vmatmul.mubr.f32.gmra.mxu0 %v2124_v4  ;;  %v5157_v36 = vld [vmem:[#allocation74_spill] sm:$0xff]  ;;  %v4745_v19 = vld [vmem:[#allocation15 + $0x140] sm:$0xff] }
 0x567   :  { %2353 = vmatpush1.msra.mxu0 %v4236_v37  ;;  %2412 = vmatprep.mubr.f32.mxu0 %v2347_v26  ;;  %v5158_v37 = vld [vmem:[#allocation75_spill] sm:$0xff]  ;;  %v4751_v26 = vld [vmem:[#allocation15 + $0x130] sm:$0xff] }
 0x568   :  { %2354 = vmatprep.subr.mxu0 %v4240_v38  ;;  %v5159_v38 = vld [vmem:[#allocation76_spill] sm:$0xff]  ;;  %v4736_v52 = vld [vmem:[#allocation15 + $0x158] sm:$0xff] }
 0x569   :  { %2355 = vmatpush1.msra.mxu0 %v4244_v39  ;;  %v5160_v39 = vld [vmem:[#allocation77_spill] sm:$0xff]  ;;  %v4748_v4 = vld [vmem:[#allocation15 + $0x138] sm:$0xff] }
 0x56a   :  { %2356 = vmatprep.subr.mxu0 %v4248_v40  ;;  %v5161_v40 = vld [vmem:[#allocation78_spill] sm:$0xff] }
 0x56b   :  { %2357 = vmatpush1.msra.mxu0 %v4252_v41  ;;  %v5162_v41 = vld [vmem:[#allocation79_spill] sm:$0xff] }
 0x56c   :  { %2358 = vmatprep.subr.mxu0 %v4256_v42  ;;  %v5163_v42 = vld [vmem:[#allocation80_spill] sm:$0xff] }
 0x56d   :  { %2359 = vmatpush1.msra.mxu0 %v4260_v43  ;;  %v5164_v43 = vld [vmem:[#allocation81_spill] sm:$0xff] }
 0x56e   :  { %2360 = vmatprep.subr.mxu0 %v4264_v44  ;;  %v5165_v44 = vld [vmem:[#allocation82_spill] sm:$0xff] }
 0x56f   :  { %2361 = vmatpush1.msra.mxu0 %v4268_v45  ;;  %v1890_v45 = vadd.f32 %v4582_v32, %v4584_v56  ;;  %v4703_v56 = vld [vmem:[#allocation15 + $0x1b0] sm:$0xff] }
 0x570   :  { %2362 = vmatprep.subr.mxu0 %v4272_v46  ;;  %v5166_v46 = vld [vmem:[#allocation83_spill] sm:$0xff]  ;;  %v4727_v32 = vld [vmem:[#allocation15 + $0x170] sm:$0xff] }
 0x571   :  { %2363 = vmatpush1.msra.mxu0 %v4276_v47  ;;  %v5167_v47 = vld [vmem:[#allocation64_spill] sm:$0xff] }
 0x572   :  { %2364 = vmatprep.subr.mxu0 %v4280_v48  ;;  %v5168_v48 = vld [vmem:[#allocation62_spill] sm:$0xff] }
 0x573   :  { %2365 = vmatpush1.msra.mxu0 %v4284_v49  ;;  %v1716_v49 = vsub.f32 %v5168_v48, %v5167_v47 }
 0x574   :  { %2366 = vmatprep.subr.mxu0 %v4288_v51  ;;  %v5169_v51 = vld [vmem:[#allocation84_spill] sm:$0xff] }
 0x575   :  { %2367 = vmatpush1.msra.mxu0 %v4292_v53  ;;  %v5170_v53 = vld [vmem:[#allocation85_spill] sm:$0xff] }
 0x576   :  { %2368 = vmatprep.subr.mxu0 %v4296_v54  ;;  %v1894_v54 = vadd.f32 %v1890_v45, %v1716_v49 }
 0x577   :  { %2369 = vmatpush1.msra.mxu0 %v4300_v57  ;;  %v5171_v57 = vld [vmem:[#allocation86_spill] sm:$0xff] }
 0x578   :  { %2370 = vmatprep.subr.mxu0 %v4304_v59  ;;  %v5172_v59 = vld [vmem:[#allocation87_spill] sm:$0xff] }
 0x579   :  { %2371 = vmatpush1.msra.mxu0 %v4308_v62  ;;  %v5173_v62 = vld [vmem:[#allocation88_spill] sm:$0xff] }
 0x57a   :  { %2372 = vmatprep.subr.mxu0 %v4312_v63  ;;  %v5174_v63 = vld [vmem:[#allocation89_spill] sm:$0xff] }
 0x57b   :  { %2373 = vmatpush1.msra.mxu0 %v4316_v1  ;;  %v2346_v1 = vadd.f32 %v1894_v54, %v5167_v47 }
 0x57c   :  { %2374 = vmatprep.subr.mxu0 %v4320_v3  ;;  %v5175_v3 = vld [vmem:[#allocation90_spill] sm:$0xff] }
 0x57d   :  { %2375 = vmatpush1.msra.mxu0 %v5148_v20  ;;  %v4754_v20 = vld [vmem:[#allocation15 + $0x128] sm:$0xff] }
 0x57e   :  { %2376 = vmatprep.subr.mxu0 %v5149_v22  ;;  %v4757_v22 = vld [vmem:[#allocation15 + $0x120] sm:$0xff] }
 0x57f   :  { %2377 = vmatpush1.msra.mxu0 %v5150_v23  ;;  %v4760_v23 = vld [vmem:[#allocation15 + $0x118] sm:$0xff] }
 0x580   :  { %2378 = vmatprep.subr.mxu0 %v5151_v24  ;;  %v4762_v24 = vld [vmem:[#allocation15 + $0x110] sm:$0xff] }
 0x581   :  { %2379 = vmatpush1.msra.mxu0 %v5152_v27  ;;  %v4764_v27 = vld [vmem:[#allocation15 + $0x108] sm:$0xff] }
 0x582   :  { %2380 = vmatprep.subr.mxu0 %v5153_v29  ;;  %v4767_v29 = vld [vmem:[#allocation15 + $0x100] sm:$0xff] }
 0x583   :  { %2381 = vmatpush2.msra.mxu0 %v5154_v33  ;;  %v5179_v33 = vld [vmem:[#allocation92_spill] sm:$0xff] }
 0x584   :  { %2382 = vmatprep.subr.mxu0 %v5155_v34  ;;  %v436_v34 = vld [vmem:[%s5178_s23] sm:$0x3] }
 0x585   :  { %2383 = vmatpush2.msra.mxu0 %v5156_v35  ;;  %v5180_v35 = vld [vmem:[#allocation56_spill] sm:$0xff] }
 0x586   :  { %2384 = vmatprep.subr.mxu0 %v5157_v36  ;;  %v4775_v36 = vsub.s32 1, %v5180_v35 }
 0x587   :  { %2385 = vmatpush2.msra.mxu0 %v5158_v37  ;;  %v5181_v37 = vld [vmem:[#allocation57_spill] sm:$0xff] }
 0x588   :  { %2386 = vmatprep.subr.mxu0 %v5159_v38  ;;  %v4778_v38 = vrot.slane %v436_v34, %v5181_v37 }
 0x589   :  { %2387 = vmatpush2.msra.mxu0 %v5160_v39  ;;  %v4781_v39 = vrot.slane %v436_v34, %v4775_v36 }
 0x58a   :  { %2388 = vmatprep.subr.mxu0 %v5161_v40 }
 0x58b   :  { %2389 = vmatpush2.msra.mxu0 %v5162_v41 }
 0x58c   :  { %2390 = vmatprep.subr.mxu0 %v5163_v42 }
 0x58d   :  { %2391 = vmatpush2.msra.mxu0 %v5164_v43 }
 0x58e   :  { %2392 = vmatprep.subr.mxu0 %v5165_v44 }
 0x58f   :  { %2393 = vmatpush2.msra.mxu0 %v4419_v31  ;;  %v5176_v31 = vld [vmem:[#allocation91_spill] sm:$0xff] }
 0x590   :  { %2394 = vmatprep.subr.mxu0 %v4423_v17  ;;  %v4666_v17 = vld [vmem:[#allocation15 + $0x10] sm:$0xff] }
 0x591   :  { %2395 = vmatpush2.msra.mxu0 %v4427_v55  ;;  %2279 = vmatpush1.msra.mxu1 %v4666_v17  ;;  %v4669_v55 = vld [vmem:[#allocation15 + $0x8] sm:$0xff] }
 0x592   :  { %2396 = vmatprep.subr.mxu0 %v4431_v25  ;;  %v5177_v25 = vmov 0.0   ;;  %2280 = vmatprep.subr.mxu1 %v4669_v55 }
 0x593   :  { %2397 = vmatpush2.msra.mxu0 %v4435_v28  ;;  %v4673_v28 = vld [vmem:[#allocation15] sm:$0xff] }
 0x594   :  { %2398 = vmatprep.subr.mxu0 %v4439_v60  ;;  %2281 = vmatpush1.msra.mxu1 %v4673_v28  ;;  %v4676_v60 = vld [vmem:[#allocation15 + $0x1f8] sm:$0xff] }
 0x595   :  { %2399 = vmatpush2.msra.mxu0 %v4442_v16  ;;  %2282 = vmatprep.subr.mxu1 %v4676_v60  ;;  %v4679_v16 = vld [vmem:[#allocation15 + $0x1f0] sm:$0xff] }
 0x596   :  { %2400 = vmatprep.subr.mxu0 %v4445_v8  ;;  %2283 = vmatpush2.msra.mxu1 %v4679_v16  ;;  %v4682_v8 = vld [vmem:[#allocation15 + $0x1e8] sm:$0xff] }
 0x597   :  { %2401 = vmatpush2.msra.mxu0 %v4449_v30  ;;  %2284 = vmatprep.subr.mxu1 %v4682_v8  ;;  %v4685_v30 = vld [vmem:[#allocation15 + $0x1e0] sm:$0xff] }
 0x598   :  { %2402 = vmatprep.subr.mxu0 %v4453_v15  ;;  %2285 = vmatpush2.msra.mxu1 %v4685_v30  ;;  %v4688_v15 = vld [vmem:[#allocation15 + $0x1d8] sm:$0xff] }
 0x599   :  { %2403 = vmatpush2.msra.mxu0 %v5166_v46  ;;  %2286 = vmatprep.subr.mxu1 %v4688_v15 }
 0x59a   :  { %2404 = vmatprep.subr.mxu0 %v5169_v51  ;;  %2287 = vmatpush2.msra.mxu1 %v4691_v7 }
 0x59b   :  { %2405 = vmatpush2.msra.mxu0 %v5170_v53  ;;  %2288 = vmatprep.subr.mxu1 %v4694_v0 }
 0x59c   :  { %2406 = vmatprep.subr.mxu0 %v5171_v57  ;;  %2289 = vmatpush2.msra.mxu1 %v4697_v21 }
 0x59d   :  { %2407 = vmatpush2.msra.mxu0 %v5172_v59  ;;  %2290 = vmatprep.subr.mxu1 %v4700_v6 }
 0x59e   :  { %2408 = vmatprep.subr.mxu0 %v5173_v62  ;;  %2291 = vmatpush2.msra.mxu1 %v4703_v56 }
 0x59f   :  { %2409 = vmatpush2.msra.mxu0 %v5174_v63  ;;  %2292 = vmatprep.subr.mxu1 %v4706_v58 }
 0x5a0   :  { %2410 = vmatprep.subr.mxu0 %v5175_v3  ;;  %2293 = vmatpush2.msra.mxu1 %v4709_v61 }
 0x5a1   :  { %2411 = vmatpush2.msra.mxu0 %v5176_v31  ;;  %2294 = vmatprep.subr.mxu1 %v4712_v50 }
 0x5a2   :  { %2413 = vmatmul.mubr.f32.vlgmr.msra.gmra.mxu0 %v2346_v1  ;;  %2295 = vmatpush2.msra.mxu1 %v4715_v11 }
 0x5a3   :  { %2576 = vmatprep.mubr.f32.mxu0 %v5177_v25  ;;  %2296 = vmatprep.subr.mxu1 %v4718_v12 }
 0x5a4   :  { %2297 = vmatpush2.msra.mxu1 %v4721_v14 }
 0x5a5   :  { %2298 = vmatprep.subr.mxu1 %v4724_v10 }
 0x5a6   :  { %2299 = vmatpush2.msra.mxu1 %v4727_v32 }
 0x5a7   :  { %2300 = vmatprep.subr.mxu1 %v4730_v9 }
 0x5a8   :  { %2301 = vmatpush2.msra.mxu1 %v4733_v13 }
 0x5a9   :  { %2302 = vmatprep.subr.mxu1 %v4736_v52 }
 0x5aa   :  { %2303 = vmatpush2.msra.mxu1 %v4739_v2 }
 0x5ab   :  { %2304 = vmatprep.subr.mxu1 %v4742_v18 }
 0x5ac   :  { %2305 = vmatpush2.msra.mxu1 %v4745_v19 }
 0x5ad   :  { %2306 = vmatprep.subr.mxu1 %v4748_v4 }
 0x5ae   :  { %2307 = vmatpush2.msra.mxu1 %v4751_v26 }
 0x5af   :  { %2308 = vmatprep.subr.mxu1 %v4754_v20 }
 0x5b0   :  { %2309 = vmatpush2.msra.mxu1 %v4757_v22 }
 0x5b1   :  { %2310 = vmatprep.subr.mxu1 %v4760_v23 }
 0x5b2   :  { %2311 = vmatpush2.msra.mxu1 %v4762_v24 }
 0x5b3   :  { %2312 = vmatprep.subr.mxu1 %v4764_v27 }
 0x5b4   :  { %2313 = vmatpush2.msra.mxu1 %v4767_v29 }
 0x5b5   :  { %2437 = vmatprep.subr.mxu1 %v5179_v33 }
 0x622   :  { %v2203_v40 = vpop.f32.mrf.mxu0 }
 0x623   :  { %v2204_v41 = vadd.f32 %v2203_v40, %v4778_v38 }
 0x624   :  { %v2205_v42 = vpop.f32.mrf.mxu0 }
 0x625   :  { %v2214_v43 = vmul.f32 %v2204_v41, %v2204_v41  ;;  %v2206_v44 = vadd.f32 %v2205_v42, %v4781_v39 }
 0x626   :  { %v2209_v45 = vpop.f32.mrf.mxu0 }
 0x627   :  { %v2218_v46 = vmul.f32 %v2214_v43, %v2204_v41  ;;  %v2215_v47 = vmul.f32 %v2206_v44, %v2206_v44  ;;  %v2210_v49 = vadd.f32 %v2209_v45, %v4778_v38 }
 0x628   :  { %v2211_v51 = vpop.f32.mrf.mxu0 }
 0x629   :  { %v2222_v53 = vmul.f32 0.044715, %v2218_v46  ;;  %v2219_v54 = vmul.f32 %v2215_v47, %v2206_v44  ;;  %v2216_v57 = vmul.f32 %v2210_v49, %v2210_v49  ;;  %v2212_v59 = vadd.f32 %v2211_v51, %v4781_v39 }
 0x62b   :  { %v2226_v62 = vadd.f32 %v2222_v53, %v2204_v41  ;;  %v2223_v63 = vmul.f32 0.044715, %v2219_v54  ;;  %v2220_v1 = vmul.f32 %v2216_v57, %v2210_v49  ;;  %v2217_v3 = vmul.f32 %v2212_v59, %v2212_v59 }
 0x62d   :  { %v2230_v31 = vmul.f32 0.7978846, %v2226_v62  ;;  %v2227_v33 = vadd.f32 %v2223_v63, %v2206_v44  ;;  %v2224_v34 = vmul.f32 0.044715, %v2220_v1  ;;  %v2221_v35 = vmul.f32 %v2217_v3, %v2212_v59 }
 0x62f   :  { %3453 = vtanh.f32 %v2230_v31  ;;  %v2231_v40 = vmul.f32 0.7978846, %v2227_v33  ;;  %v2228_v42 = vadd.f32 %v2224_v34, %v2210_v49  ;;  %v2225_v43 = vmul.f32 0.044715, %v2221_v35 }
 0x631   :  { %3455 = vtanh.f32 %v2231_v40  ;;  %v2232_v45 = vmul.f32 0.7978846, %v2228_v42  ;;  %v2229_v5 = vadd.f32 %v2225_v43, %v2212_v59  ;;  %v5182_v40 = vld [vmem:[#allocation93_spill] sm:$0xff]  ;;  %v5183_v42 = vld [vmem:[#allocation94_spill] sm:$0xff] }
 0x633   :  { %3457 = vtanh.f32 %v2232_v45  ;;  %v2233_v46 = vmul.f32 0.7978846, %v2229_v5  ;;  %v5184_v45 = vld [vmem:[#allocation95_spill] sm:$0xff] }
 0x635   :  { %3459 = vtanh.f32 %v2233_v46  ;;  %v5185_v46 = vld [vmem:[#allocation96_spill] sm:$0xff] }
 0x63c   :  { %v3454_v47 = vpop.eup %3453 }
 0x63d   :  { %v2238_v51 = vadd.f32 1.0, %v3454_v47  ;;  %v5186_v47 = vld [vmem:[#allocation97_spill] sm:$0xff] }
 0x63e   :  { %v3456_v53 = vpop.eup %3455 }
 0x63f   :  { %v2239_v54 = vadd.f32 1.0, %v3456_v53  ;;  %v2242_v48 = vmul.f32 0.5, %v2238_v51  ;;  %v5190_v51 = vld [vmem:[#allocation101_spill] sm:$0xff]  ;;  %v5192_v53 = vld [vmem:[#allocation103_spill] sm:$0xff] }
 0x640   :  { %v3458_v57 = vpop.eup %3457 }
 0x641   :  { %v2243_v62 = vmul.f32 0.5, %v2239_v54  ;;  %v2240_v63 = vadd.f32 1.0, %v3458_v57  ;;  %v2246_v33 = vmul.f32 %v2242_v48, %v2204_v41  ;;  %v5188_v48 = vld [vmem:[#allocation99_spill] sm:$0xff]  ;;  %v5189_v41 = vld [vmem:[#allocation100_spill] sm:$0xff]  ;;  %v5194_v54 = vld [vmem:[#allocation105_spill] sm:$0xff] }
 0x642   :  { %v3460_v1 = vpop.eup %3459  ;;  %v5195_v57 = vld [vmem:[#allocation106_spill] sm:$0xff] }
 0x643   :  { %v2247_v3 = vmul.f32 %v2243_v62, %v2206_v44  ;;  %v2241_v31 = vadd.f32 1.0, %v3460_v1  ;;  %v2244_v34 = vmul.f32 0.5, %v2240_v63  ;;  %v5187_v44 = vld [vmem:[#allocation98_spill] sm:$0xff]  ;;  %v5196_v62 = vld [vmem:[#allocation107_spill] sm:$0xff]  ;;  %v5197_v63 = vld [vmem:[#allocation108_spill] sm:$0xff] }
 0x644   :  { %v5198_v1 = vld [vmem:[#allocation109_spill] sm:$0xff] }
 0x645   :  { %2314 = vmatprep.mubr.f32.mxu1 %v2247_v3  ;;  %v2245_v35 = vmul.f32 0.5, %v2241_v31  ;;  %v2248_v43 = vmul.f32 %v2244_v34, %v2210_v49  ;;  %v5193_v49 = vld [vmem:[#allocation104_spill] sm:$0xff]  ;;  %v5199_v3 = vld [vmem:[#allocation110_spill] sm:$0xff]  ;;  %v5200_v31 = vld [vmem:[#allocation111_spill] sm:$0xff] }
 0x646   :  { %2315 = vmatmul.mubr.f32.vlgmr.msra.gmra.mxu1 %v2246_v33  ;;  %v5201_v33 = vld [vmem:[#allocation112_spill] sm:$0xff]  ;;  %v5202_v34 = vld [vmem:[#allocation113_spill] sm:$0xff] }
 0x647   :  { %2438 = vmatpush1.msra.mxu1 %v5182_v40  ;;  %v2249_v5 = vmul.f32 %v2245_v35, %v2212_v59  ;;  %v5191_v59 = vld [vmem:[#allocation102_spill] sm:$0xff]  ;;  %v5204_v40 = vld [vmem:[#allocation115_spill] sm:$0xff] }
 0x648   :  { %2439 = vmatprep.subr.mxu1 %v5183_v42  ;;  %v5203_v35 = vld [vmem:[#allocation114_spill] sm:$0xff]  ;;  %v5206_v42 = vld [vmem:[#allocation117_spill] sm:$0xff] }
 0x649   :  { %2440 = vmatpush1.msra.mxu1 %v5184_v45  ;;  %2320 = vmatprep.mubr.f32.mxu1 %v2249_v5  ;;  %v5205_v5 = vld [vmem:[#allocation116_spill] sm:$0xff]  ;;  %v5208_v45 = vld [vmem:[#allocation119_spill] sm:$0xff] }
 0x64a   :  { %2441 = vmatprep.subr.mxu1 %v5185_v46  ;;  %2321 = vmatmul.mubr.f32.gmra.mxu1 %v2248_v43  ;;  %v5207_v43 = vld [vmem:[#allocation118_spill] sm:$0xff] }
 0x64b   :  { %2442 = vmatpush1.msra.mxu1 %v5186_v47  ;;  %v5209_v47 = vld [vmem:[#allocation120_spill] sm:$0xff] }
 0x64c   :  { %2443 = vmatprep.subr.mxu1 %v5187_v44 }
 0x64d   :  { %2444 = vmatpush1.msra.mxu1 %v5188_v48 }
 0x64e   :  { %2445 = vmatprep.subr.mxu1 %v5189_v41 }
 0x64f   :  { %2446 = vmatpush1.msra.mxu1 %v5190_v51 }
 0x650   :  { %2447 = vmatprep.subr.mxu1 %v5191_v59 }
 0x651   :  { %2448 = vmatpush1.msra.mxu1 %v5192_v53 }
 0x652   :  { %2449 = vmatprep.subr.mxu1 %v5193_v49 }
 0x653   :  { %2450 = vmatpush1.msra.mxu1 %v5194_v54 }
 0x654   :  { %2451 = vmatprep.subr.mxu1 %v5195_v57 }
 0x655   :  { %2452 = vmatpush1.msra.mxu1 %v5196_v62  ;;  %v5216_v62 = vld [vmem:[#allocation63_spill] sm:$0xff] }
 0x656   :  { %2453 = vmatprep.subr.mxu1 %v5197_v63 }
 0x657   :  { %2454 = vmatpush1.msra.mxu1 %v5198_v1 }
 0x658   :  { %2455 = vmatprep.subr.mxu1 %v5199_v3 }
 0x659   :  { %2456 = vmatpush1.msra.mxu1 %v5200_v31  ;;  %v3485_v31 = vld [vmem:[#allocation10] sm:$0xff] }
 0x65a   :  { %2457 = vmatprep.subr.mxu1 %v5201_v33 }
 0x65b   :  { %2458 = vmatpush1.msra.mxu1 %v5202_v34 }
 0x65c   :  { %2459 = vmatprep.subr.mxu1 %v5203_v35  ;;  %v502_v35 = vld [vmem:[%s5214_s26] sm:$0xff] }
 0x65d   :  { %2460 = vmatpush1.msra.mxu1 %v5204_v40  ;;  %v503_v40 = vld [vmem:[%s5214_s26 + $0x8] sm:$0xff] }
 0x65e   :  { %2461 = vmatprep.subr.mxu1 %v5205_v5  ;;  %v541_v5 = vld [vmem:[#allocation21 + $0xf8] sm:$0xff] }
 0x65f   :  { %2462 = vmatpush1.msra.mxu1 %v5206_v42  ;;  %v540_v42 = vld [vmem:[#allocation21 + $0xf0] sm:$0xff] }
 0x660   :  { %2463 = vmatprep.subr.mxu1 %v5207_v43  ;;  %v539_v43 = vld [vmem:[#allocation21 + $0xe8] sm:$0xff] }
 0x661   :  { %2464 = vmatpush1.msra.mxu1 %v5208_v45  ;;  %v538_v45 = vld [vmem:[#allocation21 + $0xe0] sm:$0xff] }
 0x662   :  { %v2414_v46 = vpop.f32.mrf.mxu0  ;;  %2465 = vmatprep.subr.mxu1 %v5209_v47  ;;  %v536_v47 = vld [vmem:[#allocation21 + $0xd0] sm:$0xff] }
 0x663   :  { %v2415_v44 = vadd.f32 %v2414_v46, %v4778_v38  ;;  %2466 = vmatpush1.msra.mxu1 %v4666_v17  ;;  %v537_v46 = vld [vmem:[#allocation21 + $0xd8] sm:$0xff] }
 0x664   :  { %v2416_v48 = vpop.f32.mrf.mxu0  ;;  %2467 = vmatprep.subr.mxu1 %v4669_v55 }
 0x665   :  { %v2419_v41 = vmul.f32 %v2415_v44, %v2415_v44  ;;  %v2417_v51 = vadd.f32 %v2416_v48, %v4781_v39  ;;  %2468 = vmatpush1.msra.mxu1 %v4673_v28  ;;  %v5215_v39 = vld [vmem:[#allocation62_spill] sm:$0xff] }
 0x666   :  { %2469 = vmatprep.subr.mxu1 %v4676_v60  ;;  %v534_v48 = vld [vmem:[#allocation21 + $0xc0] sm:$0xff] }
 0x667   :  { %v2421_v59 = vmul.f32 %v2419_v41, %v2415_v44  ;;  %v2420_v53 = vmul.f32 %v2417_v51, %v2417_v51  ;;  %2470 = vmatpush2.msra.mxu1 %v4679_v16  ;;  %v533_v41 = vld [vmem:[#allocation21 + $0xb8] sm:$0xff] }
 0x668   :  { %2471 = vmatprep.subr.mxu1 %v4682_v8 }
 0x669   :  { %v2423_v49 = vmul.f32 0.044715, %v2421_v59  ;;  %v2422_v38 = vmul.f32 %v2420_v53, %v2417_v51  ;;  %2472 = vmatpush2.msra.mxu1 %v4685_v30  ;;  %v531_v59 = vld [vmem:[#allocation21 + $0xa8] sm:$0xff]  ;;  %v530_v53 = vld [vmem:[#allocation21 + $0xa0] sm:$0xff] }
 0x66a   :  { %2473 = vmatprep.subr.mxu1 %v4688_v15 }
 0x66b   :  { %v2425_v17 = vadd.f32 %v2423_v49, %v2415_v44  ;;  %v2424_v55 = vmul.f32 0.044715, %v2422_v38  ;;  %2474 = vmatpush2.msra.mxu1 %v4691_v7  ;;  %v529_v49 = vld [vmem:[#allocation21 + $0x98] sm:$0xff]  ;;  %v528_v38 = vld [vmem:[#allocation21 + $0x90] sm:$0xff] }
 0x66c   :  { %2475 = vmatprep.subr.mxu1 %v4694_v0 }
 0x66d   :  { %v2427_v28 = vmul.f32 0.7978846, %v2425_v17  ;;  %v2426_v60 = vadd.f32 %v2424_v55, %v2417_v51  ;;  %2476 = vmatpush2.msra.mxu1 %v4697_v21  ;;  %v527_v17 = vld [vmem:[#allocation21 + $0x88] sm:$0xff]  ;;  %v526_v55 = vld [vmem:[#allocation21 + $0x80] sm:$0xff] }
 0x66e   :  { %2477 = vmatprep.subr.mxu1 %v4700_v6 }
 0x66f   :  { %3461 = vtanh.f32 %v2427_v28  ;;  %v2428_v16 = vmul.f32 0.7978846, %v2426_v60  ;;  %2478 = vmatpush2.msra.mxu1 %v4703_v56  ;;  %v525_v28 = vld [vmem:[#allocation21 + $0x78] sm:$0xff]  ;;  %v524_v60 = vld [vmem:[#allocation21 + $0x70] sm:$0xff] }
 0x670   :  { %2479 = vmatprep.subr.mxu1 %v4706_v58 }
 0x671   :  { %3463 = vtanh.f32 %v2428_v16  ;;  %2480 = vmatpush2.msra.mxu1 %v4709_v61  ;;  %v523_v16 = vld [vmem:[#allocation21 + $0x68] sm:$0xff] }
 0x672   :  { %2481 = vmatprep.subr.mxu1 %v4712_v50 }
 0x673   :  { %2482 = vmatpush2.msra.mxu1 %v4715_v11  ;;  %v501_v11 = vld [vmem:[#allocation16] sm:$0x3] }
 0x674   :  { %2483 = vmatprep.subr.mxu1 %v4718_v12  ;;  %v5210_v12 = vld [vmem:[#allocation59_spill] sm:$0xff] }
 0x675   :  { %2484 = vmatpush2.msra.mxu1 %v4721_v14 }
 0x676   :  { %2485 = vmatprep.subr.mxu1 %v4724_v10 }
 0x677   :  { %2486 = vmatpush2.msra.mxu1 %v4727_v32  ;;  %v5211_v32 = vld [vmem:[#allocation60_spill] sm:$0xff] }
 0x678   :  { %2487 = vmatprep.subr.mxu1 %v4730_v9 }
 0x679   :  { %2488 = vmatpush2.msra.mxu1 %v4733_v13  ;;  %v2339_v13 = vrot.slane %v501_v11, %v4775_v36 }
 0x67a   :  { %2489 = vmatprep.subr.mxu1 %v4736_v52  ;;  %v5212_v52 = vld [vmem:[#allocation58_spill] sm:$0xff] }
 0x67b   :  { %2490 = vmatpush2.msra.mxu1 %v4739_v2 }
 0x67c   :  { %v3462_v8 = vpop.eup %3461  ;;  %2491 = vmatprep.subr.mxu1 %v4742_v18  ;;  %v5213_v18 = vld [vmem:[#allocation61_spill] sm:$0xff] }
 0x67d   :  { %v2431_v30 = vadd.f32 1.0, %v3462_v8  ;;  %2492 = vmatpush2.msra.mxu1 %v4745_v19  ;;  %v522_v8 = vld [vmem:[#allocation21 + $0x60] sm:$0xff] }
 0x67e   :  { %v3464_v15 = vpop.eup %3463  ;;  %2493 = vmatprep.subr.mxu1 %v4748_v4  ;;  %v2335_v4 = vrot.slane %v501_v11, %v5181_v37  ;;  %v511_v11 = vld [vmem:[#allocation21 + $0x8] sm:$0xff] }
 0x67f   :  { %2494 = vmatpush2.msra.mxu1 %v4751_v26  ;;  %v2432_v7 = vadd.f32 1.0, %v3464_v15  ;;  %v2433_v0 = vmul.f32 0.5, %v2431_v30  ;;  %v521_v30 = vld [vmem:[#allocation21 + $0x58] sm:$0xff]  ;;  %v520_v15 = vld [vmem:[#allocation21 + $0x50] sm:$0xff] }
 0x680   :  { %2495 = vmatprep.subr.mxu1 %v4754_v20 }
 0x681   :  { %2496 = vmatpush2.msra.mxu1 %v4757_v22  ;;  %v2434_v21 = vmul.f32 0.5, %v2432_v7  ;;  %v2435_v56 = vmul.f32 %v2433_v0, %v2415_v44  ;;  %v535_v44 = vld [vmem:[#allocation21 + $0xc8] sm:$0xff]  ;;  %v518_v0 = vld [vmem:[#allocation21 + $0x40] sm:$0xff] }
 0x682   :  { %2497 = vmatprep.subr.mxu1 %v4760_v23  ;;  %v519_v7 = vld [vmem:[#allocation21 + $0x48] sm:$0xff] }
 0x683   :  { %2498 = vmatpush2.msra.mxu1 %v4762_v24  ;;  %v2436_v6 = vmul.f32 %v2434_v21, %v2417_v51  ;;  %v3483_v24 = vld [vmem:[%s5074_s11] sm:$0xff]  ;;  %v532_v51 = vld [vmem:[#allocation21 + $0xb0] sm:$0xff]  ;;  %v517_v21 = vld [vmem:[#allocation21 + $0x38] sm:$0xff] }
 0x684   :  { %2499 = vmatprep.subr.mxu1 %v4764_v27  ;;  %v3484_v27 = vld [vmem:[%s5074_s11 + $0x8] sm:$0xff] }
 0x685   :  { %2500 = vmatpush2.msra.mxu1 %v4767_v29  ;;  %2501 = vmatprep.mubr.f32.mxu1 %v2436_v6  ;;  %v516_v6 = vld [vmem:[#allocation21 + $0x30] sm:$0xff] }
 0x686   :  { %2502 = vmatmul.mubr.f32.vlgmr.msra.gmra.mxu1 %v2435_v56  ;;  %v515_v56 = vld [vmem:[#allocation21 + $0x28] sm:$0xff] }
 0x687   :  { %2657 = vmatprep.mubr.f32.mxu1 %v5177_v25 }
 0x706   :  { %v2316_v58 = vpop.f32.mrf.mxu1 }
 0x707   :  { %v2327_v19 = vadd.f32 %v2316_v58, %v5213_v18  ;;  %v514_v58 = vld [vmem:[#allocation21 + $0x20] sm:$0xff] }
 0x708   :  { %v2318_v61 = vpop.f32.mrf.mxu1  ;;  %v566_v18 = vld [vmem:[#allocation21 + $0x1c0] sm:$0xff] }
 0x709   :  { %v2328_v9 = vadd.f32 %v2318_v61, %v5211_v32  ;;  %v4866_v23 = vadd.f32 %v2335_v4, %v2327_v19  ;;  %v513_v61 = vld [vmem:[#allocation21 + $0x18] sm:$0xff]  ;;  %v571_v32 = vld [vmem:[#allocation21 + $0x1e8] sm:$0xff] }
 0x70a   :  { %v2322_v50 = vpop.f32.mrf.mxu1  ;;  %v565_v19 = vld [vmem:[#allocation21 + $0x1b8] sm:$0xff] }
 0x70b   :  { %v2329_v14 = vadd.f32 %v2322_v50, %v5210_v12  ;;  %v4863_v22 = vadd.f32 %v2339_v13, %v2328_v9  ;;  %v512_v50 = vld [vmem:[#allocation21 + $0x10] sm:$0xff]  ;;  %v510_v12 = vld [vmem:[#allocation21] sm:$0xff] }
 0x70c   :  { %v2324_v10 = vpop.f32.mrf.mxu1  ;;  %v570_v9 = vld [vmem:[#allocation21 + $0x1e0] sm:$0xff] }
 0x70d   :  { %v2330_v2 = vadd.f32 %v2324_v10, %v5212_v52  ;;  %v4861_v20 = vadd.f32 %v2335_v4, %v2329_v14  ;;  %v573_v14 = vld [vmem:[#allocation21 + $0x1f8] sm:$0xff]  ;;  %v572_v10 = vld [vmem:[#allocation21 + $0x1f0] sm:$0xff] }
 0x70e   :  { %v568_v52 = vld [vmem:[#allocation21 + $0x1d0] sm:$0xff] }
 0x70f   :  { %v4859_v26 = vadd.f32 %v2339_v13, %v2330_v2  ;;  %v567_v2 = vld [vmem:[#allocation21 + $0x1c8] sm:$0xff] }
 0x711   :  { %2540 = vmatprep.subr.mxu0 %v4859_v26 }
 0x712   :  { %2541 = vmatpush1.msra.mxu0 %v4861_v20 }
 0x713   :  { %2542 = vmatprep.subr.mxu0 %v4863_v22 }
 0x714   :  { %2543 = vmatpush1.msra.mxu0 %v4866_v23 }
 0x715   :  { %3291 = vmatmul.mubr.msk.f32.vlgmr.msra.gmra.mxu0 %vm726_vm2, %v3483_v24  ;;  %v563_v24 = vld [vmem:[#allocation21 + $0x1a8] sm:$0xff] }
 0x716   :  { %2582 = vmatprep.mubr.f32.mxu0 %v5177_v25 }
 0x719   :  { %3292 = vmatmul.mubr.msk.f32.gmra.mxu0 %vm726_vm2, %v3484_v27  ;;  %v562_v27 = vld [vmem:[#allocation21 + $0x1a0] sm:$0xff] }
 0x71a   :  { %2873 = vmatprep.mubr.f32.mxu0 %v5177_v25 }
 0x746   :  { %v2503_v29 = vpop.f32.mrf.mxu1 }
 0x747   :  { %v2508_v54 = vadd.f32 %v2503_v29, %v5215_v39  ;;  %v561_v29 = vld [vmem:[#allocation21 + $0x198] sm:$0xff]  ;;  %v560_v39 = vld [vmem:[#allocation21 + $0x190] sm:$0xff] }
 0x748   :  { %v2505_v57 = vpop.f32.mrf.mxu1 }
 0x749   :  { %v2509_v63 = vadd.f32 %v2505_v57, %v5216_v62  ;;  %v2510_v3 = vadd.f32 %v2508_v54, %v2335_v4  ;;  %v564_v4 = vld [vmem:[#allocation21 + $0x1b0] sm:$0xff]  ;;  %v559_v54 = vld [vmem:[#allocation21 + $0x188] sm:$0xff]  ;;  %v558_v57 = vld [vmem:[#allocation21 + $0x180] sm:$0xff] }
 0x74a   :  { %v557_v62 = vld [vmem:[#allocation21 + $0x178] sm:$0xff] }
 0x74b   :  { %v2511_v1 = vadd.f32 %v2509_v63, %v2339_v13  ;;  %v569_v13 = vld [vmem:[#allocation21 + $0x1d8] sm:$0xff]  ;;  %v556_v63 = vld [vmem:[#allocation21 + $0x170] sm:$0xff] }
 0x74d   :  { %2623 = vmatprep.subr.mxu1 %v2511_v1  ;;  %v555_v1 = vld [vmem:[#allocation21 + $0x168] sm:$0xff] }
 0x74e   :  { %2624 = vmatpush1.msra.mxu1 %v2510_v3  ;;  %v554_v3 = vld [vmem:[#allocation21 + $0x160] sm:$0xff] }
 0x74f   :  { %3293 = vmatmul.mubr.msk.f32.vlgmr.msra.gmra.mxu1 %vm673_vm1, %v3485_v31  ;;  %v553_v31 = vld [vmem:[#allocation21 + $0x158] sm:$0xff] }
 0x750   :  { %2744 = vmatprep.mubr.f32.mxu1 %v5177_v25 }
 0x80f   :  { %v2659_v33 = vpop.f32.mrf.mxu1 }
 0x811   :  { %v2661_v34 = vpop.f32.mrf.mxu1 }
 0x812   :  { %2710 = vmatprep.subr.mxu1 %v2661_v34  ;;  %v2667_v34 = vpop.permute.xlu1 %2666 }
 0x813   :  { %2711 = vmatpush1.msra.mxu1 %v2659_v33  ;;  %v552_v33 = vld [vmem:[#allocation21 + $0x150] sm:$0xff] }
 0x814   :  { %3294 = vmatmul.mubr.msk.f32.vlgmr.msra.gmra.mxu1 %vm673_vm1, %v502_v35  ;;  %2905 = vmatprep.subr.mxu1 %v541_v5 }
 0x815   :  { %2750 = vmatprep.mubr.f32.mxu1 %v5177_v25  ;;  %2906 = vmatpush1.msra.mxu1 %v540_v42 }
 0x816   :  { %2907 = vmatprep.subr.mxu1 %v539_v43 }
 0x817   :  { %2908 = vmatpush1.msra.mxu1 %v538_v45  ;;  %v2672_v45 = vpop.permute.xlu0 %2671 }
 0x818   :  { %3295 = vmatmul.mubr.msk.f32.gmra.mxu1 %vm673_vm1, %v503_v40  ;;  %2909 = vmatprep.subr.mxu1 %v537_v46 }
 0x819   :  { %2910 = vmatpush1.msra.mxu1 %v536_v47 }
 0x81a   :  { %2911 = vmatprep.subr.mxu1 %v535_v44 }
 0x81b   :  { %2912 = vmatpush1.msra.mxu1 %v534_v48 }
 0x81c   :  { %2913 = vmatprep.subr.mxu1 %v533_v41 }
 0x81d   :  { %2914 = vmatpush1.msra.mxu1 %v532_v51 }
 0x81e   :  { %2915 = vmatprep.subr.mxu1 %v531_v59 }
 0x81f   :  { %2916 = vmatpush1.msra.mxu1 %v530_v53 }
 0x820   :  { %2917 = vmatprep.subr.mxu1 %v529_v49 }
 0x821   :  { %2918 = vmatpush1.msra.mxu1 %v528_v38 }
 0x822   :  { %2919 = vmatprep.subr.mxu1 %v527_v17 }
 0x823   :  { %2920 = vmatpush1.msra.mxu1 %v526_v55 }
 0x824   :  { %2921 = vmatprep.subr.mxu1 %v525_v28 }
 0x825   :  { %2922 = vmatpush1.msra.mxu1 %v524_v60 }
 0x826   :  { %2923 = vmatprep.subr.mxu1 %v523_v16 }
 0x827   :  { %2924 = vmatpush1.msra.mxu1 %v522_v8 }
 0x828   :  { %2925 = vmatprep.subr.mxu1 %v521_v30 }
 0x829   :  { %2926 = vmatpush1.msra.mxu1 %v520_v15 }
 0x82a   :  { %2927 = vmatprep.subr.mxu1 %v519_v7 }
 0x82b   :  { %2928 = vmatpush1.msra.mxu1 %v518_v0 }
 0x82c   :  { %2929 = vmatprep.subr.mxu1 %v517_v21 }
 0x82d   :  { %2930 = vmatpush1.msra.mxu1 %v516_v6 }
 0x82e   :  { %2931 = vmatprep.subr.mxu1 %v515_v56 }
 0x82f   :  { %2932 = vmatpush1.msra.mxu1 %v514_v58 }
 0x830   :  { %2933 = vmatprep.subr.mxu1 %v513_v61 }
 0x831   :  { %2934 = vmatpush1.msra.mxu1 %v512_v50 }
 0x832   :  { %2935 = vmatprep.subr.mxu1 %v511_v11 }
 0x833   :  { %2936 = vmatpush1.msra.mxu1 %v510_v12 }
 0x834   :  { %2937 = vmatprep.subr.mxu1 %v573_v14 }
 0x835   :  { %2938 = vmatpush2.msra.mxu1 %v572_v10 }
 0x836   :  { %2939 = vmatprep.subr.mxu1 %v571_v32 }
 0x837   :  { %2940 = vmatpush2.msra.mxu1 %v570_v9 }
 0x838   :  { %2941 = vmatprep.subr.mxu1 %v569_v13 }
 0x839   :  { %2942 = vmatpush2.msra.mxu1 %v568_v52 }
 0x83a   :  { %2943 = vmatprep.subr.mxu1 %v567_v2 }
 0x83b   :  { %2944 = vmatpush2.msra.mxu1 %v566_v18 }
 0x83c   :  { %2945 = vmatprep.subr.mxu1 %v565_v19 }
 0x83d   :  { %2946 = vmatpush2.msra.mxu1 %v564_v4 }
 0x83e   :  { %2947 = vmatprep.subr.mxu1 %v563_v24 }
 0x83f   :  { %2948 = vmatpush2.msra.mxu1 %v562_v27  ;;  %v506_v27 = vld [vmem:[%s5217_s20] sm:$0xff] }
 0x840   :  { %2949 = vmatprep.subr.mxu1 %v561_v29  ;;  %v507_v29 = vld [vmem:[%s5217_s20 + $0x8] sm:$0xff] }
 0x841   :  { %2950 = vmatpush2.msra.mxu1 %v560_v39  ;;  %v551_v39 = vld [vmem:[#allocation21 + $0x148] sm:$0xff] }
 0x842   :  { %2951 = vmatprep.subr.mxu1 %v559_v54  ;;  %v550_v54 = vld [vmem:[#allocation21 + $0x140] sm:$0xff] }
 0x843   :  { %2952 = vmatpush2.msra.mxu1 %v558_v57  ;;  %v549_v57 = vld [vmem:[#allocation21 + $0x138] sm:$0xff] }
 0x844   :  { %2953 = vmatprep.subr.mxu1 %v557_v62  ;;  %v548_v62 = vld [vmem:[#allocation21 + $0x130] sm:$0xff] }
 0x845   :  { %2954 = vmatpush2.msra.mxu1 %v556_v63  ;;  %v547_v63 = vld [vmem:[#allocation21 + $0x128] sm:$0xff] }
 0x846   :  { %2955 = vmatprep.subr.mxu1 %v555_v1  ;;  %v546_v1 = vld [vmem:[#allocation21 + $0x120] sm:$0xff] }
 0x847   :  { %2956 = vmatpush2.msra.mxu1 %v554_v3  ;;  %v545_v3 = vld [vmem:[#allocation21 + $0x118] sm:$0xff] }
 0x848   :  { %2957 = vmatprep.subr.mxu1 %v553_v31  ;;  %v544_v31 = vld [vmem:[#allocation21 + $0x110] sm:$0xff] }
 0x849   :  { %2958 = vmatpush2.msra.mxu1 %v552_v33  ;;  %v542_v33 = vld [vmem:[#allocation21 + $0x100] sm:$0xff] }
 0x84a   :  { %2959 = vmatprep.subr.mxu1 %v551_v39 }
 0x84b   :  { %2960 = vmatpush2.msra.mxu1 %v550_v54 }
 0x84c   :  { %2961 = vmatprep.subr.mxu1 %v549_v57 }
 0x84d   :  { %2962 = vmatpush2.msra.mxu1 %v548_v62 }
 0x84e   :  { %2963 = vmatprep.subr.mxu1 %v547_v63 }
 0x84f   :  { %2964 = vmatpush2.msra.mxu1 %v546_v1 }
 0x850   :  { %2965 = vmatprep.subr.mxu1 %v545_v3  ;;  %v578_v3 = vld [vmem:[#allocation22 + $0x18] sm:$0xff] }
 0x851   :  { %2966 = vmatpush2.msra.mxu1 %v544_v31  ;;  %v577_v31 = vld [vmem:[#allocation22 + $0x10] sm:$0xff] }
 0x8d4   :  { %v2746_v35 = vpop.f32.mrf.mxu1 }
 0x8d5   :  { %v2747_v40 = vadd.f32 %v2746_v35, %v2667_v34  ;;  %v605_v35 = vld [vmem:[#allocation22 + $0xf0] sm:$0xff] }
 0x8d6   :  { %v2748_v5 = vpop.f32.mrf.mxu1 }
 0x8d7   :  { %v2757_v42 = vmul.f32 %v2747_v40, %v2747_v40  ;;  %v2749_v43 = vadd.f32 %v2748_v5, %v2667_v34  ;;  %v606_v34 = vld [vmem:[#allocation22 + $0xf8] sm:$0xff]  ;;  %v603_v5 = vld [vmem:[#allocation22 + $0xe0] sm:$0xff] }
 0x8d8   :  { %v2752_v46 = vpop.f32.mrf.mxu1 }
 0x8d9   :  { %v2761_v47 = vmul.f32 %v2757_v42, %v2747_v40  ;;  %v2758_v44 = vmul.f32 %v2749_v43, %v2749_v43  ;;  %v2753_v48 = vadd.f32 %v2752_v46, %v2672_v45  ;;  %v602_v42 = vld [vmem:[#allocation22 + $0xd8] sm:$0xff]  ;;  %v599_v46 = vld [vmem:[#allocation22 + $0xc0] sm:$0xff] }
 0x8da   :  { %v2754_v41 = vpop.f32.mrf.mxu1 }
 0x8db   :  { %v2765_v51 = vmul.f32 0.044715, %v2761_v47  ;;  %v2762_v59 = vmul.f32 %v2758_v44, %v2749_v43  ;;  %v2759_v53 = vmul.f32 %v2753_v48, %v2753_v48  ;;  %v2755_v49 = vadd.f32 %v2754_v41, %v2672_v45  ;;  %v600_v45 = vld [vmem:[#allocation22 + $0xc8] sm:$0xff]  ;;  %v598_v47 = vld [vmem:[#allocation22 + $0xb8] sm:$0xff]  ;;  %v597_v44 = vld [vmem:[#allocation22 + $0xb0] sm:$0xff] }
 0x8dc   :  { %v595_v41 = vld [vmem:[#allocation22 + $0xa0] sm:$0xff] }
 0x8dd   :  { %v2769_v38 = vadd.f32 %v2765_v51, %v2747_v40  ;;  %v2766_v17 = vmul.f32 0.044715, %v2762_v59  ;;  %v2763_v55 = vmul.f32 %v2759_v53, %v2753_v48  ;;  %v2760_v28 = vmul.f32 %v2755_v49, %v2755_v49  ;;  %v594_v51 = vld [vmem:[#allocation22 + $0x98] sm:$0xff]  ;;  %v593_v59 = vld [vmem:[#allocation22 + $0x90] sm:$0xff]  ;;  %v592_v53 = vld [vmem:[#allocation22 + $0x88] sm:$0xff] }
 0x8df   :  { %v2770_v60 = vadd.f32 %v2766_v17, %v2749_v43  ;;  %v2767_v16 = vmul.f32 0.044715, %v2763_v55  ;;  %v2764_v8 = vmul.f32 %v2760_v28, %v2755_v49  ;;  %v2773_v30 = vmul.f32 0.7978846, %v2769_v38  ;;  %v590_v38 = vld [vmem:[#allocation22 + $0x78] sm:$0xff]  ;;  %v589_v17 = vld [vmem:[#allocation22 + $0x70] sm:$0xff] }
 0x8e0   :  { %v588_v55 = vld [vmem:[#allocation22 + $0x68] sm:$0xff]  ;;  %v587_v28 = vld [vmem:[#allocation22 + $0x60] sm:$0xff] }
 0x8e1   :  { %v2774_v15 = vmul.f32 0.7978846, %v2770_v60  ;;  %v2771_v7 = vadd.f32 %v2767_v16, %v2753_v48  ;;  %v2768_v0 = vmul.f32 0.044715, %v2764_v8  ;;  %v586_v60 = vld [vmem:[#allocation22 + $0x58] sm:$0xff]  ;;  %v585_v16 = vld [vmem:[#allocation22 + $0x50] sm:$0xff] }
 0x8e2   :  { %v584_v8 = vld [vmem:[#allocation22 + $0x48] sm:$0xff] }
 0x8e3   :  { %3465 = vtanh.f32 %v2774_v15  ;;  %v2775_v21 = vmul.f32 0.7978846, %v2771_v7  ;;  %v2772_v6 = vadd.f32 %v2768_v0, %v2755_v49  ;;  %v582_v15 = vld [vmem:[#allocation22 + $0x38] sm:$0xff]  ;;  %v581_v7 = vld [vmem:[#allocation22 + $0x30] sm:$0xff]  ;;  %v580_v0 = vld [vmem:[#allocation22 + $0x28] sm:$0xff] }
 0x8e4   :  { %3467 = vtanh.f32 %v2773_v30  ;;  %v583_v30 = vld [vmem:[#allocation22 + $0x40] sm:$0xff] }
 0x8e5   :  { %3469 = vtanh.f32 %v2775_v21  ;;  %v2776_v56 = vmul.f32 0.7978846, %v2772_v6  ;;  %v579_v21 = vld [vmem:[#allocation22 + $0x20] sm:$0xff]  ;;  %v2578_v6 = vpop.f32.mrf.mxu0 }
 0x8e7   :  { %3471 = vtanh.f32 %v2776_v56  ;;  %v2580_v56 = vpop.f32.mrf.mxu0 }
 0x8f0   :  { %v3466_v58 = vpop.eup %3465 }
 0x8f1   :  { %v3468_v61 = vpop.eup %3467  ;;  %v2782_v12 = vadd.f32 1.0, %v3466_v58  ;;  %v2584_v58 = vpop.f32.mrf.mxu0 }
 0x8f2   :  { %v3470_v50 = vpop.eup %3469  ;;  %v2781_v10 = vadd.f32 1.0, %v3468_v61  ;;  %v2591_v62 = vsub.f32 %v4861_v20, %v2584_v58 }
 0x8f3   :  { %v2783_v11 = vadd.f32 1.0, %v3470_v50  ;;  %v2786_v52 = vmul.f32 0.5, %v2782_v12  ;;  %v2586_v61 = vpop.f32.mrf.mxu0  ;;  %v2796_v50 = vpop.permute.xlu0 %2795 }
 0x8f4   :  { %v3472_v14 = vpop.eup %3471  ;;  %v2785_v2 = vmul.f32 0.5, %v2781_v10  ;;  %v2592_v54 = vsub.f32 %v4859_v26, %v2586_v61 }
 0x8f5   :  { %v2784_v32 = vadd.f32 1.0, %v3472_v14  ;;  %v2787_v9 = vmul.f32 0.5, %v2783_v11  ;;  %v2790_v4 = vmul.f32 %v2786_v52, %v2749_v43  ;;  %v601_v43 = vld [vmem:[#allocation22 + $0xd0] sm:$0xff]  ;;  %v2590_v52 = vsub.f32 %v4863_v22, %v2580_v56 }
 0x8f6   :  { %v2789_v24 = vmul.f32 %v2785_v2, %v2747_v40  ;;  %v604_v40 = vld [vmem:[#allocation22 + $0xe8] sm:$0xff] }
 0x8f7   :  { %v2788_v13 = vmul.f32 0.5, %v2784_v32  ;;  %v2791_v19 = vmul.f32 %v2787_v9, %v2753_v48  ;;  %v596_v48 = vld [vmem:[#allocation22 + $0xa8] sm:$0xff]  ;;  %v2801_v32 = vpop.permute.xlu1 %2800 }
 0x8f9   :  { %v2792_v18 = vmul.f32 %v2788_v13, %v2755_v49  ;;  %v591_v49 = vld [vmem:[#allocation22 + $0x80] sm:$0xff] }
 0x8fb   :  { %2837 = vmatprep.subr.mxu0 %v2792_v18 }
 0x8fc   :  { %2838 = vmatpush1.msra.mxu0 %v2791_v19  ;;  %v2589_v19 = vsub.f32 %v4866_v23, %v2578_v6 }
 0x8fd   :  { %2839 = vmatprep.subr.mxu0 %v2790_v4 }
 0x8fe   :  { %2840 = vmatpush1.msra.mxu0 %v2789_v24 }
 0x8ff   :  { %3296 = vmatmul.mubr.msk.f32.vlgmr.msra.gmra.mxu0 %vm726_vm2, %v506_v27  ;;  %3018 = vmatprep.subr.mxu0 %v606_v34  ;;  %v638_v34 = vld [vmem:[#allocation22 + $0x1f8] sm:$0xff] }
 0x900   :  { %2879 = vmatprep.mubr.f32.mxu0 %v5177_v25  ;;  %v543_v25 = vld [vmem:[#allocation21 + $0x108] sm:$0xff]  ;;  %3019 = vmatpush1.msra.mxu0 %v605_v35  ;;  %v637_v35 = vld [vmem:[#allocation22 + $0x1f0] sm:$0xff] }
 0x901   :  { %2967 = vmatprep.subr.mxu1 %v543_v25  ;;  %3020 = vmatprep.subr.mxu0 %v604_v40  ;;  %v576_v25 = vld [vmem:[#allocation22 + $0x8] sm:$0xff] }
 0x902   :  { %2968 = vmatpush2.msra.mxu1 %v542_v33  ;;  %3021 = vmatpush1.msra.mxu0 %v603_v5  ;;  %v575_v33 = vld [vmem:[#allocation22] sm:$0xff]  ;;  %v636_v40 = vld [vmem:[#allocation22 + $0x1e8] sm:$0xff] }
 0x903   :  { %3297 = vmatmul.mubr.msk.f32.gmra.mxu0 %vm726_vm2, %v507_v29  ;;  %3022 = vmatprep.subr.mxu0 %v602_v42  ;;  %v635_v5 = vld [vmem:[#allocation22 + $0x1e0] sm:$0xff]  ;;  %v634_v42 = vld [vmem:[#allocation22 + $0x1d8] sm:$0xff] }
 0x904   :  { %3023 = vmatpush1.msra.mxu0 %v601_v43  ;;  %v633_v43 = vld [vmem:[#allocation22 + $0x1d0] sm:$0xff] }
 0x905   :  { %3024 = vmatprep.subr.mxu0 %v600_v45  ;;  %v632_v45 = vld [vmem:[#allocation22 + $0x1c8] sm:$0xff] }
 0x906   :  { %3025 = vmatpush1.msra.mxu0 %v599_v46  ;;  %v631_v46 = vld [vmem:[#allocation22 + $0x1c0] sm:$0xff] }
 0x907   :  { %3026 = vmatprep.subr.mxu0 %v598_v47  ;;  %v630_v47 = vld [vmem:[#allocation22 + $0x1b8] sm:$0xff] }
 0x908   :  { %3027 = vmatpush1.msra.mxu0 %v597_v44  ;;  %v629_v44 = vld [vmem:[#allocation22 + $0x1b0] sm:$0xff] }
 0x909   :  { %3028 = vmatprep.subr.mxu0 %v596_v48  ;;  %v628_v48 = vld [vmem:[#allocation22 + $0x1a8] sm:$0xff] }
 0x90a   :  { %3029 = vmatpush1.msra.mxu0 %v595_v41  ;;  %v627_v41 = vld [vmem:[#allocation22 + $0x1a0] sm:$0xff] }
 0x90b   :  { %3030 = vmatprep.subr.mxu0 %v594_v51  ;;  %v626_v51 = vld [vmem:[#allocation22 + $0x198] sm:$0xff] }
 0x90c   :  { %3031 = vmatpush1.msra.mxu0 %v593_v59  ;;  %v625_v59 = vld [vmem:[#allocation22 + $0x190] sm:$0xff] }
 0x90d   :  { %3032 = vmatprep.subr.mxu0 %v592_v53  ;;  %v624_v53 = vld [vmem:[#allocation22 + $0x188] sm:$0xff] }
 0x90e   :  { %3033 = vmatpush1.msra.mxu0 %v591_v49  ;;  %v623_v49 = vld [vmem:[#allocation22 + $0x180] sm:$0xff] }
 0x90f   :  { %3034 = vmatprep.subr.mxu0 %v590_v38  ;;  %v622_v38 = vld [vmem:[#allocation22 + $0x178] sm:$0xff] }
 0x910   :  { %3035 = vmatpush1.msra.mxu0 %v589_v17  ;;  %v621_v17 = vld [vmem:[#allocation22 + $0x170] sm:$0xff] }
 0x911   :  { %3036 = vmatprep.subr.mxu0 %v588_v55  ;;  %v620_v55 = vld [vmem:[#allocation22 + $0x168] sm:$0xff] }
 0x912   :  { %3037 = vmatpush1.msra.mxu0 %v587_v28  ;;  %v619_v28 = vld [vmem:[#allocation22 + $0x160] sm:$0xff] }
 0x913   :  { %3038 = vmatprep.subr.mxu0 %v586_v60  ;;  %v618_v60 = vld [vmem:[#allocation22 + $0x158] sm:$0xff] }
 0x914   :  { %3039 = vmatpush1.msra.mxu0 %v585_v16  ;;  %v617_v16 = vld [vmem:[#allocation22 + $0x150] sm:$0xff] }
 0x915   :  { %3040 = vmatprep.subr.mxu0 %v584_v8  ;;  %v616_v8 = vld [vmem:[#allocation22 + $0x148] sm:$0xff] }
 0x916   :  { %3041 = vmatpush1.msra.mxu0 %v583_v30  ;;  %v615_v30 = vld [vmem:[#allocation22 + $0x140] sm:$0xff] }
 0x917   :  { %3042 = vmatprep.subr.mxu0 %v582_v15  ;;  %v614_v15 = vld [vmem:[#allocation22 + $0x138] sm:$0xff] }
 0x918   :  { %3043 = vmatpush1.msra.mxu0 %v581_v7  ;;  %v613_v7 = vld [vmem:[#allocation22 + $0x130] sm:$0xff] }
 0x919   :  { %3044 = vmatprep.subr.mxu0 %v580_v0  ;;  %v612_v0 = vld [vmem:[#allocation22 + $0x128] sm:$0xff] }
 0x91a   :  { %3045 = vmatpush1.msra.mxu0 %v579_v21  ;;  %v611_v21 = vld [vmem:[#allocation22 + $0x120] sm:$0xff] }
 0x91b   :  { %3046 = vmatprep.subr.mxu0 %v578_v3  ;;  %v660_v3 = vld [vmem:[%s4036_s14 + $0xa0] sm:$0xff] }
 0x91c   :  { %3047 = vmatpush1.msra.mxu0 %v577_v31  ;;  %v644_v31 = vld [vmem:[%s4036_s14 + $0x20] sm:$0xff] }
 0x91d   :  { %3048 = vmatprep.subr.mxu0 %v576_v25  ;;  %v574_v25 = vld [vmem:[%s5218_s12] sm:$0x3] }
 0x91e   :  { %3049 = vmatpush1.msra.mxu0 %v575_v33  ;;  %v2898_v33 = vrot.slane %v574_v25, %v5181_v37 }
 0x91f   :  { %3050 = vmatprep.subr.mxu0 %v638_v34  ;;  %v2902_v34 = vrot.slane %v574_v25, %v4775_v36 }
 0x920   :  { %3051 = vmatpush2.msra.mxu0 %v637_v35 }
 0x921   :  { %3052 = vmatprep.subr.mxu0 %v636_v40 }
 0x922   :  { %3053 = vmatpush2.msra.mxu0 %v635_v5 }
 0x923   :  { %3054 = vmatprep.subr.mxu0 %v634_v42 }
 0x924   :  { %3055 = vmatpush2.msra.mxu0 %v633_v43 }
 0x925   :  { %3056 = vmatprep.subr.mxu0 %v632_v45 }
 0x926   :  { %3057 = vmatpush2.msra.mxu0 %v631_v46 }
 0x927   :  { %3058 = vmatprep.subr.mxu0 %v630_v47 }
 0x928   :  { %3059 = vmatpush2.msra.mxu0 %v629_v44 }
 0x929   :  { %3060 = vmatprep.subr.mxu0 %v628_v48 }
 0x92a   :  { %3061 = vmatpush2.msra.mxu0 %v627_v41 }
 0x92b   :  { %3062 = vmatprep.subr.mxu0 %v626_v51 }
 0x92c   :  { %3063 = vmatpush2.msra.mxu0 %v625_v59 }
 0x92d   :  { %3064 = vmatprep.subr.mxu0 %v624_v53 }
 0x92e   :  { %3065 = vmatpush2.msra.mxu0 %v623_v49 }
 0x92f   :  { %3066 = vmatprep.subr.mxu0 %v622_v38 }
 0x930   :  { %3067 = vmatpush2.msra.mxu0 %v621_v17 }
 0x931   :  { %3068 = vmatprep.subr.mxu0 %v620_v55 }
 0x932   :  { %3069 = vmatpush2.msra.mxu0 %v619_v28 }
 0x933   :  { %3070 = vmatprep.subr.mxu0 %v618_v60 }
 0x934   :  { %3071 = vmatpush2.msra.mxu0 %v617_v16 }
 0x935   :  { %3072 = vmatprep.subr.mxu0 %v616_v8 }
 0x936   :  { %3073 = vmatpush2.msra.mxu0 %v615_v30 }
 0x937   :  { %3074 = vmatprep.subr.mxu0 %v614_v15 }
 0x938   :  { %3075 = vmatpush2.msra.mxu0 %v613_v7 }
 0x939   :  { %3076 = vmatprep.subr.mxu0 %v612_v0 }
 0x93a   :  { %3077 = vmatpush2.msra.mxu0 %v611_v21 }
 0x9bf   :  { %v2875_v11 = vpop.f32.mrf.mxu0 }
 0x9c0   :  { %v2876_v12 = vadd.f32 %v2875_v11, %v2796_v50  ;;  %v655_v11 = vld [vmem:[%s4036_s14 + $0x78] sm:$0xff] }
 0x9c1   :  { %v2877_v14 = vpop.f32.mrf.mxu0 }
 0x9c2   :  { %v2878_v10 = vadd.f32 %v2877_v14, %v2796_v50  ;;  %v2886_v9 = vadd.f32 %v2876_v12, %v2578_v6  ;;  %v610_v6 = vld [vmem:[#allocation22 + $0x118] sm:$0xff]  ;;  %v670_v12 = vld [vmem:[%s4036_s14 + $0xf0] sm:$0xff] }
 0x9c3   :  { %v2881_v13 = vpop.f32.mrf.mxu0  ;;  %3078 = vmatprep.subr.mxu0 %v610_v6  ;;  %v671_v50 = vld [vmem:[%s4036_s14 + $0xf8] sm:$0xff]  ;;  %v654_v14 = vld [vmem:[%s4036_s14 + $0x70] sm:$0xff] }
 0x9c4   :  { %v2887_v2 = vadd.f32 %v2878_v10, %v2580_v56  ;;  %v2882_v18 = vadd.f32 %v2881_v13, %v2801_v32  ;;  %v2890_v29 = vadd.f32 %v2886_v9, %v2589_v19  ;;  %v609_v56 = vld [vmem:[#allocation22 + $0x110] sm:$0xff]  ;;  %3311 = vmatprep.subr.mxu1 %v671_v50  ;;  %v669_v10 = vld [vmem:[%s4036_s14 + $0xe8] sm:$0xff]  ;;  %v668_v9 = vld [vmem:[%s4036_s14 + $0xe0] sm:$0xff] }
 0x9c5   :  { %v2883_v4 = vpop.f32.mrf.mxu0  ;;  %3079 = vmatpush2.msra.mxu0 %v609_v56  ;;  %v652_v13 = vld [vmem:[%s4036_s14 + $0x60] sm:$0xff]  ;;  %v650_v19 = vld [vmem:[%s4036_s14 + $0x50] sm:$0xff] }
 0x9c6   :  { %v2884_v24 = vadd.f32 %v2883_v4, %v2801_v32  ;;  %v2891_v27 = vadd.f32 %v2887_v2, %v2590_v52  ;;  %v2888_v39 = vadd.f32 %v2882_v18, %v2584_v58  ;;  %v608_v58 = vld [vmem:[#allocation22 + $0x108] sm:$0xff]  ;;  %v667_v52 = vld [vmem:[%s4036_s14 + $0xd8] sm:$0xff]  ;;  %v666_v18 = vld [vmem:[%s4036_s14 + $0xd0] sm:$0xff] }
 0x9c7   :  { %3080 = vmatprep.subr.mxu0 %v608_v58  ;;  %v653_v32 = vld [vmem:[%s4036_s14 + $0x68] sm:$0xff]  ;;  %v651_v2 = vld [vmem:[%s4036_s14 + $0x58] sm:$0xff] }
 0x9c8   :  { %v2889_v57 = vadd.f32 %v2884_v24, %v2586_v61  ;;  %2969 = vmatprep.mubr.f32.mxu1 %v2891_v27  ;;  %v2892_v1 = vadd.f32 %v2888_v39, %v2591_v62  ;;  %v607_v61 = vld [vmem:[#allocation22 + $0x100] sm:$0xff]  ;;  %v665_v4 = vld [vmem:[%s4036_s14 + $0xc8] sm:$0xff]  ;;  %v663_v39 = vld [vmem:[%s4036_s14 + $0xb8] sm:$0xff] }
 0x9c9   :  { %2970 = vmatmul.mubr.f32.vlgmr.msra.gmra.mxu1 %v2890_v29  ;;  %3081 = vmatpush2.msra.mxu0 %v607_v61  ;;  %v649_v24 = vld [vmem:[%s4036_s14 + $0x48] sm:$0xff]  ;;  %v664_v27 = vld [vmem:[%s4036_s14 + $0xc0] sm:$0xff]  ;;  %v646_v62 = vld [vmem:[%s4036_s14 + $0x30] sm:$0xff] }
 0x9ca   :  { %v2893_v63 = vadd.f32 %v2889_v57, %v2592_v54  ;;  %3312 = vmatpush3.msra.mxu1 %v655_v11  ;;  %v648_v29 = vld [vmem:[%s4036_s14 + $0x40] sm:$0xff]  ;;  %v647_v54 = vld [vmem:[%s4036_s14 + $0x38] sm:$0xff]  ;;  %v662_v57 = vld [vmem:[%s4036_s14 + $0xb0] sm:$0xff] }
 0x9cb   :  { %3313 = vmatprep.subr.mxu1 %v670_v12 }
 0x9cc   :  { %2975 = vmatprep.mubr.f32.mxu1 %v2893_v63  ;;  %3314 = vmatpush3.msra.mxu1 %v654_v14  ;;  %v661_v63 = vld [vmem:[%s4036_s14 + $0xa8] sm:$0xff] }
 0x9cd   :  { %2976 = vmatmul.mubr.f32.gmra.mxu1 %v2892_v1  ;;  %3315 = vmatprep.subr.mxu1 %v669_v10  ;;  %v645_v1 = vld [vmem:[%s4036_s14 + $0x28] sm:$0xff] }
 0x9ce   :  { %3316 = vmatpush3.msra.mxu1 %v653_v32 }
 0x9cf   :  { %3317 = vmatprep.subr.mxu1 %v668_v9 }
 0x9d0   :  { %3318 = vmatpush3.msra.mxu1 %v652_v13 }
 0x9d1   :  { %3319 = vmatprep.subr.mxu1 %v667_v52 }
 0x9d2   :  { %3320 = vmatpush3.msra.mxu1 %v651_v2 }
 0x9d3   :  { %3321 = vmatprep.subr.mxu1 %v666_v18 }
 0x9d4   :  { %3322 = vmatpush3.msra.mxu1 %v650_v19 }
 0x9d5   :  { %3323 = vmatprep.subr.mxu1 %v665_v4 }
 0x9d6   :  { %3324 = vmatpush3.msra.mxu1 %v649_v24  ;;  %v659_v24 = vld [vmem:[%s4036_s14 + $0x98] sm:$0xff] }
 0x9d7   :  { %3325 = vmatprep.subr.mxu1 %v664_v27  ;;  %v643_v27 = vld [vmem:[%s4036_s14 + $0x18] sm:$0xff] }
 0x9d8   :  { %3326 = vmatpush3.msra.mxu1 %v648_v29  ;;  %v658_v29 = vld [vmem:[%s4036_s14 + $0x90] sm:$0xff] }
 0x9d9   :  { %3327 = vmatprep.subr.mxu1 %v663_v39  ;;  %v642_v39 = vld [vmem:[%s4036_s14 + $0x10] sm:$0xff] }
 0x9da   :  { %3328 = vmatpush3.msra.mxu1 %v647_v54  ;;  %v657_v54 = vld [vmem:[%s4036_s14 + $0x88] sm:$0xff] }
 0x9db   :  { %3329 = vmatprep.subr.mxu1 %v662_v57  ;;  %v641_v57 = vld [vmem:[%s4036_s14 + $0x8] sm:$0xff] }
 0x9dc   :  { %3330 = vmatpush3.msra.mxu1 %v646_v62  ;;  %v656_v62 = vld [vmem:[%s4036_s14 + $0x80] sm:$0xff] }
 0x9dd   :  { %3331 = vmatprep.subr.mxu1 %v661_v63  ;;  %v640_v63 = vld [vmem:[%s4036_s14] sm:$0xff] }
 0x9de   :  { %3332 = vmatpush3.msra.mxu1 %v645_v1  ;;  %v639_v1 = vld [vmem:[%s4031_s9] sm:$0x3] }
 0x9df   :  { %3333 = vmatprep.subr.mxu1 %v660_v3 }
 0x9e0   :  { %3334 = vmatpush3.msra.mxu1 %v644_v31  ;;  %v3107_v31 = vrot.slane %v639_v1, %v4775_v36 }
 0x9e1   :  { %3335 = vmatprep.subr.mxu1 %v659_v24 }
 0x9e2   :  { %3336 = vmatpush3.msra.mxu1 %v643_v27 }
 0x9e3   :  { %3337 = vmatprep.subr.mxu1 %v658_v29 }
 0x9e4   :  { %3338 = vmatpush3.msra.mxu1 %v642_v39 }
 0x9e5   :  { %3339 = vmatprep.subr.mxu1 %v657_v54 }
 0x9e6   :  { %3340 = vmatpush3.msra.mxu1 %v641_v57 }
 0x9e7   :  { %3341 = vmatprep.subr.mxu1 %v656_v62 }
 0x9e8   :  { %3342 = vmatpush3.msra.mxu1 %v640_v63 }
 0xa89   :  { %v2971_v35 = vpop.f32.mrf.mxu1 }
 0xa8a   :  { %v2972_v40 = vadd.f32 %v2971_v35, %v2898_v33 }
 0xa8b   :  { %v2973_v5 = vpop.f32.mrf.mxu1 }
 0xa8c   :  { %v2982_v42 = vmul.f32 %v2972_v40, %v2972_v40  ;;  %v2974_v43 = vadd.f32 %v2973_v5, %v2902_v34 }
 0xa8d   :  { %v2977_v45 = vpop.f32.mrf.mxu1 }
 0xa8e   :  { %v2986_v46 = vmul.f32 %v2982_v42, %v2972_v40  ;;  %v2983_v47 = vmul.f32 %v2974_v43, %v2974_v43  ;;  %v2978_v44 = vadd.f32 %v2977_v45, %v2898_v33  ;;  %v3103_v33 = vrot.slane %v639_v1, %v5181_v37 }
 0xa8f   :  { %v2979_v48 = vpop.f32.mrf.mxu1 }
 0xa90   :  { %v2990_v41 = vmul.f32 0.044715, %v2986_v46  ;;  %v2987_v51 = vmul.f32 %v2983_v47, %v2974_v43  ;;  %v2984_v59 = vmul.f32 %v2978_v44, %v2978_v44  ;;  %v2980_v53 = vadd.f32 %v2979_v48, %v2902_v34 }
 0xa92   :  { %v2994_v49 = vadd.f32 %v2990_v41, %v2972_v40  ;;  %v2991_v38 = vmul.f32 0.044715, %v2987_v51  ;;  %v2988_v17 = vmul.f32 %v2984_v59, %v2978_v44  ;;  %v2985_v55 = vmul.f32 %v2980_v53, %v2980_v53  ;;  %v3298_v41 = vld [vmem:[%s4041_s19] ss:$0 sm:$0xff] }
 0xa94   :  { %v2998_v28 = vmul.f32 0.7978846, %v2994_v49  ;;  %v2995_v60 = vadd.f32 %v2991_v38, %v2974_v43  ;;  %v2992_v16 = vmul.f32 0.044715, %v2988_v17  ;;  %v2989_v8 = vmul.f32 %v2985_v55, %v2980_v53  ;;  %v3487_v38 = vld [vmem:[#allocation2] ss:$0 sm:$0xff] }
 0xa96   :  { %3473 = vtanh.f32 %v2998_v28  ;;  %v2999_v30 = vmul.f32 0.7978846, %v2995_v60  ;;  %v2996_v15 = vadd.f32 %v2992_v16, %v2978_v44  ;;  %v2993_v7 = vmul.f32 0.044715, %v2989_v8  ;;  %v5219_v16 = vld [vmem:[#allocation55_spill] sm:$0xff] }
 0xa98   :  { %3475 = vtanh.f32 %v2999_v30  ;;  %v3000_v0 = vmul.f32 0.7978846, %v2996_v15  ;;  %v2997_v21 = vadd.f32 %v2993_v7, %v2980_v53 }
 0xa9a   :  { %3477 = vtanh.f32 %v3000_v0  ;;  %v3001_v6 = vmul.f32 0.7978846, %v2997_v21 }
 0xa9c   :  { %3479 = vtanh.f32 %v3001_v6 }
 0xaa3   :  { %v3474_v56 = vpop.eup %3473 }
 0xaa4   :  { %v3006_v58 = vadd.f32 1.0, %v3474_v56 }
 0xaa5   :  { %v3476_v61 = vpop.eup %3475 }
 0xaa6   :  { %v3007_v50 = vadd.f32 1.0, %v3476_v61  ;;  %v3010_v12 = vmul.f32 0.5, %v3006_v58 }
 0xaa7   :  { %v3478_v11 = vpop.eup %3477 }
 0xaa8   :  { %v3011_v14 = vmul.f32 0.5, %v3007_v50  ;;  %v3008_v10 = vadd.f32 1.0, %v3478_v11  ;;  %v3014_v52 = vmul.f32 %v3010_v12, %v2972_v40 }
 0xaa9   :  { %v3480_v32 = vpop.eup %3479 }
 0xaaa   :  { %v3015_v9 = vmul.f32 %v3011_v14, %v2974_v43  ;;  %v3009_v13 = vadd.f32 1.0, %v3480_v32  ;;  %v3012_v2 = vmul.f32 0.5, %v3008_v10 }
 0xaac   :  { %3082 = vmatprep.mubr.f32.mxu0 %v3015_v9  ;;  %v3013_v18 = vmul.f32 0.5, %v3009_v13  ;;  %v3016_v4 = vmul.f32 %v3012_v2, %v2978_v44 }
 0xaad   :  { %3083 = vmatmul.mubr.f32.vlgmr.msra.gmra.mxu0 %v3014_v52 }
 0xaae   :  { %v3017_v19 = vmul.f32 %v3013_v18, %v2980_v53 }
 0xab0   :  { %3088 = vmatprep.mubr.f32.mxu0 %v3017_v19 }
 0xab1   :  { %3089 = vmatmul.mubr.f32.gmra.mxu0 %v3016_v4 }
 0xb6d   :  { %v3084_v3 = vpop.f32.mrf.mxu0 }
 0xb6e   :  { %v3095_v25 = vadd.f32 %v3084_v3, %v4866_v23  ;;  %v3486_v23 = vld [vmem:[%s5066_s0] sm:$0x1] }
 0xb6f   :  { %v3086_v34 = vpop.f32.mrf.mxu0  ;;  %v3197_v44 = vadd.f32 1e-10, %v3486_v23 }
 0xb70   :  { %v3096_v35 = vadd.f32 %v3086_v34, %v4863_v22  ;;  %v3110_v42 = vadd.f32 %v3103_v33, %v3095_v25 }
 0xb71   :  { %v3090_v40 = vpop.f32.mrf.mxu0  ;;  %v3202_v48 = vrot.slane %v3197_v44, %v5181_v37  ;;  %v5220_v37 = vld [vmem:[#allocation54_spill] sm:$0xff] }
 0xb72   :  { %v3111_v5 = vadd.f32 %v3107_v31, %v3096_v35  ;;  %v3097_v43 = vadd.f32 %v3090_v40, %v4861_v20 }
 0xb73   :  { %v3092_v45 = vpop.f32.mrf.mxu0  ;;  %3481 = vrcp.f32 %v3202_v48 }
 0xb74   :  { %v3098_v46 = vadd.f32 %v3092_v45, %v4859_v26  ;;  %3184 = vmatprep.mubr.f32.mxu1 %v3111_v5  ;;  %v3112_v47 = vadd.f32 %v3103_v33, %v3097_v43 }
 0xb75   :  { %3185 = vmatmul.mubr.f32.vlgmr.msra.gmra.mxu1 %v3110_v42 }
 0xb76   :  { %v3113_v36 = vadd.f32 %v3107_v31, %v3098_v46 }
 0xb78   :  { %3189 = vmatprep.mubr.f32.mxu1 %v3113_v36 }
 0xb79   :  { %3190 = vmatmul.mubr.f32.gmra.mxu1 %v3112_v47 }
 0xb80   :  { %v3482_v26 = vpop.eup %3481 }
 0xc35   :  { %v3343_v22 = vpop.f32.mrf.mxu1 }
 0xc37   :  { %v3344_v51 = vpop.f32.mrf.mxu1 }
 0xc38   :  { %v3345_v59 = vadd.f32 %v3344_v51, %v3343_v22 }
 0xc39   :  { %v3346_v20 = vpop.f32.mrf.mxu1 }
 0xc3a   :  { %v3187_v53 = vadd.f32 %v3345_v59, %v3298_v41 }
 0xc3b   :  { %v3347_v49 = vpop.f32.mrf.mxu1 }
 0xc3c   :  { %v3195_v17 = vsub.f32 %v3187_v53, %v3487_v38  ;;  %v3348_v55 = vadd.f32 %v3347_v49, %v3346_v20 }
 0xc3e   :  { %v3205_v28 = vmul.f32 %v3482_v26, %v3195_v17  ;;  %v3192_v60 = vadd.f32 %v3348_v55, %v3298_v41 }
 0xc40   :  { %v3207_v8 = vmul.f32 %v3205_v28, %v5219_v16  ;;  %v3196_v30 = vsub.f32 %v3192_v60, %v3487_v38 }
 0xc42   :  { %v3209_v15 = vadd.f32 %v3207_v8, %v5220_v37  ;;  %v3206_v7 = vmul.f32 %v3482_v26, %v3196_v30 }
 0xc44   :  { %3211 = vst.msk [vmem:[%s4046_s5] sm:$0xff] %vm673_vm1, %v3209_v15  ;;  %v3208_v0 = vmul.f32 %v3206_v7, %v5219_v16 }
 0xc46   :  { %v3210_v21 = vadd.f32 %v3208_v0, %v5220_v37 }
 0xc48   :  { %3212 = vst.msk [vmem:[%s4046_s5 + $0x8] sm:$0xff] %vm673_vm1, %v3210_v21 }
 0xc49   :  { %3217 = vsyncpa [#allocation3], 1 }
 0xc4a   :  { %3218 = vsyncpa [#allocation5], 1 }
 0xc4b   :  { %3219 = vsyncpa [#allocation8], 1 }
 0xc4c   :  { %3220 = vsyncpa [#allocation11], 1 }
 0xc4d   :  { %3221 = vsyncpa [#allocation14], 1 }
 0xc4e   :  { %3222 = vsyncpa [#allocation17], 1 }
 0xc4f   :  { %3223 = vsyncpa [#allocation20], 1 }
 0xc50   :  { %3224 = vsyncpa [#allocation23], 1 }

</bundles_post_ra>
